<compile_context>
chip_gen: v7x
topology: tpu7x:2x2x1
jax: 0.10.0
libtpu: 0.0.40
codegen_flags: <defaults>
</compile_context>

<pallas_src>
import functools

import jax
import jax.numpy as jnp
from jax.experimental import pallas as pl
from jax.experimental.pallas import tpu as pltpu

F32 = jnp.float32
BF16 = jnp.bfloat16
VMEM_LIMIT = 48 * 1024 * 1024          # explicit, safe on v7x (64 MiB physical)


# ----------------------------------------------------------------------------
# Small helpers
# ----------------------------------------------------------------------------

def _cparams(sem):
    return pltpu.CompilerParams(dimension_semantics=sem,
                                vmem_limit_bytes=VMEM_LIMIT)


def _branch_spec(shape):
    """BlockSpec taking the whole per-branch slab (leading axis) per grid step."""
    nd = len(shape)
    block = (1,) + tuple(shape[1:])
    return pl.BlockSpec(block, lambda s: (s,) + (0,) * (nd - 1))


def _layer_spec(shape):
    """Stream one (branch, layer) weight slab per grid step (grid = (S, L))."""
    nd = len(shape)
    block = (1, 1) + tuple(shape[2:])
    return pl.BlockSpec(block, lambda s, l: (s, l) + (0,) * (nd - 2))


def _bytes_of(arrs, out_shapes):
    total = sum(int(a.size) * a.dtype.itemsize for a in arrs)
    for o in out_shapes:
        n = 1
        for d in o.shape:
            n *= int(d)
        total += n * jnp.dtype(o.dtype).itemsize
    return int(total)


def _ln_rows(x, g, b, eps):
    """LayerNorm over the last dim of [.., D] rows (f32 math)."""
    mu = jnp.mean(x, axis=-1, keepdims=True)
    xc = x - mu
    var = jnp.mean(xc * xc, axis=-1, keepdims=True)
    return xc * jax.lax.rsqrt(var + eps) * g + b


def _mm(a, b):
    """MXU matmul: bf16 operands, f32 accumulation."""
    return jnp.dot(a.astype(BF16), b.astype(BF16), preferred_element_type=F32)


# ----------------------------------------------------------------------------
# Kernel 1: embedding MLP (Linear -> LayerNorm -> ReLU -> Linear),
#           both branches in ONE launch (features zero-padded to common width)
# ----------------------------------------------------------------------------

def _embed_kernel(x_ref, w1_ref, b1_ref, g_ref, beta_ref, w2_ref, b2_ref, o_ref,
                  *, eps):
    x = x_ref[0].astype(F32)
    h = _mm(x, w1_ref[0]) + b1_ref[0].astype(F32)
    h = jnp.maximum(_ln_rows(h, g_ref[0].astype(F32),
                             beta_ref[0].astype(F32), eps), 0.0)
    o_ref[0] = (_mm(h, w2_ref[0]) + b2_ref[0].astype(F32)).astype(o_ref.dtype)


def mlp_embed_stacked(x_st, ep, eps=1e-5):
    """x_st: [2, B*T, Fpad] (branch-stacked, zero-padded) -> [2, B*T, H]."""
    S, M, _ = x_st.shape
    H = ep["w2"].shape[-1]
    args = [x_st, ep["w1"], ep["b1"], ep["g"], ep["beta"], ep["w2"], ep["b2"]]
    return pl.pallas_call(
        functools.partial(_embed_kernel, eps=eps),
        out_shape=jax.ShapeDtypeStruct((S, M, H), F32),
        grid=(S,),
        in_specs=[_branch_spec(a.shape) for a in args],
        out_specs=_branch_spec((S, M, H)),
        compiler_params=_cparams(("parallel",)),
    )(*args)


# ----------------------------------------------------------------------------
# Kernel 2: transformer encoder stack + fused amax-over-time
#   grid = (branch, layer); per-layer weights streamed, h persistent in VMEM
# ----------------------------------------------------------------------------

def _tstack_kernel(x_ref, wqkv_ref, bqkv_ref, wo_ref, bo_ref, g1_ref, b1_ref,
                   wf1_ref, bf1_ref, wf2_ref, bf2_ref, g2_ref, b2_ref,
                   vmax_ref, h_ref, *, num_head, batch, seq, eps):
    D = x_ref.shape[-1]
    Dh = D // num_head
    T = seq
    M = batch * T
    l = pl.program_id(1)

    @pl.when(l == 0)
    def _():
        h_ref[...] = x_ref[0].astype(F32)

    h = h_ref[...]                                                 # [M, D]

    # ---- self-attention (post-norm); 1/sqrt(Dh) already folded into wqkv ----
    qkv = _mm(h, wqkv_ref[0, 0]) + bqkv_ref[0, 0].astype(F32)      # [M, 3D]
    q3 = qkv[:, 0 * D:1 * D].reshape(batch, T, D)
    k3 = qkv[:, 1 * D:2 * D].reshape(batch, T, D)
    v3 = qkv[:, 2 * D:3 * D].reshape(batch, T, D)

    heads = []
    for n in range(num_head):                      # small static head loop only
        lo, hi = n * Dh, (n + 1) * Dh
        s = jnp.einsum('bqd,bkd->bqk',
                       q3[..., lo:hi].astype(BF16), k3[..., lo:hi].astype(BF16),
                       preferred_element_type=F32)                 # [B, T, T]
        p = jnp.exp(s - jnp.max(s, axis=-1, keepdims=True))
        p = p * pl.reciprocal(jnp.sum(p, axis=-1, keepdims=True), approx=True)
        heads.append(jnp.einsum('bqk,bkd->bqd',
                                p.astype(BF16), v3[..., lo:hi].astype(BF16),
                                preferred_element_type=F32))       # [B, T, Dh]
    attn = jnp.concatenate(heads, axis=-1).reshape(M, D)           # [M, D]

    sa = _mm(attn, wo_ref[0, 0]) + bo_ref[0, 0].astype(F32)
    h = _ln_rows(h + sa, g1_ref[0, 0].astype(F32),
                 b1_ref[0, 0].astype(F32), eps)                    # residual + LN

    # ---- feed-forward block ----
    ff = jnp.maximum(_mm(h, wf1_ref[0, 0]) + bf1_ref[0, 0].astype(F32), 0.0)
    ff = _mm(ff, wf2_ref[0, 0]) + bf2_ref[0, 0].astype(F32)
    h = _ln_rows(h + ff, g2_ref[0, 0].astype(F32),
                 b2_ref[0, 0].astype(F32), eps)

    h_ref[...] = h

    # fused amax over time: one coalesced [B, D] store per branch
    @pl.when(l == pl.num_programs(1) - 1)
    def _():
        vmax_ref[0] = jnp.max(h.reshape(batch, T, D), axis=1).astype(vmax_ref.dtype)


def transformer_stack_amax(x, sp, num_head, batch, eps=1e-5):
    """x: [S, B*T, D] stacked-branch rows -> time-amax [S, B, D]."""
    S, M, D = x.shape
    assert D % num_head == 0
    T = M // batch
    L = sp["wqkv"].shape[1]
    names = ["wqkv", "bqkv", "wo", "bo", "g1", "b1",
             "wf1", "bf1", "wf2", "bf2", "g2", "b2"]
    wargs = [sp[k] for k in names]
    out_shape = jax.ShapeDtypeStruct((S, batch, D), F32)

    flops = S * L * (12 * M * D * D + 4 * batch * T * T * D)
    transc = S * L * (batch * num_head * T * T + 2 * M)
    cost = pl.CostEstimate(flops=flops, transcendentals=transc,
                           bytes_accessed=_bytes_of([x] + wargs, [out_shape]))

    return pl.pallas_call(
        functools.partial(_tstack_kernel, num_head=num_head, batch=batch,
                          seq=T, eps=eps),
        out_shape=out_shape,
        grid=(S, L),
        in_specs=[pl.BlockSpec((1, M, D), lambda s, l: (s, 0, 0))]
                 + [_layer_spec(w.shape) for w in wargs],
        out_specs=pl.BlockSpec((1, batch, D), lambda s, l: (s, 0, 0)),
        scratch_shapes=[pltpu.VMEM((M, D), F32)],
        compiler_params=_cparams(("parallel", "arbitrary")),
        cost_estimate=cost,
    )(x, *wargs)


# ----------------------------------------------------------------------------
# Kernel 3: UDM = depthwise Conv1d -> LayerNorm -> ReLU -> MaxPool1d, fused
#           (whole [B*T, C] slab, batch-boundary masks, reshape-based pooling)
# ----------------------------------------------------------------------------

def _udm_kernel(x_ref, w_ref, cb_ref, g_ref, beta_ref, o_ref, *,
                ksize, stride, padding, factor, batch, seq, eps):
    C = x_ref.shape[-1]
    T = seq
    M = batch * T
    t_conv = (T + 2 * padding - ksize) // stride + 1
    t_out = t_conv // factor

    w = w_ref[0].astype(F32)                                       # [K, C]
    cb = cb_ref[0].astype(F32)                                     # [1, C]
    g = g_ref[0].astype(F32)
    beta = beta_ref[0].astype(F32)

    x = x_ref[0].astype(F32)                                       # [B*T, C]

    if stride == 1 and 2 * padding == ksize - 1:
        # 'same' depthwise conv on the whole slab: XLU rolls + within-batch masks
        # (masks also kill cross-batch leakage at batch boundaries).
        t_idx = jax.lax.broadcasted_iota(jnp.int32, (batch, T, 1), 1).reshape(M, 1)
        acc = jnp.zeros((M, C), F32)
        for k in range(ksize):
            off = k - padding
            if off == 0:
                term = x
            else:
                term = pltpu.roll(x, shift=(-off) % M, axis=0)
                if off > 0:
                    term = jnp.where(t_idx < T - off, term, 0.0)
                else:
                    term = jnp.where(t_idx >= -off, term, 0.0)
            acc = acc + term * w[k:k + 1, :]
        y = acc                                                    # t_conv == T
    else:
        # general stride/padding (cold path in this config): per-batch time pad
        x3 = x.reshape(batch, T, C)
        if padding > 0:
            zp = jnp.zeros((batch, padding, C), F32)
            x3 = jnp.concatenate([zp, x3, zp], axis=1)
        t_full = T + 2 * padding - ksize + 1
        acc = jnp.zeros((batch, t_full, C), F32)
        for k in range(ksize):
            acc = acc + x3[:, k:k + t_full, :] * w[k:k + 1, :]
        if stride > 1:
            # exact one-hot row pick (cold path only, never traced for stride=1)
            rr = jax.lax.broadcasted_iota(jnp.int32, (t_conv, t_full), 0)
            cc = jax.lax.broadcasted_iota(jnp.int32, (t_conv, t_full), 1)
            sel = (cc == rr * stride).astype(F32)
            acc = jnp.stack([jnp.dot(sel, acc[b], preferred_element_type=F32)
                             for b in range(batch)], axis=0)
        y = acc.reshape(batch * t_conv, C)

    y = y + cb
    y = jnp.maximum(_ln_rows(y, g, beta, eps), 0.0)                # LN + ReLU

    # MaxPool1d(factor): reshape-based max (exact; batch blocks are contiguous
    # and t_conv % factor == 0 keeps windows inside one batch).
    if t_conv % factor == 0:
        pooled = jnp.max(y.reshape(batch * t_out, factor, C), axis=1)
    else:
        parts = [jnp.max(y[b * t_conv:b * t_conv + t_out * factor]
                         .reshape(t_out, factor, C), axis=1) for b in range(batch)]
        pooled = jnp.concatenate(parts, axis=0)
    o_ref[0] = pooled.astype(o_ref.dtype)


def udm_stacked(x, up, cfg, batch, eps=1e-5):
    """x: [S, B*T, C] -> [S, B*t_out, C], both branches in one launch."""
    S, M, C = x.shape
    T = M // batch
    K, stride, pad, factor = (cfg["kernel_size"], cfg["stride"],
                              cfg["padding"], cfg["factor"])
    t_conv = (T + 2 * pad - K) // stride + 1
    t_out = t_conv // factor
    args = [x, up["w"], up["b"], up["g"], up["beta"]]
    out_shape = jax.ShapeDtypeStruct((S, batch * t_out, C), F32)

    cost = pl.CostEstimate(flops=S * M * C * (2 * K + 12), transcendentals=S * M,
                           bytes_accessed=_bytes_of(args, [out_shape]))

    return pl.pallas_call(
        functools.partial(_udm_kernel, ksize=K, stride=stride, padding=pad,
                          factor=factor, batch=batch, seq=T, eps=eps),
        out_shape=out_shape,
        grid=(S,),
        in_specs=[_branch_spec(a.shape) for a in args],
        out_specs=_branch_spec((S, batch * t_out, C)),
        compiler_params=_cparams(("parallel",)),
        cost_estimate=cost,
    )(*args)


# ----------------------------------------------------------------------------
# Kernel 4: projection heads (Linear -> ReLU -> Linear), several heads per launch
#           (for production, pad NC to a multiple of 128 for lane-dense stores)
# ----------------------------------------------------------------------------

def _proj_kernel(x_ref, w1_ref, b1_ref, w2_ref, b2_ref, o_ref):
    x = x_ref[0].astype(F32)
    h = jnp.maximum(_mm(x, w1_ref[0]) + b1_ref[0].astype(F32), 0.0)
    o_ref[0] = (_mm(h, w2_ref[0]) + b2_ref[0].astype(F32)).astype(o_ref.dtype)


def stacked_proj(x, p):
    """x: [n, M, Din] with per-head weights stacked on axis 0 -> [n, M, NC]."""
    n, M, _ = x.shape
    NC = p["w2"].shape[-1]
    args = [x, p["w1"], p["b1"], p["w2"], p["b2"]]
    return pl.pallas_call(
        _proj_kernel,
        out_shape=jax.ShapeDtypeStruct((n, M, NC), F32),
        grid=(n,),
        in_specs=[_branch_spec(a.shape) for a in args],
        out_specs=_branch_spec((n, M, NC)),
        compiler_params=_cparams(("parallel",)),
    )(*args)


# ----------------------------------------------------------------------------
# Model forward (thin JAX glue between the fused kernels)
# ----------------------------------------------------------------------------

def pretraining_encoder(xc, xp, pp, cfg):
    B, T, _ = xc.shape
    G, nh, NC, H = (cfg["granularity"], cfg["num_head"],
                    cfg["num_class"], cfg["hidden"])
    Fm = pp["emb_fin"]

    # both branch inputs zero-padded to a common feature width + stacked so the
    # embedding MLP runs in ONE launch, writing straight into [2, B*T, H]
    def padf(x):
        return jnp.pad(x, ((0, 0), (0, 0), (0, Fm - x.shape[-1])))
    xs = jnp.stack([padf(xc), padf(xp)]).reshape(2, B * T, Fm)
    h = mlp_embed_stacked(xs, pp["emb_st"])                        # [2, B*T, H]

    levels = []
    for g in range(G):
        if g > 0:
            h = udm_stacked(h, pp["udm_st"], cfg, B)               # downsample
        levels.append(transformer_stack_amax(h, pp["enc_st"], nh, B))  # [2, B, H]
    v = jnp.stack(levels, axis=2)                                  # [2, B, G, H]

    vc, vp = v[0], v[1]
    vt = vc.reshape(B, G * H)
    vs = vp.reshape(B, G * H)
    vi = jnp.concatenate([vt, vs], axis=1)

    zcp = stacked_proj(v.reshape(2, B * G, H), pp["cp_st"])        # clip + part
    zc = zcp[0].reshape(B, G, NC)
    zp_ = zcp[1].reshape(B, G, NC)
    zts = stacked_proj(jnp.stack([vt, vs]), pp["tdsd_st"])         # td + sd
    zi = stacked_proj(vi[None], pp["inst_st"])[0]                  # instance
    return zc, zp_, zts[0], zts[1], zi


# ----------------------------------------------------------------------------
# Deterministic synthetic parameters (not a checkpoint)
# ----------------------------------------------------------------------------

def _init_linear(key, in_dim, out_dim):
    k1, k2 = jax.random.split(key)
    return {"w": jax.random.normal(k1, (in_dim, out_dim), F32) * 0.05,
            "b": jax.random.normal(k2, (out_dim,), F32) * 0.01}


def _init_ln(dim):
    return {"g": jnp.ones((dim,), F32), "b": jnp.zeros((dim,), F32)}


def build_params(cfg):
    keys = iter(jax.random.split(jax.random.PRNGKey(42), 64))
    H, G, NC = cfg["hidden"], cfg["granularity"], cfg["num_class"]

    def lin(i, o):
        return _init_linear(next(keys), i, o)

    def emb(in_dim):
        return {"lin1": lin(in_dim, H), "ln": _init_ln(H), "lin2": lin(H, H)}

    def enc_layer():
        return {"in_proj": lin(H, 3 * H), "out_proj": lin(H, H),
                "ln1": _init_ln(H), "ln2": _init_ln(H),
                "ff1": lin(H, H), "ff2": lin(H, H)}

    def udm_p():
        return {"w": jax.random.normal(next(keys), (cfg["kernel_size"], H), F32) * 0.1,
                "b": jnp.zeros((H,), F32), "ln": _init_ln(H)}

    def proj(in_dim):
        return {"lin1": lin(in_dim, H), "lin2": lin(H, NC)}

    return {
        "t_emb": emb(cfg["t_input_size"]), "s_emb": emb(cfg["s_input_size"]),
        "t_enc": [enc_layer() for _ in range(cfg["num_layer"])],
        "s_enc": [enc_layer() for _ in range(cfg["num_layer"])],
        "t_udm": udm_p(), "s_udm": udm_p(),
        "clip_proj": proj(H), "part_proj": proj(H),
        "td_proj": proj(G * H), "sd_proj": proj(G * H),
        "instance_proj": proj(2 * G * H),
    }


def prepare_params(p, cfg):
    """Stack both branches' weights on a leading axis (one launch serves both
    branches), fold the softmax scale into the Q projection, pad embedding input
    features to a common width, pre-cast MXU weight matrices to bf16."""
    H = cfg["hidden"]
    Dh = H // cfg["num_head"]
    scale = 1.0 / float(Dh) ** 0.5
    Fm = ((max(cfg["t_input_size"], cfg["s_input_size"]) + 7) // 8) * 8

    def pad_rows(w):
        return jnp.pad(w, ((0, Fm - w.shape[0]), (0, 0)))

    emb_st = {
        "w1": jnp.stack([pad_rows(p["t_emb"]["lin1"]["w"]),
                         pad_rows(p["s_emb"]["lin1"]["w"])]).astype(BF16),
        "b1": jnp.stack([p["t_emb"]["lin1"]["b"][None, :],
                         p["s_emb"]["lin1"]["b"][None, :]]),
        "g": jnp.stack([p["t_emb"]["ln"]["g"][None, :],
                        p["s_emb"]["ln"]["g"][None, :]]),
        "beta": jnp.stack([p["t_emb"]["ln"]["b"][None, :],
                           p["s_emb"]["ln"]["b"][None, :]]),
        "w2": jnp.stack([p["t_emb"]["lin2"]["w"],
                         p["s_emb"]["lin2"]["w"]]).astype(BF16),
        "b2": jnp.stack([p["t_emb"]["lin2"]["b"][None, :],
                         p["s_emb"]["lin2"]["b"][None, :]]),
    }

    def stack_layers(fn):
        return jnp.stack([jnp.stack([fn(lp) for lp in p["t_enc"]]),
                          jnp.stack([fn(lp) for lp in p["s_enc"]])])

    # fold 1/sqrt(Dh) into the Q columns of in_proj (zero runtime cost)
    wqkv = stack_layers(lambda l: l["in_proj"]["w"])               # [2, L, H, 3H]
    wqkv = wqkv.at[..., :H].multiply(scale)
    bqkv = stack_layers(lambda l: l["in_proj"]["b"][None, :])      # [2, L, 1, 3H]
    bqkv = bqkv.at[..., :H].multiply(scale)

    enc_st = {
        "wqkv": wqkv.astype(BF16),
        "bqkv": bqkv,
        "wo": stack_layers(lambda l: l["out_proj"]["w"]).astype(BF16),
        "bo": stack_layers(lambda l: l["out_proj"]["b"][None, :]),
        "g1": stack_layers(lambda l: l["ln1"]["g"][None, :]),
        "b1": stack_layers(lambda l: l["ln1"]["b"][None, :]),
        "wf1": stack_layers(lambda l: l["ff1"]["w"]).astype(BF16),
        "bf1": stack_layers(lambda l: l["ff1"]["b"][None, :]),
        "wf2": stack_layers(lambda l: l["ff2"]["w"]).astype(BF16),
        "bf2": stack_layers(lambda l: l["ff2"]["b"][None, :]),
        "g2": stack_layers(lambda l: l["ln2"]["g"][None, :]),
        "b2": stack_layers(lambda l: l["ln2"]["b"][None, :]),
    }
    udm_st = {
        "w": jnp.stack([p["t_udm"]["w"], p["s_udm"]["w"]]),
        "b": jnp.stack([p["t_udm"]["b"][None, :], p["s_udm"]["b"][None, :]]),
        "g": jnp.stack([p["t_udm"]["ln"]["g"][None, :],
                        p["s_udm"]["ln"]["g"][None, :]]),
        "beta": jnp.stack([p["t_udm"]["ln"]["b"][None, :],
                           p["s_udm"]["ln"]["b"][None, :]]),
    }

    def stack_proj(names):
        return {"w1": jnp.stack([p[n]["lin1"]["w"] for n in names]).astype(BF16),
                "b1": jnp.stack([p[n]["lin1"]["b"][None, :] for n in names]),
                "w2": jnp.stack([p[n]["lin2"]["w"] for n in names]).astype(BF16),
                "b2": jnp.stack([p[n]["lin2"]["b"][None, :] for n in names])}

    return {"emb_fin": Fm, "emb_st": emb_st,
            "enc_st": enc_st, "udm_st": udm_st,
            "cp_st": stack_proj(["clip_proj", "part_proj"]),
            "tdsd_st": stack_proj(["td_proj", "sd_proj"]),
            "inst_st": stack_proj(["instance_proj"])}


# ----------------------------------------------------------------------------

if __name__ == "__main__":
    cfg = dict(t_input_size=6, s_input_size=9, kernel_size=3, stride=1,
               padding=1, factor=2, hidden=32, num_head=4, num_layer=2,
               granularity=2, num_class=10)
    # TODO(synk): GRU/LSTM encoder branches of HiEncoder (sequential recurrence)
    # are not implemented; only the 'Transformer' branch is.  Dropout = identity.

    params = build_params(cfg)
    pp = prepare_params(params, cfg)

    key = jax.random.PRNGKey(0)
    kc, kp = jax.random.split(key)
    B, T = 2, 16
    xc = jax.random.normal(kc, (B, T, cfg["t_input_size"]), F32)
    xp = jax.random.normal(kp, (B, T, cfg["s_input_size"]), F32)

    fwd = jax.jit(lambda a, b: pretraining_encoder(a, b, pp, cfg))
    outs = jax.block_until_ready(fwd(xc, xp))

    zc, zp_, zt, zs, zi = outs
    G, NC = cfg["granularity"], cfg["num_class"]
    assert zc.shape == (B, G, NC) and zp_.shape == (B, G, NC)
    assert zt.shape == (B, NC) and zs.shape == (B, NC) and zi.shape == (B, NC)
    assert all(bool(jnp.all(jnp.isfinite(o))) for o in outs)
    print("KERNEL_OK")
</pallas_src>

<mosaic_0001>
module attributes {stable_mosaic.version = 11 : i64} {
  func.func @_tstack_kernel(%arg0: i32, %arg1: i32, %arg2: memref<1x32x32xf32, #tpu.memory_space<vmem>>, %arg3: memref<1x1x32x96xbf16, #tpu.memory_space<vmem>>, %arg4: memref<1x1x1x96xf32, #tpu.memory_space<vmem>>, %arg5: memref<1x1x32x32xbf16, #tpu.memory_space<vmem>>, %arg6: memref<1x1x1x32xf32, #tpu.memory_space<vmem>>, %arg7: memref<1x1x1x32xf32, #tpu.memory_space<vmem>>, %arg8: memref<1x1x1x32xf32, #tpu.memory_space<vmem>>, %arg9: memref<1x1x32x32xbf16, #tpu.memory_space<vmem>>, %arg10: memref<1x1x1x32xf32, #tpu.memory_space<vmem>>, %arg11: memref<1x1x32x32xbf16, #tpu.memory_space<vmem>>, %arg12: memref<1x1x1x32xf32, #tpu.memory_space<vmem>>, %arg13: memref<1x1x1x32xf32, #tpu.memory_space<vmem>>, %arg14: memref<1x1x1x32xf32, #tpu.memory_space<vmem>>, %arg15: memref<1x2x32xf32, #tpu.memory_space<vmem>>, %arg16: memref<32x32xf32, #tpu.memory_space<vmem>>) attributes {dimension_semantics = [#tpu.dimension_semantics<parallel>, #tpu.dimension_semantics<arbitrary>], iteration_bounds = array<i64: 2, 2>, scalar_prefetch = 0 : i64, scratch_operands = 1 : i64, tpu.core_type = #tpu.core_type<tc>, window_params = [{transform_indices = @transform_0, window_bounds = array<i64: 1, 32, 32>}, {transform_indices = @transform_1, window_bounds = array<i64: 1, 1, 32, 96>}, {transform_indices = @transform_2, window_bounds = array<i64: 1, 1, 1, 96>}, {transform_indices = @transform_3, window_bounds = array<i64: 1, 1, 32, 32>}, {transform_indices = @transform_4, window_bounds = array<i64: 1, 1, 1, 32>}, {transform_indices = @transform_5, window_bounds = array<i64: 1, 1, 1, 32>}, {transform_indices = @transform_6, window_bounds = array<i64: 1, 1, 1, 32>}, {transform_indices = @transform_7, window_bounds = array<i64: 1, 1, 32, 32>}, {transform_indices = @transform_8, window_bounds = array<i64: 1, 1, 1, 32>}, {transform_indices = @transform_9, window_bounds = array<i64: 1, 1, 32, 32>}, {transform_indices = @transform_10, window_bounds = array<i64: 1, 1, 1, 32>}, {transform_indices = @transform_11, window_bounds = array<i64: 1, 1, 1, 32>}, {transform_indices = @transform_12, window_bounds = array<i64: 1, 1, 1, 32>}, {transform_indices = @transform_13, window_bounds = array<i64: 1, 2, 32>}]} {
    %c0_i32 = arith.constant 0 : i32
    %0 = arith.cmpi eq, %arg1, %c0_i32 : i32
    %1 = arith.extui %0 : i1 to i32
    %c0_i32_0 = arith.constant 0 : i32
    %2 = arith.cmpi ne, %1, %c0_i32_0 : i32
    scf.if %2 {
      %c0_83 = arith.constant 0 : index
      %c0_84 = arith.constant 0 : index
      %c0_85 = arith.constant 0 : index
      %176 = vector.load %arg2[%c0_83, %c0_84, %c0_85] : memref<1x32x32xf32, #tpu.memory_space<vmem>>, vector<1x32x32xf32>
      %177 = vector.shape_cast %176 : vector<1x32x32xf32> to vector<32x32xf32>
      %c0_86 = arith.constant 0 : index
      %c0_87 = arith.constant 0 : index
      %178 = vector.load %arg16[%c0_86, %c0_87] : memref<32x32xf32, #tpu.memory_space<vmem>>, vector<32x32xf32>
      tpu.vector_store %arg16[%c0_86, %c0_87], %177 {strides = array<i32>} : memref<32x32xf32, #tpu.memory_space<vmem>>, vector<32x32xf32>,
    } else {
    }
    %c0 = arith.constant 0 : index
    %c0_1 = arith.constant 0 : index
    %3 = vector.load %arg16[%c0, %c0_1] : memref<32x32xf32, #tpu.memory_space<vmem>>, vector<32x32xf32>
    %c0_2 = arith.constant 0 : index
    %c0_3 = arith.constant 0 : index
    %c0_4 = arith.constant 0 : index
    %c0_5 = arith.constant 0 : index
    %4 = vector.load %arg3[%c0_2, %c0_3, %c0_4, %c0_5] : memref<1x1x32x96xbf16, #tpu.memory_space<vmem>>, vector<1x1x32x96xbf16>
    %5 = vector.shape_cast %4 : vector<1x1x32x96xbf16> to vector<32x96xbf16>
    %6 = arith.truncf %3 : vector<32x32xf32> to vector<32x32xbf16>
    %cst = arith.constant dense<0.000000e+00> : vector<32x96xf32>
    %7 = tpu.matmul %6, %5, %cst {dimension_numbers = #tpu.dot_dimension_numbers<[1], [0], [0], [1], [0, 0, 1, 1], [], []>} : vector<32x32xbf16>, vector<32x96xbf16>, vector<32x96xf32> -> vector<32x96xf32>
    %c0_6 = arith.constant 0 : index
    %c0_7 = arith.constant 0 : index
    %c0_8 = arith.constant 0 : index
    %c0_9 = arith.constant 0 : index
    %8 = vector.load %arg4[%c0_6, %c0_7, %c0_8, %c0_9] : memref<1x1x1x96xf32, #tpu.memory_space<vmem>>, vector<1x1x1x96xf32>
    %9 = vector.shape_cast %8 : vector<1x1x1x96xf32> to vector<1x96xf32>
    %10 = vector.broadcast %9 : vector<1x96xf32> to vector<32x96xf32>
    %11 = arith.addf %7, %10 : vector<32x96xf32>
    %12 = vector.extract_strided_slice %11 {offsets = [0, 0], sizes = [32, 32], strides = [1, 1]} : vector<32x96xf32> to vector<32x32xf32>
    %13 = vector.shape_cast %12 : vector<32x32xf32> to vector<2x16x32xf32>
    %14 = vector.extract_strided_slice %11 {offsets = [0, 32], sizes = [32, 32], strides = [1, 1]} : vector<32x96xf32> to vector<32x32xf32>
    %15 = vector.shape_cast %14 : vector<32x32xf32> to vector<2x16x32xf32>
    %16 = vector.extract_strided_slice %11 {offsets = [0, 64], sizes = [32, 32], strides = [1, 1]} : vector<32x96xf32> to vector<32x32xf32>
    %17 = vector.shape_cast %16 : vector<32x32xf32> to vector<2x16x32xf32>
    %18 = vector.extract_strided_slice %13 {offsets = [0, 0, 0], sizes = [2, 16, 8], strides = [1, 1, 1]} : vector<2x16x32xf32> to vector<2x16x8xf32>
    %19 = arith.truncf %18 : vector<2x16x8xf32> to vector<2x16x8xbf16>
    %20 = vector.extract_strided_slice %15 {offsets = [0, 0, 0], sizes = [2, 16, 8], strides = [1, 1, 1]} : vector<2x16x32xf32> to vector<2x16x8xf32>
    %21 = arith.truncf %20 : vector<2x16x8xf32> to vector<2x16x8xbf16>
    "tpu.trace_start"() <{level = 10 : i32, message = "bqd,bkd->bqk"}> : () -> ()
    %cst_10 = arith.constant dense<0.000000e+00> : vector<2x16x16xf32>
    %22 = tpu.matmul %19, %21, %cst_10 {dimension_numbers = #tpu.dot_dimension_numbers<[2], [2], [1], [1], [0, 0, 0, 1, 1, 1], [0], [0]>} : vector<2x16x8xbf16>, vector<2x16x8xbf16>, vector<2x16x16xf32> -> vector<2x16x16xf32>
    "tpu.trace_stop"() : () -> ()
    %cst_11 = arith.constant dense<0xFF800000> : vector<2x16xf32>
    %23 = vector.multi_reduction <maximumf>, %22, %cst_11 [2] : vector<2x16x16xf32> to vector<2x16xf32>
    %24 = vector.shape_cast %23 : vector<2x16xf32> to vector<2x16x1xf32>
    %25 = vector.broadcast %24 : vector<2x16x1xf32> to vector<2x16x16xf32>
    %26 = arith.subf %22, %25 : vector<2x16x16xf32>
    %27 = math.exp %26 : vector<2x16x16xf32>
    %cst_12 = arith.constant dense<0.000000e+00> : vector<2x16xf32>
    %28 = vector.multi_reduction <add>, %27, %cst_12 [2] : vector<2x16x16xf32> to vector<2x16xf32>
    %29 = vector.shape_cast %28 : vector<2x16xf32> to vector<2x16x1xf32>
    %30 = tpu.reciprocal %29 {approx = true} : vector<2x16x1xf32> -> vector<2x16x1xf32>
    %31 = vector.broadcast %30 : vector<2x16x1xf32> to vector<2x16x16xf32>
    %32 = arith.mulf %27, %31 : vector<2x16x16xf32>
    %33 = arith.truncf %32 : vector<2x16x16xf32> to vector<2x16x16xbf16>
    %34 = vector.extract_strided_slice %17 {offsets = [0, 0, 0], sizes = [2, 16, 8], strides = [1, 1, 1]} : vector<2x16x32xf32> to vector<2x16x8xf32>
    %35 = arith.truncf %34 : vector<2x16x8xf32> to vector<2x16x8xbf16>
    "tpu.trace_start"() <{level = 10 : i32, message = "bqk,bkd->bqd"}> : () -> ()
    %cst_13 = arith.constant dense<0.000000e+00> : vector<2x16x8xf32>
    %36 = tpu.matmul %33, %35, %cst_13 {dimension_numbers = #tpu.dot_dimension_numbers<[2], [1], [1], [2], [0, 0, 0, 1, 1, 2], [0], [0]>} : vector<2x16x16xbf16>, vector<2x16x8xbf16>, vector<2x16x8xf32> -> vector<2x16x8xf32>
    "tpu.trace_stop"() : () -> ()
    %37 = vector.extract_strided_slice %13 {offsets = [0, 0, 8], sizes = [2, 16, 8], strides = [1, 1, 1]} : vector<2x16x32xf32> to vector<2x16x8xf32>
    %38 = arith.truncf %37 : vector<2x16x8xf32> to vector<2x16x8xbf16>
    %39 = vector.extract_strided_slice %15 {offsets = [0, 0, 8], sizes = [2, 16, 8], strides = [1, 1, 1]} : vector<2x16x32xf32> to vector<2x16x8xf32>
    %40 = arith.truncf %39 : vector<2x16x8xf32> to vector<2x16x8xbf16>
    "tpu.trace_start"() <{level = 10 : i32, message = "bqd,bkd->bqk"}> : () -> ()
    %cst_14 = arith.constant dense<0.000000e+00> : vector<2x16x16xf32>
    %41 = tpu.matmul %38, %40, %cst_14 {dimension_numbers = #tpu.dot_dimension_numbers<[2], [2], [1], [1], [0, 0, 0, 1, 1, 1], [0], [0]>} : vector<2x16x8xbf16>, vector<2x16x8xbf16>, vector<2x16x16xf32> -> vector<2x16x16xf32>
    "tpu.trace_stop"() : () -> ()
    %cst_15 = arith.constant dense<0xFF800000> : vector<2x16xf32>
    %42 = vector.multi_reduction <maximumf>, %41, %cst_15 [2] : vector<2x16x16xf32> to vector<2x16xf32>
    %43 = vector.shape_cast %42 : vector<2x16xf32> to vector<2x16x1xf32>
    %44 = vector.broadcast %43 : vector<2x16x1xf32> to vector<2x16x16xf32>
    %45 = arith.subf %41, %44 : vector<2x16x16xf32>
    %46 = math.exp %45 : vector<2x16x16xf32>
    %cst_16 = arith.constant dense<0.000000e+00> : vector<2x16xf32>
    %47 = vector.multi_reduction <add>, %46, %cst_16 [2] : vector<2x16x16xf32> to vector<2x16xf32>
    %48 = vector.shape_cast %47 : vector<2x16xf32> to vector<2x16x1xf32>
    %49 = tpu.reciprocal %48 {approx = true} : vector<2x16x1xf32> -> vector<2x16x1xf32>
    %50 = vector.broadcast %49 : vector<2x16x1xf32> to vector<2x16x16xf32>
    %51 = arith.mulf %46, %50 : vector<2x16x16xf32>
    %52 = arith.truncf %51 : vector<2x16x16xf32> to vector<2x16x16xbf16>
    %53 = vector.extract_strided_slice %17 {offsets = [0, 0, 8], sizes = [2, 16, 8], strides = [1, 1, 1]} : vector<2x16x32xf32> to vector<2x16x8xf32>
    %54 = arith.truncf %53 : vector<2x16x8xf32> to vector<2x16x8xbf16>
    "tpu.trace_start"() <{level = 10 : i32, message = "bqk,bkd->bqd"}> : () -> ()
    %cst_17 = arith.constant dense<0.000000e+00> : vector<2x16x8xf32>
    %55 = tpu.matmul %52, %54, %cst_17 {dimension_numbers = #tpu.dot_dimension_numbers<[2], [1], [1], [2], [0, 0, 0, 1, 1, 2], [0], [0]>} : vector<2x16x16xbf16>, vector<2x16x8xbf16>, vector<2x16x8xf32> -> vector<2x16x8xf32>
    "tpu.trace_stop"() : () -> ()
    %56 = vector.extract_strided_slice %13 {offsets = [0, 0, 16], sizes = [2, 16, 8], strides = [1, 1, 1]} : vector<2x16x32xf32> to vector<2x16x8xf32>
    %57 = arith.truncf %56 : vector<2x16x8xf32> to vector<2x16x8xbf16>
    %58 = vector.extract_strided_slice %15 {offsets = [0, 0, 16], sizes = [2, 16, 8], strides = [1, 1, 1]} : vector<2x16x32xf32> to vector<2x16x8xf32>
    %59 = arith.truncf %58 : vector<2x16x8xf32> to vector<2x16x8xbf16>
    "tpu.trace_start"() <{level = 10 : i32, message = "bqd,bkd->bqk"}> : () -> ()
    %cst_18 = arith.constant dense<0.000000e+00> : vector<2x16x16xf32>
    %60 = tpu.matmul %57, %59, %cst_18 {dimension_numbers = #tpu.dot_dimension_numbers<[2], [2], [1], [1], [0, 0, 0, 1, 1, 1], [0], [0]>} : vector<2x16x8xbf16>, vector<2x16x8xbf16>, vector<2x16x16xf32> -> vector<2x16x16xf32>
    "tpu.trace_stop"() : () -> ()
    %cst_19 = arith.constant dense<0xFF800000> : vector<2x16xf32>
    %61 = vector.multi_reduction <maximumf>, %60, %cst_19 [2] : vector<2x16x16xf32> to vector<2x16xf32>
    %62 = vector.shape_cast %61 : vector<2x16xf32> to vector<2x16x1xf32>
    %63 = vector.broadcast %62 : vector<2x16x1xf32> to vector<2x16x16xf32>
    %64 = arith.subf %60, %63 : vector<2x16x16xf32>
    %65 = math.exp %64 : vector<2x16x16xf32>
    %cst_20 = arith.constant dense<0.000000e+00> : vector<2x16xf32>
    %66 = vector.multi_reduction <add>, %65, %cst_20 [2] : vector<2x16x16xf32> to vector<2x16xf32>
    %67 = vector.shape_cast %66 : vector<2x16xf32> to vector<2x16x1xf32>
    %68 = tpu.reciprocal %67 {approx = true} : vector<2x16x1xf32> -> vector<2x16x1xf32>
    %69 = vector.broadcast %68 : vector<2x16x1xf32> to vector<2x16x16xf32>
    %70 = arith.mulf %65, %69 : vector<2x16x16xf32>
    %71 = arith.truncf %70 : vector<2x16x16xf32> to vector<2x16x16xbf16>
    %72 = vector.extract_strided_slice %17 {offsets = [0, 0, 16], sizes = [2, 16, 8], strides = [1, 1, 1]} : vector<2x16x32xf32> to vector<2x16x8xf32>
    %73 = arith.truncf %72 : vector<2x16x8xf32> to vector<2x16x8xbf16>
    "tpu.trace_start"() <{level = 10 : i32, message = "bqk,bkd->bqd"}> : () -> ()
    %cst_21 = arith.constant dense<0.000000e+00> : vector<2x16x8xf32>
    %74 = tpu.matmul %71, %73, %cst_21 {dimension_numbers = #tpu.dot_dimension_numbers<[2], [1], [1], [2], [0, 0, 0, 1, 1, 2], [0], [0]>} : vector<2x16x16xbf16>, vector<2x16x8xbf16>, vector<2x16x8xf32> -> vector<2x16x8xf32>
    "tpu.trace_stop"() : () -> ()
    %75 = vector.extract_strided_slice %13 {offsets = [0, 0, 24], sizes = [2, 16, 8], strides = [1, 1, 1]} : vector<2x16x32xf32> to vector<2x16x8xf32>
    %76 = arith.truncf %75 : vector<2x16x8xf32> to vector<2x16x8xbf16>
    %77 = vector.extract_strided_slice %15 {offsets = [0, 0, 24], sizes = [2, 16, 8], strides = [1, 1, 1]} : vector<2x16x32xf32> to vector<2x16x8xf32>
    %78 = arith.truncf %77 : vector<2x16x8xf32> to vector<2x16x8xbf16>
    "tpu.trace_start"() <{level = 10 : i32, message = "bqd,bkd->bqk"}> : () -> ()
    %cst_22 = arith.constant dense<0.000000e+00> : vector<2x16x16xf32>
    %79 = tpu.matmul %76, %78, %cst_22 {dimension_numbers = #tpu.dot_dimension_numbers<[2], [2], [1], [1], [0, 0, 0, 1, 1, 1], [0], [0]>} : vector<2x16x8xbf16>, vector<2x16x8xbf16>, vector<2x16x16xf32> -> vector<2x16x16xf32>
    "tpu.trace_stop"() : () -> ()
    %cst_23 = arith.constant dense<0xFF800000> : vector<2x16xf32>
    %80 = vector.multi_reduction <maximumf>, %79, %cst_23 [2] : vector<2x16x16xf32> to vector<2x16xf32>
    %81 = vector.shape_cast %80 : vector<2x16xf32> to vector<2x16x1xf32>
    %82 = vector.broadcast %81 : vector<2x16x1xf32> to vector<2x16x16xf32>
    %83 = arith.subf %79, %82 : vector<2x16x16xf32>
    %84 = math.exp %83 : vector<2x16x16xf32>
    %cst_24 = arith.constant dense<0.000000e+00> : vector<2x16xf32>
    %85 = vector.multi_reduction <add>, %84, %cst_24 [2] : vector<2x16x16xf32> to vector<2x16xf32>
    %86 = vector.shape_cast %85 : vector<2x16xf32> to vector<2x16x1xf32>
    %87 = tpu.reciprocal %86 {approx = true} : vector<2x16x1xf32> -> vector<2x16x1xf32>
    %88 = vector.broadcast %87 : vector<2x16x1xf32> to vector<2x16x16xf32>
    %89 = arith.mulf %84, %88 : vector<2x16x16xf32>
    %90 = arith.truncf %89 : vector<2x16x16xf32> to vector<2x16x16xbf16>
    %91 = vector.extract_strided_slice %17 {offsets = [0, 0, 24], sizes = [2, 16, 8], strides = [1, 1, 1]} : vector<2x16x32xf32> to vector<2x16x8xf32>
    %92 = arith.truncf %91 : vector<2x16x8xf32> to vector<2x16x8xbf16>
    "tpu.trace_start"() <{level = 10 : i32, message = "bqk,bkd->bqd"}> : () -> ()
    %cst_25 = arith.constant dense<0.000000e+00> : vector<2x16x8xf32>
    %93 = tpu.matmul %90, %92, %cst_25 {dimension_numbers = #tpu.dot_dimension_numbers<[2], [1], [1], [2], [0, 0, 0, 1, 1, 2], [0], [0]>} : vector<2x16x16xbf16>, vector<2x16x8xbf16>, vector<2x16x8xf32> -> vector<2x16x8xf32>
    "tpu.trace_stop"() : () -> ()
    %94 = tpu.concatenate %36, %55, %74, %93 in 2 : vector<2x16x8xf32>, vector<2x16x8xf32>, vector<2x16x8xf32>, vector<2x16x8xf32> -> vector<2x16x32xf32>
    %95 = vector.shape_cast %94 : vector<2x16x32xf32> to vector<32x32xf32>
    %c0_26 = arith.constant 0 : index
    %c0_27 = arith.constant 0 : index
    %c0_28 = arith.constant 0 : index
    %c0_29 = arith.constant 0 : index
    %96 = vector.load %arg5[%c0_26, %c0_27, %c0_28, %c0_29] : memref<1x1x32x32xbf16, #tpu.memory_space<vmem>>, vector<1x1x32x32xbf16>
    %97 = vector.shape_cast %96 : vector<1x1x32x32xbf16> to vector<32x32xbf16>
    %98 = arith.truncf %95 : vector<32x32xf32> to vector<32x32xbf16>
    %cst_30 = arith.constant dense<0.000000e+00> : vector<32x32xf32>
    %99 = tpu.matmul %98, %97, %cst_30 {dimension_numbers = #tpu.dot_dimension_numbers<[1], [0], [0], [1], [0, 0, 1, 1], [], []>} : vector<32x32xbf16>, vector<32x32xbf16>, vector<32x32xf32> -> vector<32x32xf32>
    %c0_31 = arith.constant 0 : index
    %c0_32 = arith.constant 0 : index
    %c0_33 = arith.constant 0 : index
    %c0_34 = arith.constant 0 : index
    %100 = vector.load %arg6[%c0_31, %c0_32, %c0_33, %c0_34] : memref<1x1x1x32xf32, #tpu.memory_space<vmem>>, vector<1x1x1x32xf32>
    %101 = vector.shape_cast %100 : vector<1x1x1x32xf32> to vector<1x32xf32>
    %102 = vector.broadcast %101 : vector<1x32xf32> to vector<32x32xf32>
    %103 = arith.addf %99, %102 : vector<32x32xf32>
    %104 = arith.addf %3, %103 : vector<32x32xf32>
    %c0_35 = arith.constant 0 : index
    %c0_36 = arith.constant 0 : index
    %c0_37 = arith.constant 0 : index
    %c0_38 = arith.constant 0 : index
    %105 = vector.load %arg7[%c0_35, %c0_36, %c0_37, %c0_38] : memref<1x1x1x32xf32, #tpu.memory_space<vmem>>, vector<1x1x1x32xf32>
    %106 = vector.shape_cast %105 : vector<1x1x1x32xf32> to vector<1x32xf32>
    %c0_39 = arith.constant 0 : index
    %c0_40 = arith.constant 0 : index
    %c0_41 = arith.constant 0 : index
    %c0_42 = arith.constant 0 : index
    %107 = vector.load %arg8[%c0_39, %c0_40, %c0_41, %c0_42] : memref<1x1x1x32xf32, #tpu.memory_space<vmem>>, vector<1x1x1x32xf32>
    %108 = vector.shape_cast %107 : vector<1x1x1x32xf32> to vector<1x32xf32>
    %cst_43 = arith.constant dense<0.000000e+00> : vector<32xf32>
    %109 = vector.multi_reduction <add>, %104, %cst_43 [1] : vector<32x32xf32> to vector<32xf32>
    %110 = vector.shape_cast %109 : vector<32xf32> to vector<32x1xf32>
    %cst_44 = arith.constant 3.200000e+01 : f32
    %111 = vector.broadcast %cst_44 : f32 to vector<32x1xf32>
    %112 = arith.divf %110, %111 : vector<32x1xf32>
    %113 = vector.broadcast %112 : vector<32x1xf32> to vector<32x32xf32>
    %114 = arith.subf %104, %113 : vector<32x32xf32>
    %115 = arith.mulf %114, %114 : vector<32x32xf32>
    %cst_45 = arith.constant dense<0.000000e+00> : vector<32xf32>
    %116 = vector.multi_reduction <add>, %115, %cst_45 [1] : vector<32x32xf32> to vector<32xf32>
    %117 = vector.shape_cast %116 : vector<32xf32> to vector<32x1xf32>
    %cst_46 = arith.constant 3.200000e+01 : f32
    %118 = vector.broadcast %cst_46 : f32 to vector<32x1xf32>
    %119 = arith.divf %117, %118 : vector<32x1xf32>
    %cst_47 = arith.constant 9.99999974E-6 : f32
    %120 = vector.broadcast %cst_47 : f32 to vector<32x1xf32>
    %121 = arith.addf %119, %120 : vector<32x1xf32>
    %122 = math.rsqrt %121 : vector<32x1xf32>
    %123 = vector.broadcast %122 : vector<32x1xf32> to vector<32x32xf32>
    %124 = arith.mulf %114, %123 : vector<32x32xf32>
    %125 = vector.broadcast %106 : vector<1x32xf32> to vector<32x32xf32>
    %126 = arith.mulf %124, %125 : vector<32x32xf32>
    %127 = vector.broadcast %108 : vector<1x32xf32> to vector<32x32xf32>
    %128 = arith.addf %126, %127 : vector<32x32xf32>
    %c0_48 = arith.constant 0 : index
    %c0_49 = arith.constant 0 : index
    %c0_50 = arith.constant 0 : index
    %c0_51 = arith.constant 0 : index
    %129 = vector.load %arg9[%c0_48, %c0_49, %c0_50, %c0_51] : memref<1x1x32x32xbf16, #tpu.memory_space<vmem>>, vector<1x1x32x32xbf16>
    %130 = vector.shape_cast %129 : vector<1x1x32x32xbf16> to vector<32x32xbf16>
    %131 = arith.truncf %128 : vector<32x32xf32> to vector<32x32xbf16>
    %cst_52 = arith.constant dense<0.000000e+00> : vector<32x32xf32>
    %132 = tpu.matmul %131, %130, %cst_52 {dimension_numbers = #tpu.dot_dimension_numbers<[1], [0], [0], [1], [0, 0, 1, 1], [], []>} : vector<32x32xbf16>, vector<32x32xbf16>, vector<32x32xf32> -> vector<32x32xf32>
    %c0_53 = arith.constant 0 : index
    %c0_54 = arith.constant 0 : index
    %c0_55 = arith.constant 0 : index
    %c0_56 = arith.constant 0 : index
    %133 = vector.load %arg10[%c0_53, %c0_54, %c0_55, %c0_56] : memref<1x1x1x32xf32, #tpu.memory_space<vmem>>, vector<1x1x1x32xf32>
    %134 = vector.shape_cast %133 : vector<1x1x1x32xf32> to vector<1x32xf32>
    %135 = vector.broadcast %134 : vector<1x32xf32> to vector<32x32xf32>
    %136 = arith.addf %132, %135 : vector<32x32xf32>
    %cst_57 = arith.constant 0.000000e+00 : f32
    %137 = vector.broadcast %cst_57 : f32 to vector<32x32xf32>
    %138 = arith.maximumf %136, %137 : vector<32x32xf32>
    %c0_58 = arith.constant 0 : index
    %c0_59 = arith.constant 0 : index
    %c0_60 = arith.constant 0 : index
    %c0_61 = arith.constant 0 : index
    %139 = vector.load %arg11[%c0_58, %c0_59, %c0_60, %c0_61] : memref<1x1x32x32xbf16, #tpu.memory_space<vmem>>, vector<1x1x32x32xbf16>
    %140 = vector.shape_cast %139 : vector<1x1x32x32xbf16> to vector<32x32xbf16>
    %141 = arith.truncf %138 : vector<32x32xf32> to vector<32x32xbf16>
    %cst_62 = arith.constant dense<0.000000e+00> : vector<32x32xf32>
    %142 = tpu.matmul %141, %140, %cst_62 {dimension_numbers = #tpu.dot_dimension_numbers<[1], [0], [0], [1], [0, 0, 1, 1], [], []>} : vector<32x32xbf16>, vector<32x32xbf16>, vector<32x32xf32> -> vector<32x32xf32>
    %c0_63 = arith.constant 0 : index
    %c0_64 = arith.constant 0 : index
    %c0_65 = arith.constant 0 : index
    %c0_66 = arith.constant 0 : index
    %143 = vector.load %arg12[%c0_63, %c0_64, %c0_65, %c0_66] : memref<1x1x1x32xf32, #tpu.memory_space<vmem>>, vector<1x1x1x32xf32>
    %144 = vector.shape_cast %143 : vector<1x1x1x32xf32> to vector<1x32xf32>
    %145 = vector.broadcast %144 : vector<1x32xf32> to vector<32x32xf32>
    %146 = arith.addf %142, %145 : vector<32x32xf32>
    %147 = arith.addf %128, %146 : vector<32x32xf32>
    %c0_67 = arith.constant 0 : index
    %c0_68 = arith.constant 0 : index
    %c0_69 = arith.constant 0 : index
    %c0_70 = arith.constant 0 : index
    %148 = vector.load %arg13[%c0_67, %c0_68, %c0_69, %c0_70] : memref<1x1x1x32xf32, #tpu.memory_space<vmem>>, vector<1x1x1x32xf32>
    %149 = vector.shape_cast %148 : vector<1x1x1x32xf32> to vector<1x32xf32>
    %c0_71 = arith.constant 0 : index
    %c0_72 = arith.constant 0 : index
    %c0_73 = arith.constant 0 : index
    %c0_74 = arith.constant 0 : index
    %150 = vector.load %arg14[%c0_71, %c0_72, %c0_73, %c0_74] : memref<1x1x1x32xf32, #tpu.memory_space<vmem>>, vector<1x1x1x32xf32>
    %151 = vector.shape_cast %150 : vector<1x1x1x32xf32> to vector<1x32xf32>
    %cst_75 = arith.constant dense<0.000000e+00> : vector<32xf32>
    %152 = vector.multi_reduction <add>, %147, %cst_75 [1] : vector<32x32xf32> to vector<32xf32>
    %153 = vector.shape_cast %152 : vector<32xf32> to vector<32x1xf32>
    %cst_76 = arith.constant 3.200000e+01 : f32
    %154 = vector.broadcast %cst_76 : f32 to vector<32x1xf32>
    %155 = arith.divf %153, %154 : vector<32x1xf32>
    %156 = vector.broadcast %155 : vector<32x1xf32> to vector<32x32xf32>
    %157 = arith.subf %147, %156 : vector<32x32xf32>
    %158 = arith.mulf %157, %157 : vector<32x32xf32>
    %cst_77 = arith.constant dense<0.000000e+00> : vector<32xf32>
    %159 = vector.multi_reduction <add>, %158, %cst_77 [1] : vector<32x32xf32> to vector<32xf32>
    %160 = vector.shape_cast %159 : vector<32xf32> to vector<32x1xf32>
    %cst_78 = arith.constant 3.200000e+01 : f32
    %161 = vector.broadcast %cst_78 : f32 to vector<32x1xf32>
    %162 = arith.divf %160, %161 : vector<32x1xf32>
    %cst_79 = arith.constant 9.99999974E-6 : f32
    %163 = vector.broadcast %cst_79 : f32 to vector<32x1xf32>
    %164 = arith.addf %162, %163 : vector<32x1xf32>
    %165 = math.rsqrt %164 : vector<32x1xf32>
    %166 = vector.broadcast %165 : vector<32x1xf32> to vector<32x32xf32>
    %167 = arith.mulf %157, %166 : vector<32x32xf32>
    %168 = vector.broadcast %149 : vector<1x32xf32> to vector<32x32xf32>
    %169 = arith.mulf %167, %168 : vector<32x32xf32>
    %170 = vector.broadcast %151 : vector<1x32xf32> to vector<32x32xf32>
    %171 = arith.addf %169, %170 : vector<32x32xf32>
    %c0_80 = arith.constant 0 : index
    %c0_81 = arith.constant 0 : index
    %172 = vector.load %arg16[%c0_80, %c0_81] : memref<32x32xf32, #tpu.memory_space<vmem>>, vector<32x32xf32>
    tpu.vector_store %arg16[%c0_80, %c0_81], %171 {strides = array<i32>} : memref<32x32xf32, #tpu.memory_space<vmem>>, vector<32x32xf32>,
    %c1_i32 = arith.constant 1 : i32
    %173 = arith.cmpi eq, %arg1, %c1_i32 : i32
    %174 = arith.extui %173 : i1 to i32
    %c0_i32_82 = arith.constant 0 : i32
    %175 = arith.cmpi ne, %174, %c0_i32_82 : i32
    scf.if %175 {
      %176 = vector.shape_cast %171 : vector<32x32xf32> to vector<2x16x32xf32>
      %cst_83 = arith.constant dense<0xFF800000> : vector<2x32xf32>
      %177 = vector.multi_reduction <maximumf>, %176, %cst_83 [1] : vector<2x16x32xf32> to vector<2x32xf32>
      %c0_84 = arith.constant 0 : index
      %c0_85 = arith.constant 0 : index
      %c0_86 = arith.constant 0 : index
      %178 = vector.load %arg15[%c0_84, %c0_85, %c0_86] : memref<1x2x32xf32, #tpu.memory_space<vmem>>, vector<1x2x32xf32>
      %179 = vector.shape_cast %178 : vector<1x2x32xf32> to vector<2x32xf32>
      %180 = vector.shape_cast %177 : vector<2x32xf32> to vector<1x2x32xf32>
      tpu.vector_store %arg15[%c0_84, %c0_85, %c0_86], %180 {strides = array<i32>} : memref<1x2x32xf32, #tpu.memory_space<vmem>>, vector<1x2x32xf32>,
    } else {
    }
    return
  }
  func.func @transform_0(%arg0: i32, %arg1: i32) -> (i32, i32, i32) {
    %c0_i32 = arith.constant 0 : i32
    %c0_i32_0 = arith.constant 0 : i32
    %c0_i32_1 = arith.constant 0 : i32
    return %arg0, %c0_i32, %c0_i32_0 : i32, i32, i32
  }
  func.func @transform_1(%arg0: i32, %arg1: i32) -> (i32, i32, i32, i32) {
    %c0_i32 = arith.constant 0 : i32
    %c0_i32_0 = arith.constant 0 : i32
    %c0_i32_1 = arith.constant 0 : i32
    return %arg0, %arg1, %c0_i32, %c0_i32_0 : i32, i32, i32, i32
  }
  func.func @transform_2(%arg0: i32, %arg1: i32) -> (i32, i32, i32, i32) {
    %c0_i32 = arith.constant 0 : i32
    %c0_i32_0 = arith.constant 0 : i32
    %c0_i32_1 = arith.constant 0 : i32
    return %arg0, %arg1, %c0_i32, %c0_i32_0 : i32, i32, i32, i32
  }
  func.func @transform_3(%arg0: i32, %arg1: i32) -> (i32, i32, i32, i32) {
    %c0_i32 = arith.constant 0 : i32
    %c0_i32_0 = arith.constant 0 : i32
    %c0_i32_1 = arith.constant 0 : i32
    return %arg0, %arg1, %c0_i32, %c0_i32_0 : i32, i32, i32, i32
  }
  func.func @transform_4(%arg0: i32, %arg1: i32) -> (i32, i32, i32, i32) {
    %c0_i32 = arith.constant 0 : i32
    %c0_i32_0 = arith.constant 0 : i32
    %c0_i32_1 = arith.constant 0 : i32
    return %arg0, %arg1, %c0_i32, %c0_i32_0 : i32, i32, i32, i32
  }
  func.func @transform_5(%arg0: i32, %arg1: i32) -> (i32, i32, i32, i32) {
    %c0_i32 = arith.constant 0 : i32
    %c0_i32_0 = arith.constant 0 : i32
    %c0_i32_1 = arith.constant 0 : i32
    return %arg0, %arg1, %c0_i32, %c0_i32_0 : i32, i32, i32, i32
  }
  func.func @transform_6(%arg0: i32, %arg1: i32) -> (i32, i32, i32, i32) {
    %c0_i32 = arith.constant 0 : i32
    %c0_i32_0 = arith.constant 0 : i32
    %c0_i32_1 = arith.constant 0 : i32
    return %arg0, %arg1, %c0_i32, %c0_i32_0 : i32, i32, i32, i32
  }
  func.func @transform_7(%arg0: i32, %arg1: i32) -> (i32, i32, i32, i32) {
    %c0_i32 = arith.constant 0 : i32
    %c0_i32_0 = arith.constant 0 : i32
    %c0_i32_1 = arith.constant 0 : i32
    return %arg0, %arg1, %c0_i32, %c0_i32_0 : i32, i32, i32, i32
  }
  func.func @transform_8(%arg0: i32, %arg1: i32) -> (i32, i32, i32, i32) {
    %c0_i32 = arith.constant 0 : i32
    %c0_i32_0 = arith.constant 0 : i32
    %c0_i32_1 = arith.constant 0 : i32
    return %arg0, %arg1, %c0_i32, %c0_i32_0 : i32, i32, i32, i32
  }
  func.func @transform_9(%arg0: i32, %arg1: i32) -> (i32, i32, i32, i32) {
    %c0_i32 = arith.constant 0 : i32
    %c0_i32_0 = arith.constant 0 : i32
    %c0_i32_1 = arith.constant 0 : i32
    return %arg0, %arg1, %c0_i32, %c0_i32_0 : i32, i32, i32, i32
  }
  func.func @transform_10(%arg0: i32, %arg1: i32) -> (i32, i32, i32, i32) {
    %c0_i32 = arith.constant 0 : i32
    %c0_i32_0 = arith.constant 0 : i32
    %c0_i32_1 = arith.constant 0 : i32
    return %arg0, %arg1, %c0_i32, %c0_i32_0 : i32, i32, i32, i32
  }
  func.func @transform_11(%arg0: i32, %arg1: i32) -> (i32, i32, i32, i32) {
    %c0_i32 = arith.constant 0 : i32
    %c0_i32_0 = arith.constant 0 : i32
    %c0_i32_1 = arith.constant 0 : i32
    return %arg0, %arg1, %c0_i32, %c0_i32_0 : i32, i32, i32, i32
  }
  func.func @transform_12(%arg0: i32, %arg1: i32) -> (i32, i32, i32, i32) {
    %c0_i32 = arith.constant 0 : i32
    %c0_i32_0 = arith.constant 0 : i32
    %c0_i32_1 = arith.constant 0 : i32
    return %arg0, %arg1, %c0_i32, %c0_i32_0 : i32, i32, i32, i32
  }
  func.func @transform_13(%arg0: i32, %arg1: i32) -> (i32, i32, i32) {
    %c0_i32 = arith.constant 0 : i32
    %c0_i32_0 = arith.constant 0 : i32
    %c0_i32_1 = arith.constant 0 : i32
    return %arg0, %c0_i32, %c0_i32_0 : i32, i32, i32
  }
}

module attributes {stable_mosaic.version = 11 : i64} {
  func.func @_embed_kernel(%arg0: i32, %arg1: memref<1x32x16xf32, #tpu.memory_space<vmem>>, %arg2: memref<1x16x32xbf16, #tpu.memory_space<vmem>>, %arg3: memref<1x1x32xf32, #tpu.memory_space<vmem>>, %arg4: memref<1x1x32xf32, #tpu.memory_space<vmem>>, %arg5: memref<1x1x32xf32, #tpu.memory_space<vmem>>, %arg6: memref<1x32x32xbf16, #tpu.memory_space<vmem>>, %arg7: memref<1x1x32xf32, #tpu.memory_space<vmem>>, %arg8: memref<1x32x32xf32, #tpu.memory_space<vmem>>) attributes {dimension_semantics = [#tpu.dimension_semantics<parallel>], iteration_bounds = array<i64: 2>, scalar_prefetch = 0 : i64, scratch_operands = 0 : i64, tpu.core_type = #tpu.core_type<tc>, window_params = [{transform_indices = @transform_0, window_bounds = array<i64: 1, 32, 16>}, {transform_indices = @transform_1, window_bounds = array<i64: 1, 16, 32>}, {transform_indices = @transform_2, window_bounds = array<i64: 1, 1, 32>}, {transform_indices = @transform_3, window_bounds = array<i64: 1, 1, 32>}, {transform_indices = @transform_4, window_bounds = array<i64: 1, 1, 32>}, {transform_indices = @transform_5, window_bounds = array<i64: 1, 32, 32>}, {transform_indices = @transform_6, window_bounds = array<i64: 1, 1, 32>}, {transform_indices = @transform_7, window_bounds = array<i64: 1, 32, 32>}]} {
    %c0 = arith.constant 0 : index
    %c0_0 = arith.constant 0 : index
    %c0_1 = arith.constant 0 : index
    %0 = vector.load %arg1[%c0, %c0_0, %c0_1] : memref<1x32x16xf32, #tpu.memory_space<vmem>>, vector<1x32x16xf32>
    %1 = vector.shape_cast %0 : vector<1x32x16xf32> to vector<32x16xf32>
    %c0_2 = arith.constant 0 : index
    %c0_3 = arith.constant 0 : index
    %c0_4 = arith.constant 0 : index
    %2 = vector.load %arg2[%c0_2, %c0_3, %c0_4] : memref<1x16x32xbf16, #tpu.memory_space<vmem>>, vector<1x16x32xbf16>
    %3 = vector.shape_cast %2 : vector<1x16x32xbf16> to vector<16x32xbf16>
    %4 = arith.truncf %1 : vector<32x16xf32> to vector<32x16xbf16>
    %cst = arith.constant dense<0.000000e+00> : vector<32x32xf32>
    %5 = tpu.matmul %4, %3, %cst {dimension_numbers = #tpu.dot_dimension_numbers<[1], [0], [0], [1], [0, 0, 1, 1], [], []>} : vector<32x16xbf16>, vector<16x32xbf16>, vector<32x32xf32> -> vector<32x32xf32>
    %c0_5 = arith.constant 0 : index
    %c0_6 = arith.constant 0 : index
    %c0_7 = arith.constant 0 : index
    %6 = vector.load %arg3[%c0_5, %c0_6, %c0_7] : memref<1x1x32xf32, #tpu.memory_space<vmem>>, vector<1x1x32xf32>
    %7 = vector.shape_cast %6 : vector<1x1x32xf32> to vector<1x32xf32>
    %8 = vector.broadcast %7 : vector<1x32xf32> to vector<32x32xf32>
    %9 = arith.addf %5, %8 : vector<32x32xf32>
    %c0_8 = arith.constant 0 : index
    %c0_9 = arith.constant 0 : index
    %c0_10 = arith.constant 0 : index
    %10 = vector.load %arg4[%c0_8, %c0_9, %c0_10] : memref<1x1x32xf32, #tpu.memory_space<vmem>>, vector<1x1x32xf32>
    %11 = vector.shape_cast %10 : vector<1x1x32xf32> to vector<1x32xf32>
    %c0_11 = arith.constant 0 : index
    %c0_12 = arith.constant 0 : index
    %c0_13 = arith.constant 0 : index
    %12 = vector.load %arg5[%c0_11, %c0_12, %c0_13] : memref<1x1x32xf32, #tpu.memory_space<vmem>>, vector<1x1x32xf32>
    %13 = vector.shape_cast %12 : vector<1x1x32xf32> to vector<1x32xf32>
    %cst_14 = arith.constant dense<0.000000e+00> : vector<32xf32>
    %14 = vector.multi_reduction <add>, %9, %cst_14 [1] : vector<32x32xf32> to vector<32xf32>
    %15 = vector.shape_cast %14 : vector<32xf32> to vector<32x1xf32>
    %cst_15 = arith.constant 3.200000e+01 : f32
    %16 = vector.broadcast %cst_15 : f32 to vector<32x1xf32>
    %17 = arith.divf %15, %16 : vector<32x1xf32>
    %18 = vector.broadcast %17 : vector<32x1xf32> to vector<32x32xf32>
    %19 = arith.subf %9, %18 : vector<32x32xf32>
    %20 = arith.mulf %19, %19 : vector<32x32xf32>
    %cst_16 = arith.constant dense<0.000000e+00> : vector<32xf32>
    %21 = vector.multi_reduction <add>, %20, %cst_16 [1] : vector<32x32xf32> to vector<32xf32>
    %22 = vector.shape_cast %21 : vector<32xf32> to vector<32x1xf32>
    %cst_17 = arith.constant 3.200000e+01 : f32
    %23 = vector.broadcast %cst_17 : f32 to vector<32x1xf32>
    %24 = arith.divf %22, %23 : vector<32x1xf32>
    %cst_18 = arith.constant 9.99999974E-6 : f32
    %25 = vector.broadcast %cst_18 : f32 to vector<32x1xf32>
    %26 = arith.addf %24, %25 : vector<32x1xf32>
    %27 = math.rsqrt %26 : vector<32x1xf32>
    %28 = vector.broadcast %27 : vector<32x1xf32> to vector<32x32xf32>
    %29 = arith.mulf %19, %28 : vector<32x32xf32>
    %30 = vector.broadcast %11 : vector<1x32xf32> to vector<32x32xf32>
    %31 = arith.mulf %29, %30 : vector<32x32xf32>
    %32 = vector.broadcast %13 : vector<1x32xf32> to vector<32x32xf32>
    %33 = arith.addf %31, %32 : vector<32x32xf32>
    %cst_19 = arith.constant 0.000000e+00 : f32
    %34 = vector.broadcast %cst_19 : f32 to vector<32x32xf32>
    %35 = arith.maximumf %33, %34 : vector<32x32xf32>
    %c0_20 = arith.constant 0 : index
    %c0_21 = arith.constant 0 : index
    %c0_22 = arith.constant 0 : index
    %36 = vector.load %arg6[%c0_20, %c0_21, %c0_22] : memref<1x32x32xbf16, #tpu.memory_space<vmem>>, vector<1x32x32xbf16>
    %37 = vector.shape_cast %36 : vector<1x32x32xbf16> to vector<32x32xbf16>
    %38 = arith.truncf %35 : vector<32x32xf32> to vector<32x32xbf16>
    %cst_23 = arith.constant dense<0.000000e+00> : vector<32x32xf32>
    %39 = tpu.matmul %38, %37, %cst_23 {dimension_numbers = #tpu.dot_dimension_numbers<[1], [0], [0], [1], [0, 0, 1, 1], [], []>} : vector<32x32xbf16>, vector<32x32xbf16>, vector<32x32xf32> -> vector<32x32xf32>
    %c0_24 = arith.constant 0 : index
    %c0_25 = arith.constant 0 : index
    %c0_26 = arith.constant 0 : index
    %40 = vector.load %arg7[%c0_24, %c0_25, %c0_26] : memref<1x1x32xf32, #tpu.memory_space<vmem>>, vector<1x1x32xf32>
    %41 = vector.shape_cast %40 : vector<1x1x32xf32> to vector<1x32xf32>
    %42 = vector.broadcast %41 : vector<1x32xf32> to vector<32x32xf32>
    %43 = arith.addf %39, %42 : vector<32x32xf32>
    %c0_27 = arith.constant 0 : index
    %c0_28 = arith.constant 0 : index
    %c0_29 = arith.constant 0 : index
    %44 = vector.load %arg8[%c0_27, %c0_28, %c0_29] : memref<1x32x32xf32, #tpu.memory_space<vmem>>, vector<1x32x32xf32>
    %45 = vector.shape_cast %44 : vector<1x32x32xf32> to vector<32x32xf32>
    %46 = vector.shape_cast %43 : vector<32x32xf32> to vector<1x32x32xf32>
    tpu.vector_store %arg8[%c0_27, %c0_28, %c0_29], %46 {strides = array<i32>} : memref<1x32x32xf32, #tpu.memory_space<vmem>>, vector<1x32x32xf32>,
    return
  }
  func.func @transform_0(%arg0: i32) -> (i32, i32, i32) {
    %c0_i32 = arith.constant 0 : i32
    %c0_i32_0 = arith.constant 0 : i32
    %c0_i32_1 = arith.constant 0 : i32
    return %arg0, %c0_i32, %c0_i32_0 : i32, i32, i32
  }
  func.func @transform_1(%arg0: i32) -> (i32, i32, i32) {
    %c0_i32 = arith.constant 0 : i32
    %c0_i32_0 = arith.constant 0 : i32
    %c0_i32_1 = arith.constant 0 : i32
    return %arg0, %c0_i32, %c0_i32_0 : i32, i32, i32
  }
  func.func @transform_2(%arg0: i32) -> (i32, i32, i32) {
    %c0_i32 = arith.constant 0 : i32
    %c0_i32_0 = arith.constant 0 : i32
    %c0_i32_1 = arith.constant 0 : i32
    return %arg0, %c0_i32, %c0_i32_0 : i32, i32, i32
  }
  func.func @transform_3(%arg0: i32) -> (i32, i32, i32) {
    %c0_i32 = arith.constant 0 : i32
    %c0_i32_0 = arith.constant 0 : i32
    %c0_i32_1 = arith.constant 0 : i32
    return %arg0, %c0_i32, %c0_i32_0 : i32, i32, i32
  }
  func.func @transform_4(%arg0: i32) -> (i32, i32, i32) {
    %c0_i32 = arith.constant 0 : i32
    %c0_i32_0 = arith.constant 0 : i32
    %c0_i32_1 = arith.constant 0 : i32
    return %arg0, %c0_i32, %c0_i32_0 : i32, i32, i32
  }
  func.func @transform_5(%arg0: i32) -> (i32, i32, i32) {
    %c0_i32 = arith.constant 0 : i32
    %c0_i32_0 = arith.constant 0 : i32
    %c0_i32_1 = arith.constant 0 : i32
    return %arg0, %c0_i32, %c0_i32_0 : i32, i32, i32
  }
  func.func @transform_6(%arg0: i32) -> (i32, i32, i32) {
    %c0_i32 = arith.constant 0 : i32
    %c0_i32_0 = arith.constant 0 : i32
    %c0_i32_1 = arith.constant 0 : i32
    return %arg0, %c0_i32, %c0_i32_0 : i32, i32, i32
  }
  func.func @transform_7(%arg0: i32) -> (i32, i32, i32) {
    %c0_i32 = arith.constant 0 : i32
    %c0_i32_0 = arith.constant 0 : i32
    %c0_i32_1 = arith.constant 0 : i32
    return %arg0, %c0_i32, %c0_i32_0 : i32, i32, i32
  }
}

module attributes {stable_mosaic.version = 11 : i64} {
  func.func @_udm_kernel(%arg0: i32, %arg1: memref<1x32x32xf32, #tpu.memory_space<vmem>>, %arg2: memref<1x3x32xf32, #tpu.memory_space<vmem>>, %arg3: memref<1x1x32xf32, #tpu.memory_space<vmem>>, %arg4: memref<1x1x32xf32, #tpu.memory_space<vmem>>, %arg5: memref<1x1x32xf32, #tpu.memory_space<vmem>>, %arg6: memref<1x16x32xf32, #tpu.memory_space<vmem>>) attributes {dimension_semantics = [#tpu.dimension_semantics<parallel>], iteration_bounds = array<i64: 2>, scalar_prefetch = 0 : i64, scratch_operands = 0 : i64, tpu.core_type = #tpu.core_type<tc>, window_params = [{transform_indices = @transform_0, window_bounds = array<i64: 1, 32, 32>}, {transform_indices = @transform_1, window_bounds = array<i64: 1, 3, 32>}, {transform_indices = @transform_2, window_bounds = array<i64: 1, 1, 32>}, {transform_indices = @transform_3, window_bounds = array<i64: 1, 1, 32>}, {transform_indices = @transform_4, window_bounds = array<i64: 1, 1, 32>}, {transform_indices = @transform_5, window_bounds = array<i64: 1, 16, 32>}]} {
    %c0 = arith.constant 0 : index
    %c0_0 = arith.constant 0 : index
    %c0_1 = arith.constant 0 : index
    %0 = vector.load %arg2[%c0, %c0_0, %c0_1] : memref<1x3x32xf32, #tpu.memory_space<vmem>>, vector<1x3x32xf32>
    %1 = vector.shape_cast %0 : vector<1x3x32xf32> to vector<3x32xf32>
    %c0_2 = arith.constant 0 : index
    %c0_3 = arith.constant 0 : index
    %c0_4 = arith.constant 0 : index
    %2 = vector.load %arg3[%c0_2, %c0_3, %c0_4] : memref<1x1x32xf32, #tpu.memory_space<vmem>>, vector<1x1x32xf32>
    %3 = vector.shape_cast %2 : vector<1x1x32xf32> to vector<1x32xf32>
    %c0_5 = arith.constant 0 : index
    %c0_6 = arith.constant 0 : index
    %c0_7 = arith.constant 0 : index
    %4 = vector.load %arg4[%c0_5, %c0_6, %c0_7] : memref<1x1x32xf32, #tpu.memory_space<vmem>>, vector<1x1x32xf32>
    %5 = vector.shape_cast %4 : vector<1x1x32xf32> to vector<1x32xf32>
    %c0_8 = arith.constant 0 : index
    %c0_9 = arith.constant 0 : index
    %c0_10 = arith.constant 0 : index
    %6 = vector.load %arg5[%c0_8, %c0_9, %c0_10] : memref<1x1x32xf32, #tpu.memory_space<vmem>>, vector<1x1x32xf32>
    %7 = vector.shape_cast %6 : vector<1x1x32xf32> to vector<1x32xf32>
    %c0_11 = arith.constant 0 : index
    %c0_12 = arith.constant 0 : index
    %c0_13 = arith.constant 0 : index
    %8 = vector.load %arg1[%c0_11, %c0_12, %c0_13] : memref<1x32x32xf32, #tpu.memory_space<vmem>>, vector<1x32x32xf32>
    %9 = vector.shape_cast %8 : vector<1x32x32xf32> to vector<32x32xf32>
    %10 = tpu.iota {dimensions = array<i32: 1>} : vector<2x16x1xi32>
    %11 = vector.shape_cast %10 : vector<2x16x1xi32> to vector<32x1xi32>
    %cst = arith.constant 0.000000e+00 : f32
    %12 = vector.broadcast %cst : f32 to vector<32x32xf32>
    %c1_i32 = arith.constant 1 : i32
    %13 = tpu.dynamic_rotate %9 by %c1_i32 dim 0 : vector<32x32xf32>, i32 -> vector<32x32xf32>
    %c1_i32_14 = arith.constant 1 : i32
    %14 = vector.broadcast %c1_i32_14 : i32 to vector<32x1xi32>
    %15 = arith.cmpi sge, %11, %14 : vector<32x1xi32>
    %cst_15 = arith.constant 0.000000e+00 : f32
    %16 = vector.shape_cast %15 : vector<32x1xi1> to vector<32x1xi1>
    %17 = vector.broadcast %16 : vector<32x1xi1> to vector<32x32xi1>
    %18 = vector.broadcast %cst_15 : f32 to vector<32x32xf32>
    %19 = arith.select %17, %13, %18 : vector<32x32xi1>, vector<32x32xf32>
    %20 = vector.extract_strided_slice %1 {offsets = [0, 0], sizes = [1, 32], strides = [1, 1]} : vector<3x32xf32> to vector<1x32xf32>
    %21 = vector.broadcast %20 : vector<1x32xf32> to vector<32x32xf32>
    %22 = arith.mulf %19, %21 : vector<32x32xf32>
    %23 = arith.addf %12, %22 : vector<32x32xf32>
    %24 = vector.extract_strided_slice %1 {offsets = [1, 0], sizes = [1, 32], strides = [1, 1]} : vector<3x32xf32> to vector<1x32xf32>
    %25 = vector.broadcast %24 : vector<1x32xf32> to vector<32x32xf32>
    %26 = arith.mulf %9, %25 : vector<32x32xf32>
    %27 = arith.addf %23, %26 : vector<32x32xf32>
    %c31_i32 = arith.constant 31 : i32
    %28 = tpu.dynamic_rotate %9 by %c31_i32 dim 0 : vector<32x32xf32>, i32 -> vector<32x32xf32>
    %c15_i32 = arith.constant 15 : i32
    %29 = vector.broadcast %c15_i32 : i32 to vector<32x1xi32>
    %30 = arith.cmpi slt, %11, %29 : vector<32x1xi32>
    %cst_16 = arith.constant 0.000000e+00 : f32
    %31 = vector.shape_cast %30 : vector<32x1xi1> to vector<32x1xi1>
    %32 = vector.broadcast %31 : vector<32x1xi1> to vector<32x32xi1>
    %33 = vector.broadcast %cst_16 : f32 to vector<32x32xf32>
    %34 = arith.select %32, %28, %33 : vector<32x32xi1>, vector<32x32xf32>
    %35 = vector.extract_strided_slice %1 {offsets = [2, 0], sizes = [1, 32], strides = [1, 1]} : vector<3x32xf32> to vector<1x32xf32>
    %36 = vector.broadcast %35 : vector<1x32xf32> to vector<32x32xf32>
    %37 = arith.mulf %34, %36 : vector<32x32xf32>
    %38 = arith.addf %27, %37 : vector<32x32xf32>
    %39 = vector.broadcast %3 : vector<1x32xf32> to vector<32x32xf32>
    %40 = arith.addf %38, %39 : vector<32x32xf32>
    %cst_17 = arith.constant dense<0.000000e+00> : vector<32xf32>
    %41 = vector.multi_reduction <add>, %40, %cst_17 [1] : vector<32x32xf32> to vector<32xf32>
    %42 = vector.shape_cast %41 : vector<32xf32> to vector<32x1xf32>
    %cst_18 = arith.constant 3.200000e+01 : f32
    %43 = vector.broadcast %cst_18 : f32 to vector<32x1xf32>
    %44 = arith.divf %42, %43 : vector<32x1xf32>
    %45 = vector.broadcast %44 : vector<32x1xf32> to vector<32x32xf32>
    %46 = arith.subf %40, %45 : vector<32x32xf32>
    %47 = arith.mulf %46, %46 : vector<32x32xf32>
    %cst_19 = arith.constant dense<0.000000e+00> : vector<32xf32>
    %48 = vector.multi_reduction <add>, %47, %cst_19 [1] : vector<32x32xf32> to vector<32xf32>
    %49 = vector.shape_cast %48 : vector<32xf32> to vector<32x1xf32>
    %cst_20 = arith.constant 3.200000e+01 : f32
    %50 = vector.broadcast %cst_20 : f32 to vector<32x1xf32>
    %51 = arith.divf %49, %50 : vector<32x1xf32>
    %cst_21 = arith.constant 9.99999974E-6 : f32
    %52 = vector.broadcast %cst_21 : f32 to vector<32x1xf32>
    %53 = arith.addf %51, %52 : vector<32x1xf32>
    %54 = math.rsqrt %53 : vector<32x1xf32>
    %55 = vector.broadcast %54 : vector<32x1xf32> to vector<32x32xf32>
    %56 = arith.mulf %46, %55 : vector<32x32xf32>
    %57 = vector.broadcast %5 : vector<1x32xf32> to vector<32x32xf32>
    %58 = arith.mulf %56, %57 : vector<32x32xf32>
    %59 = vector.broadcast %7 : vector<1x32xf32> to vector<32x32xf32>
    %60 = arith.addf %58, %59 : vector<32x32xf32>
    %cst_22 = arith.constant 0.000000e+00 : f32
    %61 = vector.broadcast %cst_22 : f32 to vector<32x32xf32>
    %62 = arith.maximumf %60, %61 : vector<32x32xf32>
    %63 = vector.shape_cast %62 : vector<32x32xf32> to vector<16x2x32xf32>
    %cst_23 = arith.constant dense<0xFF800000> : vector<16x32xf32>
    %64 = vector.multi_reduction <maximumf>, %63, %cst_23 [1] : vector<16x2x32xf32> to vector<16x32xf32>
    %c0_24 = arith.constant 0 : index
    %c0_25 = arith.constant 0 : index
    %c0_26 = arith.constant 0 : index
    %65 = vector.load %arg6[%c0_24, %c0_25, %c0_26] : memref<1x16x32xf32, #tpu.memory_space<vmem>>, vector<1x16x32xf32>
    %66 = vector.shape_cast %65 : vector<1x16x32xf32> to vector<16x32xf32>
    %67 = vector.shape_cast %64 : vector<16x32xf32> to vector<1x16x32xf32>
    tpu.vector_store %arg6[%c0_24, %c0_25, %c0_26], %67 {strides = array<i32>} : memref<1x16x32xf32, #tpu.memory_space<vmem>>, vector<1x16x32xf32>,
    return
  }
  func.func @transform_0(%arg0: i32) -> (i32, i32, i32) {
    %c0_i32 = arith.constant 0 : i32
    %c0_i32_0 = arith.constant 0 : i32
    %c0_i32_1 = arith.constant 0 : i32
    return %arg0, %c0_i32, %c0_i32_0 : i32, i32, i32
  }
  func.func @transform_1(%arg0: i32) -> (i32, i32, i32) {
    %c0_i32 = arith.constant 0 : i32
    %c0_i32_0 = arith.constant 0 : i32
    %c0_i32_1 = arith.constant 0 : i32
    return %arg0, %c0_i32, %c0_i32_0 : i32, i32, i32
  }
  func.func @transform_2(%arg0: i32) -> (i32, i32, i32) {
    %c0_i32 = arith.constant 0 : i32
    %c0_i32_0 = arith.constant 0 : i32
    %c0_i32_1 = arith.constant 0 : i32
    return %arg0, %c0_i32, %c0_i32_0 : i32, i32, i32
  }
  func.func @transform_3(%arg0: i32) -> (i32, i32, i32) {
    %c0_i32 = arith.constant 0 : i32
    %c0_i32_0 = arith.constant 0 : i32
    %c0_i32_1 = arith.constant 0 : i32
    return %arg0, %c0_i32, %c0_i32_0 : i32, i32, i32
  }
  func.func @transform_4(%arg0: i32) -> (i32, i32, i32) {
    %c0_i32 = arith.constant 0 : i32
    %c0_i32_0 = arith.constant 0 : i32
    %c0_i32_1 = arith.constant 0 : i32
    return %arg0, %c0_i32, %c0_i32_0 : i32, i32, i32
  }
  func.func @transform_5(%arg0: i32) -> (i32, i32, i32) {
    %c0_i32 = arith.constant 0 : i32
    %c0_i32_0 = arith.constant 0 : i32
    %c0_i32_1 = arith.constant 0 : i32
    return %arg0, %c0_i32, %c0_i32_0 : i32, i32, i32
  }
}

module attributes {stable_mosaic.version = 11 : i64} {
  func.func @_tstack_kernel(%arg0: i32, %arg1: i32, %arg2: memref<1x16x32xf32, #tpu.memory_space<vmem>>, %arg3: memref<1x1x32x96xbf16, #tpu.memory_space<vmem>>, %arg4: memref<1x1x1x96xf32, #tpu.memory_space<vmem>>, %arg5: memref<1x1x32x32xbf16, #tpu.memory_space<vmem>>, %arg6: memref<1x1x1x32xf32, #tpu.memory_space<vmem>>, %arg7: memref<1x1x1x32xf32, #tpu.memory_space<vmem>>, %arg8: memref<1x1x1x32xf32, #tpu.memory_space<vmem>>, %arg9: memref<1x1x32x32xbf16, #tpu.memory_space<vmem>>, %arg10: memref<1x1x1x32xf32, #tpu.memory_space<vmem>>, %arg11: memref<1x1x32x32xbf16, #tpu.memory_space<vmem>>, %arg12: memref<1x1x1x32xf32, #tpu.memory_space<vmem>>, %arg13: memref<1x1x1x32xf32, #tpu.memory_space<vmem>>, %arg14: memref<1x1x1x32xf32, #tpu.memory_space<vmem>>, %arg15: memref<1x2x32xf32, #tpu.memory_space<vmem>>, %arg16: memref<16x32xf32, #tpu.memory_space<vmem>>) attributes {dimension_semantics = [#tpu.dimension_semantics<parallel>, #tpu.dimension_semantics<arbitrary>], iteration_bounds = array<i64: 2, 2>, scalar_prefetch = 0 : i64, scratch_operands = 1 : i64, tpu.core_type = #tpu.core_type<tc>, window_params = [{transform_indices = @transform_0, window_bounds = array<i64: 1, 16, 32>}, {transform_indices = @transform_1, window_bounds = array<i64: 1, 1, 32, 96>}, {transform_indices = @transform_2, window_bounds = array<i64: 1, 1, 1, 96>}, {transform_indices = @transform_3, window_bounds = array<i64: 1, 1, 32, 32>}, {transform_indices = @transform_4, window_bounds = array<i64: 1, 1, 1, 32>}, {transform_indices = @transform_5, window_bounds = array<i64: 1, 1, 1, 32>}, {transform_indices = @transform_6, window_bounds = array<i64: 1, 1, 1, 32>}, {transform_indices = @transform_7, window_bounds = array<i64: 1, 1, 32, 32>}, {transform_indices = @transform_8, window_bounds = array<i64: 1, 1, 1, 32>}, {transform_indices = @transform_9, window_bounds = array<i64: 1, 1, 32, 32>}, {transform_indices = @transform_10, window_bounds = array<i64: 1, 1, 1, 32>}, {transform_indices = @transform_11, window_bounds = array<i64: 1, 1, 1, 32>}, {transform_indices = @transform_12, window_bounds = array<i64: 1, 1, 1, 32>}, {transform_indices = @transform_13, window_bounds = array<i64: 1, 2, 32>}]} {
    %c0_i32 = arith.constant 0 : i32
    %0 = arith.cmpi eq, %arg1, %c0_i32 : i32
    %1 = arith.extui %0 : i1 to i32
    %c0_i32_0 = arith.constant 0 : i32
    %2 = arith.cmpi ne, %1, %c0_i32_0 : i32
    scf.if %2 {
      %c0_83 = arith.constant 0 : index
      %c0_84 = arith.constant 0 : index
      %c0_85 = arith.constant 0 : index
      %176 = vector.load %arg2[%c0_83, %c0_84, %c0_85] : memref<1x16x32xf32, #tpu.memory_space<vmem>>, vector<1x16x32xf32>
      %177 = vector.shape_cast %176 : vector<1x16x32xf32> to vector<16x32xf32>
      %c0_86 = arith.constant 0 : index
      %c0_87 = arith.constant 0 : index
      %178 = vector.load %arg16[%c0_86, %c0_87] : memref<16x32xf32, #tpu.memory_space<vmem>>, vector<16x32xf32>
      tpu.vector_store %arg16[%c0_86, %c0_87], %177 {strides = array<i32>} : memref<16x32xf32, #tpu.memory_space<vmem>>, vector<16x32xf32>,
    } else {
    }
    %c0 = arith.constant 0 : index
    %c0_1 = arith.constant 0 : index
    %3 = vector.load %arg16[%c0, %c0_1] : memref<16x32xf32, #tpu.memory_space<vmem>>, vector<16x32xf32>
    %c0_2 = arith.constant 0 : index
    %c0_3 = arith.constant 0 : index
    %c0_4 = arith.constant 0 : index
    %c0_5 = arith.constant 0 : index
    %4 = vector.load %arg3[%c0_2, %c0_3, %c0_4, %c0_5] : memref<1x1x32x96xbf16, #tpu.memory_space<vmem>>, vector<1x1x32x96xbf16>
    %5 = vector.shape_cast %4 : vector<1x1x32x96xbf16> to vector<32x96xbf16>
    %6 = arith.truncf %3 : vector<16x32xf32> to vector<16x32xbf16>
    %cst = arith.constant dense<0.000000e+00> : vector<16x96xf32>
    %7 = tpu.matmul %6, %5, %cst {dimension_numbers = #tpu.dot_dimension_numbers<[1], [0], [0], [1], [0, 0, 1, 1], [], []>} : vector<16x32xbf16>, vector<32x96xbf16>, vector<16x96xf32> -> vector<16x96xf32>
    %c0_6 = arith.constant 0 : index
    %c0_7 = arith.constant 0 : index
    %c0_8 = arith.constant 0 : index
    %c0_9 = arith.constant 0 : index
    %8 = vector.load %arg4[%c0_6, %c0_7, %c0_8, %c0_9] : memref<1x1x1x96xf32, #tpu.memory_space<vmem>>, vector<1x1x1x96xf32>
    %9 = vector.shape_cast %8 : vector<1x1x1x96xf32> to vector<1x96xf32>
    %10 = vector.broadcast %9 : vector<1x96xf32> to vector<16x96xf32>
    %11 = arith.addf %7, %10 : vector<16x96xf32>
    %12 = vector.extract_strided_slice %11 {offsets = [0, 0], sizes = [16, 32], strides = [1, 1]} : vector<16x96xf32> to vector<16x32xf32>
    %13 = vector.shape_cast %12 : vector<16x32xf32> to vector<2x8x32xf32>
    %14 = vector.extract_strided_slice %11 {offsets = [0, 32], sizes = [16, 32], strides = [1, 1]} : vector<16x96xf32> to vector<16x32xf32>
    %15 = vector.shape_cast %14 : vector<16x32xf32> to vector<2x8x32xf32>
    %16 = vector.extract_strided_slice %11 {offsets = [0, 64], sizes = [16, 32], strides = [1, 1]} : vector<16x96xf32> to vector<16x32xf32>
    %17 = vector.shape_cast %16 : vector<16x32xf32> to vector<2x8x32xf32>
    %18 = vector.extract_strided_slice %13 {offsets = [0, 0, 0], sizes = [2, 8, 8], strides = [1, 1, 1]} : vector<2x8x32xf32> to vector<2x8x8xf32>
    %19 = arith.truncf %18 : vector<2x8x8xf32> to vector<2x8x8xbf16>
    %20 = vector.extract_strided_slice %15 {offsets = [0, 0, 0], sizes = [2, 8, 8], strides = [1, 1, 1]} : vector<2x8x32xf32> to vector<2x8x8xf32>
    %21 = arith.truncf %20 : vector<2x8x8xf32> to vector<2x8x8xbf16>
    "tpu.trace_start"() <{level = 10 : i32, message = "bqd,bkd->bqk"}> : () -> ()
    %cst_10 = arith.constant dense<0.000000e+00> : vector<2x8x8xf32>
    %22 = tpu.matmul %19, %21, %cst_10 {dimension_numbers = #tpu.dot_dimension_numbers<[2], [2], [1], [1], [0, 0, 0, 1, 1, 1], [0], [0]>} : vector<2x8x8xbf16>, vector<2x8x8xbf16>, vector<2x8x8xf32> -> vector<2x8x8xf32>
    "tpu.trace_stop"() : () -> ()
    %cst_11 = arith.constant dense<0xFF800000> : vector<2x8xf32>
    %23 = vector.multi_reduction <maximumf>, %22, %cst_11 [2] : vector<2x8x8xf32> to vector<2x8xf32>
    %24 = vector.shape_cast %23 : vector<2x8xf32> to vector<2x8x1xf32>
    %25 = vector.broadcast %24 : vector<2x8x1xf32> to vector<2x8x8xf32>
    %26 = arith.subf %22, %25 : vector<2x8x8xf32>
    %27 = math.exp %26 : vector<2x8x8xf32>
    %cst_12 = arith.constant dense<0.000000e+00> : vector<2x8xf32>
    %28 = vector.multi_reduction <add>, %27, %cst_12 [2] : vector<2x8x8xf32> to vector<2x8xf32>
    %29 = vector.shape_cast %28 : vector<2x8xf32> to vector<2x8x1xf32>
    %30 = tpu.reciprocal %29 {approx = true} : vector<2x8x1xf32> -> vector<2x8x1xf32>
    %31 = vector.broadcast %30 : vector<2x8x1xf32> to vector<2x8x8xf32>
    %32 = arith.mulf %27, %31 : vector<2x8x8xf32>
    %33 = arith.truncf %32 : vector<2x8x8xf32> to vector<2x8x8xbf16>
    %34 = vector.extract_strided_slice %17 {offsets = [0, 0, 0], sizes = [2, 8, 8], strides = [1, 1, 1]} : vector<2x8x32xf32> to vector<2x8x8xf32>
    %35 = arith.truncf %34 : vector<2x8x8xf32> to vector<2x8x8xbf16>
    "tpu.trace_start"() <{level = 10 : i32, message = "bqk,bkd->bqd"}> : () -> ()
    %cst_13 = arith.constant dense<0.000000e+00> : vector<2x8x8xf32>
    %36 = tpu.matmul %33, %35, %cst_13 {dimension_numbers = #tpu.dot_dimension_numbers<[2], [1], [1], [2], [0, 0, 0, 1, 1, 2], [0], [0]>} : vector<2x8x8xbf16>, vector<2x8x8xbf16>, vector<2x8x8xf32> -> vector<2x8x8xf32>
    "tpu.trace_stop"() : () -> ()
    %37 = vector.extract_strided_slice %13 {offsets = [0, 0, 8], sizes = [2, 8, 8], strides = [1, 1, 1]} : vector<2x8x32xf32> to vector<2x8x8xf32>
    %38 = arith.truncf %37 : vector<2x8x8xf32> to vector<2x8x8xbf16>
    %39 = vector.extract_strided_slice %15 {offsets = [0, 0, 8], sizes = [2, 8, 8], strides = [1, 1, 1]} : vector<2x8x32xf32> to vector<2x8x8xf32>
    %40 = arith.truncf %39 : vector<2x8x8xf32> to vector<2x8x8xbf16>
    "tpu.trace_start"() <{level = 10 : i32, message = "bqd,bkd->bqk"}> : () -> ()
    %cst_14 = arith.constant dense<0.000000e+00> : vector<2x8x8xf32>
    %41 = tpu.matmul %38, %40, %cst_14 {dimension_numbers = #tpu.dot_dimension_numbers<[2], [2], [1], [1], [0, 0, 0, 1, 1, 1], [0], [0]>} : vector<2x8x8xbf16>, vector<2x8x8xbf16>, vector<2x8x8xf32> -> vector<2x8x8xf32>
    "tpu.trace_stop"() : () -> ()
    %cst_15 = arith.constant dense<0xFF800000> : vector<2x8xf32>
    %42 = vector.multi_reduction <maximumf>, %41, %cst_15 [2] : vector<2x8x8xf32> to vector<2x8xf32>
    %43 = vector.shape_cast %42 : vector<2x8xf32> to vector<2x8x1xf32>
    %44 = vector.broadcast %43 : vector<2x8x1xf32> to vector<2x8x8xf32>
    %45 = arith.subf %41, %44 : vector<2x8x8xf32>
    %46 = math.exp %45 : vector<2x8x8xf32>
    %cst_16 = arith.constant dense<0.000000e+00> : vector<2x8xf32>
    %47 = vector.multi_reduction <add>, %46, %cst_16 [2] : vector<2x8x8xf32> to vector<2x8xf32>
    %48 = vector.shape_cast %47 : vector<2x8xf32> to vector<2x8x1xf32>
    %49 = tpu.reciprocal %48 {approx = true} : vector<2x8x1xf32> -> vector<2x8x1xf32>
    %50 = vector.broadcast %49 : vector<2x8x1xf32> to vector<2x8x8xf32>
    %51 = arith.mulf %46, %50 : vector<2x8x8xf32>
    %52 = arith.truncf %51 : vector<2x8x8xf32> to vector<2x8x8xbf16>
    %53 = vector.extract_strided_slice %17 {offsets = [0, 0, 8], sizes = [2, 8, 8], strides = [1, 1, 1]} : vector<2x8x32xf32> to vector<2x8x8xf32>
    %54 = arith.truncf %53 : vector<2x8x8xf32> to vector<2x8x8xbf16>
    "tpu.trace_start"() <{level = 10 : i32, message = "bqk,bkd->bqd"}> : () -> ()
    %cst_17 = arith.constant dense<0.000000e+00> : vector<2x8x8xf32>
    %55 = tpu.matmul %52, %54, %cst_17 {dimension_numbers = #tpu.dot_dimension_numbers<[2], [1], [1], [2], [0, 0, 0, 1, 1, 2], [0], [0]>} : vector<2x8x8xbf16>, vector<2x8x8xbf16>, vector<2x8x8xf32> -> vector<2x8x8xf32>
    "tpu.trace_stop"() : () -> ()
    %56 = vector.extract_strided_slice %13 {offsets = [0, 0, 16], sizes = [2, 8, 8], strides = [1, 1, 1]} : vector<2x8x32xf32> to vector<2x8x8xf32>
    %57 = arith.truncf %56 : vector<2x8x8xf32> to vector<2x8x8xbf16>
    %58 = vector.extract_strided_slice %15 {offsets = [0, 0, 16], sizes = [2, 8, 8], strides = [1, 1, 1]} : vector<2x8x32xf32> to vector<2x8x8xf32>
    %59 = arith.truncf %58 : vector<2x8x8xf32> to vector<2x8x8xbf16>
    "tpu.trace_start"() <{level = 10 : i32, message = "bqd,bkd->bqk"}> : () -> ()
    %cst_18 = arith.constant dense<0.000000e+00> : vector<2x8x8xf32>
    %60 = tpu.matmul %57, %59, %cst_18 {dimension_numbers = #tpu.dot_dimension_numbers<[2], [2], [1], [1], [0, 0, 0, 1, 1, 1], [0], [0]>} : vector<2x8x8xbf16>, vector<2x8x8xbf16>, vector<2x8x8xf32> -> vector<2x8x8xf32>
    "tpu.trace_stop"() : () -> ()
    %cst_19 = arith.constant dense<0xFF800000> : vector<2x8xf32>
    %61 = vector.multi_reduction <maximumf>, %60, %cst_19 [2] : vector<2x8x8xf32> to vector<2x8xf32>
    %62 = vector.shape_cast %61 : vector<2x8xf32> to vector<2x8x1xf32>
    %63 = vector.broadcast %62 : vector<2x8x1xf32> to vector<2x8x8xf32>
    %64 = arith.subf %60, %63 : vector<2x8x8xf32>
    %65 = math.exp %64 : vector<2x8x8xf32>
    %cst_20 = arith.constant dense<0.000000e+00> : vector<2x8xf32>
    %66 = vector.multi_reduction <add>, %65, %cst_20 [2] : vector<2x8x8xf32> to vector<2x8xf32>
    %67 = vector.shape_cast %66 : vector<2x8xf32> to vector<2x8x1xf32>
    %68 = tpu.reciprocal %67 {approx = true} : vector<2x8x1xf32> -> vector<2x8x1xf32>
    %69 = vector.broadcast %68 : vector<2x8x1xf32> to vector<2x8x8xf32>
    %70 = arith.mulf %65, %69 : vector<2x8x8xf32>
    %71 = arith.truncf %70 : vector<2x8x8xf32> to vector<2x8x8xbf16>
    %72 = vector.extract_strided_slice %17 {offsets = [0, 0, 16], sizes = [2, 8, 8], strides = [1, 1, 1]} : vector<2x8x32xf32> to vector<2x8x8xf32>
    %73 = arith.truncf %72 : vector<2x8x8xf32> to vector<2x8x8xbf16>
    "tpu.trace_start"() <{level = 10 : i32, message = "bqk,bkd->bqd"}> : () -> ()
    %cst_21 = arith.constant dense<0.000000e+00> : vector<2x8x8xf32>
    %74 = tpu.matmul %71, %73, %cst_21 {dimension_numbers = #tpu.dot_dimension_numbers<[2], [1], [1], [2], [0, 0, 0, 1, 1, 2], [0], [0]>} : vector<2x8x8xbf16>, vector<2x8x8xbf16>, vector<2x8x8xf32> -> vector<2x8x8xf32>
    "tpu.trace_stop"() : () -> ()
    %75 = vector.extract_strided_slice %13 {offsets = [0, 0, 24], sizes = [2, 8, 8], strides = [1, 1, 1]} : vector<2x8x32xf32> to vector<2x8x8xf32>
    %76 = arith.truncf %75 : vector<2x8x8xf32> to vector<2x8x8xbf16>
    %77 = vector.extract_strided_slice %15 {offsets = [0, 0, 24], sizes = [2, 8, 8], strides = [1, 1, 1]} : vector<2x8x32xf32> to vector<2x8x8xf32>
    %78 = arith.truncf %77 : vector<2x8x8xf32> to vector<2x8x8xbf16>
    "tpu.trace_start"() <{level = 10 : i32, message = "bqd,bkd->bqk"}> : () -> ()
    %cst_22 = arith.constant dense<0.000000e+00> : vector<2x8x8xf32>
    %79 = tpu.matmul %76, %78, %cst_22 {dimension_numbers = #tpu.dot_dimension_numbers<[2], [2], [1], [1], [0, 0, 0, 1, 1, 1], [0], [0]>} : vector<2x8x8xbf16>, vector<2x8x8xbf16>, vector<2x8x8xf32> -> vector<2x8x8xf32>
    "tpu.trace_stop"() : () -> ()
    %cst_23 = arith.constant dense<0xFF800000> : vector<2x8xf32>
    %80 = vector.multi_reduction <maximumf>, %79, %cst_23 [2] : vector<2x8x8xf32> to vector<2x8xf32>
    %81 = vector.shape_cast %80 : vector<2x8xf32> to vector<2x8x1xf32>
    %82 = vector.broadcast %81 : vector<2x8x1xf32> to vector<2x8x8xf32>
    %83 = arith.subf %79, %82 : vector<2x8x8xf32>
    %84 = math.exp %83 : vector<2x8x8xf32>
    %cst_24 = arith.constant dense<0.000000e+00> : vector<2x8xf32>
    %85 = vector.multi_reduction <add>, %84, %cst_24 [2] : vector<2x8x8xf32> to vector<2x8xf32>
    %86 = vector.shape_cast %85 : vector<2x8xf32> to vector<2x8x1xf32>
    %87 = tpu.reciprocal %86 {approx = true} : vector<2x8x1xf32> -> vector<2x8x1xf32>
    %88 = vector.broadcast %87 : vector<2x8x1xf32> to vector<2x8x8xf32>
    %89 = arith.mulf %84, %88 : vector<2x8x8xf32>
    %90 = arith.truncf %89 : vector<2x8x8xf32> to vector<2x8x8xbf16>
    %91 = vector.extract_strided_slice %17 {offsets = [0, 0, 24], sizes = [2, 8, 8], strides = [1, 1, 1]} : vector<2x8x32xf32> to vector<2x8x8xf32>
    %92 = arith.truncf %91 : vector<2x8x8xf32> to vector<2x8x8xbf16>
    "tpu.trace_start"() <{level = 10 : i32, message = "bqk,bkd->bqd"}> : () -> ()
    %cst_25 = arith.constant dense<0.000000e+00> : vector<2x8x8xf32>
    %93 = tpu.matmul %90, %92, %cst_25 {dimension_numbers = #tpu.dot_dimension_numbers<[2], [1], [1], [2], [0, 0, 0, 1, 1, 2], [0], [0]>} : vector<2x8x8xbf16>, vector<2x8x8xbf16>, vector<2x8x8xf32> -> vector<2x8x8xf32>
    "tpu.trace_stop"() : () -> ()
    %94 = tpu.concatenate %36, %55, %74, %93 in 2 : vector<2x8x8xf32>, vector<2x8x8xf32>, vector<2x8x8xf32>, vector<2x8x8xf32> -> vector<2x8x32xf32>
    %95 = vector.shape_cast %94 : vector<2x8x32xf32> to vector<16x32xf32>
    %c0_26 = arith.constant 0 : index
    %c0_27 = arith.constant 0 : index
    %c0_28 = arith.constant 0 : index
    %c0_29 = arith.constant 0 : index
    %96 = vector.load %arg5[%c0_26, %c0_27, %c0_28, %c0_29] : memref<1x1x32x32xbf16, #tpu.memory_space<vmem>>, vector<1x1x32x32xbf16>
    %97 = vector.shape_cast %96 : vector<1x1x32x32xbf16> to vector<32x32xbf16>
    %98 = arith.truncf %95 : vector<16x32xf32> to vector<16x32xbf16>
    %cst_30 = arith.constant dense<0.000000e+00> : vector<16x32xf32>
    %99 = tpu.matmul %98, %97, %cst_30 {dimension_numbers = #tpu.dot_dimension_numbers<[1], [0], [0], [1], [0, 0, 1, 1], [], []>} : vector<16x32xbf16>, vector<32x32xbf16>, vector<16x32xf32> -> vector<16x32xf32>
    %c0_31 = arith.constant 0 : index
    %c0_32 = arith.constant 0 : index
    %c0_33 = arith.constant 0 : index
    %c0_34 = arith.constant 0 : index
    %100 = vector.load %arg6[%c0_31, %c0_32, %c0_33, %c0_34] : memref<1x1x1x32xf32, #tpu.memory_space<vmem>>, vector<1x1x1x32xf32>
    %101 = vector.shape_cast %100 : vector<1x1x1x32xf32> to vector<1x32xf32>
    %102 = vector.broadcast %101 : vector<1x32xf32> to vector<16x32xf32>
    %103 = arith.addf %99, %102 : vector<16x32xf32>
    %104 = arith.addf %3, %103 : vector<16x32xf32>
    %c0_35 = arith.constant 0 : index
    %c0_36 = arith.constant 0 : index
    %c0_37 = arith.constant 0 : index
    %c0_38 = arith.constant 0 : index
    %105 = vector.load %arg7[%c0_35, %c0_36, %c0_37, %c0_38] : memref<1x1x1x32xf32, #tpu.memory_space<vmem>>, vector<1x1x1x32xf32>
    %106 = vector.shape_cast %105 : vector<1x1x1x32xf32> to vector<1x32xf32>
    %c0_39 = arith.constant 0 : index
    %c0_40 = arith.constant 0 : index
    %c0_41 = arith.constant 0 : index
    %c0_42 = arith.constant 0 : index
    %107 = vector.load %arg8[%c0_39, %c0_40, %c0_41, %c0_42] : memref<1x1x1x32xf32, #tpu.memory_space<vmem>>, vector<1x1x1x32xf32>
    %108 = vector.shape_cast %107 : vector<1x1x1x32xf32> to vector<1x32xf32>
    %cst_43 = arith.constant dense<0.000000e+00> : vector<16xf32>
    %109 = vector.multi_reduction <add>, %104, %cst_43 [1] : vector<16x32xf32> to vector<16xf32>
    %110 = vector.shape_cast %109 : vector<16xf32> to vector<16x1xf32>
    %cst_44 = arith.constant 3.200000e+01 : f32
    %111 = vector.broadcast %cst_44 : f32 to vector<16x1xf32>
    %112 = arith.divf %110, %111 : vector<16x1xf32>
    %113 = vector.broadcast %112 : vector<16x1xf32> to vector<16x32xf32>
    %114 = arith.subf %104, %113 : vector<16x32xf32>
    %115 = arith.mulf %114, %114 : vector<16x32xf32>
    %cst_45 = arith.constant dense<0.000000e+00> : vector<16xf32>
    %116 = vector.multi_reduction <add>, %115, %cst_45 [1] : vector<16x32xf32> to vector<16xf32>
    %117 = vector.shape_cast %116 : vector<16xf32> to vector<16x1xf32>
    %cst_46 = arith.constant 3.200000e+01 : f32
    %118 = vector.broadcast %cst_46 : f32 to vector<16x1xf32>
    %119 = arith.divf %117, %118 : vector<16x1xf32>
    %cst_47 = arith.constant 9.99999974E-6 : f32
    %120 = vector.broadcast %cst_47 : f32 to vector<16x1xf32>
    %121 = arith.addf %119, %120 : vector<16x1xf32>
    %122 = math.rsqrt %121 : vector<16x1xf32>
    %123 = vector.broadcast %122 : vector<16x1xf32> to vector<16x32xf32>
    %124 = arith.mulf %114, %123 : vector<16x32xf32>
    %125 = vector.broadcast %106 : vector<1x32xf32> to vector<16x32xf32>
    %126 = arith.mulf %124, %125 : vector<16x32xf32>
    %127 = vector.broadcast %108 : vector<1x32xf32> to vector<16x32xf32>
    %128 = arith.addf %126, %127 : vector<16x32xf32>
    %c0_48 = arith.constant 0 : index
    %c0_49 = arith.constant 0 : index
    %c0_50 = arith.constant 0 : index
    %c0_51 = arith.constant 0 : index
    %129 = vector.load %arg9[%c0_48, %c0_49, %c0_50, %c0_51] : memref<1x1x32x32xbf16, #tpu.memory_space<vmem>>, vector<1x1x32x32xbf16>
    %130 = vector.shape_cast %129 : vector<1x1x32x32xbf16> to vector<32x32xbf16>
    %131 = arith.truncf %128 : vector<16x32xf32> to vector<16x32xbf16>
    %cst_52 = arith.constant dense<0.000000e+00> : vector<16x32xf32>
    %132 = tpu.matmul %131, %130, %cst_52 {dimension_numbers = #tpu.dot_dimension_numbers<[1], [0], [0], [1], [0, 0, 1, 1], [], []>} : vector<16x32xbf16>, vector<32x32xbf16>, vector<16x32xf32> -> vector<16x32xf32>
    %c0_53 = arith.constant 0 : index
    %c0_54 = arith.constant 0 : index
    %c0_55 = arith.constant 0 : index
    %c0_56 = arith.constant 0 : index
    %133 = vector.load %arg10[%c0_53, %c0_54, %c0_55, %c0_56] : memref<1x1x1x32xf32, #tpu.memory_space<vmem>>, vector<1x1x1x32xf32>
    %134 = vector.shape_cast %133 : vector<1x1x1x32xf32> to vector<1x32xf32>
    %135 = vector.broadcast %134 : vector<1x32xf32> to vector<16x32xf32>
    %136 = arith.addf %132, %135 : vector<16x32xf32>
    %cst_57 = arith.constant 0.000000e+00 : f32
    %137 = vector.broadcast %cst_57 : f32 to vector<16x32xf32>
    %138 = arith.maximumf %136, %137 : vector<16x32xf32>
    %c0_58 = arith.constant 0 : index
    %c0_59 = arith.constant 0 : index
    %c0_60 = arith.constant 0 : index
    %c0_61 = arith.constant 0 : index
    %139 = vector.load %arg11[%c0_58, %c0_59, %c0_60, %c0_61] : memref<1x1x32x32xbf16, #tpu.memory_space<vmem>>, vector<1x1x32x32xbf16>
    %140 = vector.shape_cast %139 : vector<1x1x32x32xbf16> to vector<32x32xbf16>
    %141 = arith.truncf %138 : vector<16x32xf32> to vector<16x32xbf16>
    %cst_62 = arith.constant dense<0.000000e+00> : vector<16x32xf32>
    %142 = tpu.matmul %141, %140, %cst_62 {dimension_numbers = #tpu.dot_dimension_numbers<[1], [0], [0], [1], [0, 0, 1, 1], [], []>} : vector<16x32xbf16>, vector<32x32xbf16>, vector<16x32xf32> -> vector<16x32xf32>
    %c0_63 = arith.constant 0 : index
    %c0_64 = arith.constant 0 : index
    %c0_65 = arith.constant 0 : index
    %c0_66 = arith.constant 0 : index
    %143 = vector.load %arg12[%c0_63, %c0_64, %c0_65, %c0_66] : memref<1x1x1x32xf32, #tpu.memory_space<vmem>>, vector<1x1x1x32xf32>
    %144 = vector.shape_cast %143 : vector<1x1x1x32xf32> to vector<1x32xf32>
    %145 = vector.broadcast %144 : vector<1x32xf32> to vector<16x32xf32>
    %146 = arith.addf %142, %145 : vector<16x32xf32>
    %147 = arith.addf %128, %146 : vector<16x32xf32>
    %c0_67 = arith.constant 0 : index
    %c0_68 = arith.constant 0 : index
    %c0_69 = arith.constant 0 : index
    %c0_70 = arith.constant 0 : index
    %148 = vector.load %arg13[%c0_67, %c0_68, %c0_69, %c0_70] : memref<1x1x1x32xf32, #tpu.memory_space<vmem>>, vector<1x1x1x32xf32>
    %149 = vector.shape_cast %148 : vector<1x1x1x32xf32> to vector<1x32xf32>
    %c0_71 = arith.constant 0 : index
    %c0_72 = arith.constant 0 : index
    %c0_73 = arith.constant 0 : index
    %c0_74 = arith.constant 0 : index
    %150 = vector.load %arg14[%c0_71, %c0_72, %c0_73, %c0_74] : memref<1x1x1x32xf32, #tpu.memory_space<vmem>>, vector<1x1x1x32xf32>
    %151 = vector.shape_cast %150 : vector<1x1x1x32xf32> to vector<1x32xf32>
    %cst_75 = arith.constant dense<0.000000e+00> : vector<16xf32>
    %152 = vector.multi_reduction <add>, %147, %cst_75 [1] : vector<16x32xf32> to vector<16xf32>
    %153 = vector.shape_cast %152 : vector<16xf32> to vector<16x1xf32>
    %cst_76 = arith.constant 3.200000e+01 : f32
    %154 = vector.broadcast %cst_76 : f32 to vector<16x1xf32>
    %155 = arith.divf %153, %154 : vector<16x1xf32>
    %156 = vector.broadcast %155 : vector<16x1xf32> to vector<16x32xf32>
    %157 = arith.subf %147, %156 : vector<16x32xf32>
    %158 = arith.mulf %157, %157 : vector<16x32xf32>
    %cst_77 = arith.constant dense<0.000000e+00> : vector<16xf32>
    %159 = vector.multi_reduction <add>, %158, %cst_77 [1] : vector<16x32xf32> to vector<16xf32>
    %160 = vector.shape_cast %159 : vector<16xf32> to vector<16x1xf32>
    %cst_78 = arith.constant 3.200000e+01 : f32
    %161 = vector.broadcast %cst_78 : f32 to vector<16x1xf32>
    %162 = arith.divf %160, %161 : vector<16x1xf32>
    %cst_79 = arith.constant 9.99999974E-6 : f32
    %163 = vector.broadcast %cst_79 : f32 to vector<16x1xf32>
    %164 = arith.addf %162, %163 : vector<16x1xf32>
    %165 = math.rsqrt %164 : vector<16x1xf32>
    %166 = vector.broadcast %165 : vector<16x1xf32> to vector<16x32xf32>
    %167 = arith.mulf %157, %166 : vector<16x32xf32>
    %168 = vector.broadcast %149 : vector<1x32xf32> to vector<16x32xf32>
    %169 = arith.mulf %167, %168 : vector<16x32xf32>
    %170 = vector.broadcast %151 : vector<1x32xf32> to vector<16x32xf32>
    %171 = arith.addf %169, %170 : vector<16x32xf32>
    %c0_80 = arith.constant 0 : index
    %c0_81 = arith.constant 0 : index
    %172 = vector.load %arg16[%c0_80, %c0_81] : memref<16x32xf32, #tpu.memory_space<vmem>>, vector<16x32xf32>
    tpu.vector_store %arg16[%c0_80, %c0_81], %171 {strides = array<i32>} : memref<16x32xf32, #tpu.memory_space<vmem>>, vector<16x32xf32>,
    %c1_i32 = arith.constant 1 : i32
    %173 = arith.cmpi eq, %arg1, %c1_i32 : i32
    %174 = arith.extui %173 : i1 to i32
    %c0_i32_82 = arith.constant 0 : i32
    %175 = arith.cmpi ne, %174, %c0_i32_82 : i32
    scf.if %175 {
      %176 = vector.shape_cast %171 : vector<16x32xf32> to vector<2x8x32xf32>
      %cst_83 = arith.constant dense<0xFF800000> : vector<2x32xf32>
      %177 = vector.multi_reduction <maximumf>, %176, %cst_83 [1] : vector<2x8x32xf32> to vector<2x32xf32>
      %c0_84 = arith.constant 0 : index
      %c0_85 = arith.constant 0 : index
      %c0_86 = arith.constant 0 : index
      %178 = vector.load %arg15[%c0_84, %c0_85, %c0_86] : memref<1x2x32xf32, #tpu.memory_space<vmem>>, vector<1x2x32xf32>
      %179 = vector.shape_cast %178 : vector<1x2x32xf32> to vector<2x32xf32>
      %180 = vector.shape_cast %177 : vector<2x32xf32> to vector<1x2x32xf32>
      tpu.vector_store %arg15[%c0_84, %c0_85, %c0_86], %180 {strides = array<i32>} : memref<1x2x32xf32, #tpu.memory_space<vmem>>, vector<1x2x32xf32>,
    } else {
    }
    return
  }
  func.func @transform_0(%arg0: i32, %arg1: i32) -> (i32, i32, i32) {
    %c0_i32 = arith.constant 0 : i32
    %c0_i32_0 = arith.constant 0 : i32
    %c0_i32_1 = arith.constant 0 : i32
    return %arg0, %c0_i32, %c0_i32_0 : i32, i32, i32
  }
  func.func @transform_1(%arg0: i32, %arg1: i32) -> (i32, i32, i32, i32) {
    %c0_i32 = arith.constant 0 : i32
    %c0_i32_0 = arith.constant 0 : i32
    %c0_i32_1 = arith.constant 0 : i32
    return %arg0, %arg1, %c0_i32, %c0_i32_0 : i32, i32, i32, i32
  }
  func.func @transform_2(%arg0: i32, %arg1: i32) -> (i32, i32, i32, i32) {
    %c0_i32 = arith.constant 0 : i32
    %c0_i32_0 = arith.constant 0 : i32
    %c0_i32_1 = arith.constant 0 : i32
    return %arg0, %arg1, %c0_i32, %c0_i32_0 : i32, i32, i32, i32
  }
  func.func @transform_3(%arg0: i32, %arg1: i32) -> (i32, i32, i32, i32) {
    %c0_i32 = arith.constant 0 : i32
    %c0_i32_0 = arith.constant 0 : i32
    %c0_i32_1 = arith.constant 0 : i32
    return %arg0, %arg1, %c0_i32, %c0_i32_0 : i32, i32, i32, i32
  }
  func.func @transform_4(%arg0: i32, %arg1: i32) -> (i32, i32, i32, i32) {
    %c0_i32 = arith.constant 0 : i32
    %c0_i32_0 = arith.constant 0 : i32
    %c0_i32_1 = arith.constant 0 : i32
    return %arg0, %arg1, %c0_i32, %c0_i32_0 : i32, i32, i32, i32
  }
  func.func @transform_5(%arg0: i32, %arg1: i32) -> (i32, i32, i32, i32) {
    %c0_i32 = arith.constant 0 : i32
    %c0_i32_0 = arith.constant 0 : i32
    %c0_i32_1 = arith.constant 0 : i32
    return %arg0, %arg1, %c0_i32, %c0_i32_0 : i32, i32, i32, i32
  }
  func.func @transform_6(%arg0: i32, %arg1: i32) -> (i32, i32, i32, i32) {
    %c0_i32 = arith.constant 0 : i32
    %c0_i32_0 = arith.constant 0 : i32
    %c0_i32_1 = arith.constant 0 : i32
    return %arg0, %arg1, %c0_i32, %c0_i32_0 : i32, i32, i32, i32
  }
  func.func @transform_7(%arg0: i32, %arg1: i32) -> (i32, i32, i32, i32) {
    %c0_i32 = arith.constant 0 : i32
    %c0_i32_0 = arith.constant 0 : i32
    %c0_i32_1 = arith.constant 0 : i32
    return %arg0, %arg1, %c0_i32, %c0_i32_0 : i32, i32, i32, i32
  }
  func.func @transform_8(%arg0: i32, %arg1: i32) -> (i32, i32, i32, i32) {
    %c0_i32 = arith.constant 0 : i32
    %c0_i32_0 = arith.constant 0 : i32
    %c0_i32_1 = arith.constant 0 : i32
    return %arg0, %arg1, %c0_i32, %c0_i32_0 : i32, i32, i32, i32
  }
  func.func @transform_9(%arg0: i32, %arg1: i32) -> (i32, i32, i32, i32) {
    %c0_i32 = arith.constant 0 : i32
    %c0_i32_0 = arith.constant 0 : i32
    %c0_i32_1 = arith.constant 0 : i32
    return %arg0, %arg1, %c0_i32, %c0_i32_0 : i32, i32, i32, i32
  }
  func.func @transform_10(%arg0: i32, %arg1: i32) -> (i32, i32, i32, i32) {
    %c0_i32 = arith.constant 0 : i32
    %c0_i32_0 = arith.constant 0 : i32
    %c0_i32_1 = arith.constant 0 : i32
    return %arg0, %arg1, %c0_i32, %c0_i32_0 : i32, i32, i32, i32
  }
  func.func @transform_11(%arg0: i32, %arg1: i32) -> (i32, i32, i32, i32) {
    %c0_i32 = arith.constant 0 : i32
    %c0_i32_0 = arith.constant 0 : i32
    %c0_i32_1 = arith.constant 0 : i32
    return %arg0, %arg1, %c0_i32, %c0_i32_0 : i32, i32, i32, i32
  }
  func.func @transform_12(%arg0: i32, %arg1: i32) -> (i32, i32, i32, i32) {
    %c0_i32 = arith.constant 0 : i32
    %c0_i32_0 = arith.constant 0 : i32
    %c0_i32_1 = arith.constant 0 : i32
    return %arg0, %arg1, %c0_i32, %c0_i32_0 : i32, i32, i32, i32
  }
  func.func @transform_13(%arg0: i32, %arg1: i32) -> (i32, i32, i32) {
    %c0_i32 = arith.constant 0 : i32
    %c0_i32_0 = arith.constant 0 : i32
    %c0_i32_1 = arith.constant 0 : i32
    return %arg0, %c0_i32, %c0_i32_0 : i32, i32, i32
  }
}

module attributes {stable_mosaic.version = 11 : i64} {
  func.func @_proj_kernel(%arg0: i32, %arg1: memref<1x2x64xf32, #tpu.memory_space<vmem>>, %arg2: memref<1x64x32xbf16, #tpu.memory_space<vmem>>, %arg3: memref<1x1x32xf32, #tpu.memory_space<vmem>>, %arg4: memref<1x32x10xbf16, #tpu.memory_space<vmem>>, %arg5: memref<1x1x10xf32, #tpu.memory_space<vmem>>, %arg6: memref<1x2x10xf32, #tpu.memory_space<vmem>>) attributes {dimension_semantics = [#tpu.dimension_semantics<parallel>], iteration_bounds = array<i64: 2>, scalar_prefetch = 0 : i64, scratch_operands = 0 : i64, tpu.core_type = #tpu.core_type<tc>, window_params = [{transform_indices = @transform_0, window_bounds = array<i64: 1, 2, 64>}, {transform_indices = @transform_1, window_bounds = array<i64: 1, 64, 32>}, {transform_indices = @transform_2, window_bounds = array<i64: 1, 1, 32>}, {transform_indices = @transform_3, window_bounds = array<i64: 1, 32, 10>}, {transform_indices = @transform_4, window_bounds = array<i64: 1, 1, 10>}, {transform_indices = @transform_5, window_bounds = array<i64: 1, 2, 10>}]} {
    %c0 = arith.constant 0 : index
    %c0_0 = arith.constant 0 : index
    %c0_1 = arith.constant 0 : index
    %0 = vector.load %arg1[%c0, %c0_0, %c0_1] : memref<1x2x64xf32, #tpu.memory_space<vmem>>, vector<1x2x64xf32>
    %1 = vector.shape_cast %0 : vector<1x2x64xf32> to vector<2x64xf32>
    %c0_2 = arith.constant 0 : index
    %c0_3 = arith.constant 0 : index
    %c0_4 = arith.constant 0 : index
    %2 = vector.load %arg2[%c0_2, %c0_3, %c0_4] : memref<1x64x32xbf16, #tpu.memory_space<vmem>>, vector<1x64x32xbf16>
    %3 = vector.shape_cast %2 : vector<1x64x32xbf16> to vector<64x32xbf16>
    %4 = arith.truncf %1 : vector<2x64xf32> to vector<2x64xbf16>
    %cst = arith.constant dense<0.000000e+00> : vector<2x32xf32>
    %5 = tpu.matmul %4, %3, %cst {dimension_numbers = #tpu.dot_dimension_numbers<[1], [0], [0], [1], [0, 0, 1, 1], [], []>} : vector<2x64xbf16>, vector<64x32xbf16>, vector<2x32xf32> -> vector<2x32xf32>
    %c0_5 = arith.constant 0 : index
    %c0_6 = arith.constant 0 : index
    %c0_7 = arith.constant 0 : index
    %6 = vector.load %arg3[%c0_5, %c0_6, %c0_7] : memref<1x1x32xf32, #tpu.memory_space<vmem>>, vector<1x1x32xf32>
    %7 = vector.shape_cast %6 : vector<1x1x32xf32> to vector<1x32xf32>
    %8 = vector.broadcast %7 : vector<1x32xf32> to vector<2x32xf32>
    %9 = arith.addf %5, %8 : vector<2x32xf32>
    %cst_8 = arith.constant 0.000000e+00 : f32
    %10 = vector.broadcast %cst_8 : f32 to vector<2x32xf32>
    %11 = arith.maximumf %9, %10 : vector<2x32xf32>
    %c0_9 = arith.constant 0 : index
    %c0_10 = arith.constant 0 : index
    %c0_11 = arith.constant 0 : index
    %12 = vector.load %arg4[%c0_9, %c0_10, %c0_11] : memref<1x32x10xbf16, #tpu.memory_space<vmem>>, vector<1x32x10xbf16>
    %13 = vector.shape_cast %12 : vector<1x32x10xbf16> to vector<32x10xbf16>
    %14 = arith.truncf %11 : vector<2x32xf32> to vector<2x32xbf16>
    %cst_12 = arith.constant dense<0.000000e+00> : vector<2x10xf32>
    %15 = tpu.matmul %14, %13, %cst_12 {dimension_numbers = #tpu.dot_dimension_numbers<[1], [0], [0], [1], [0, 0, 1, 1], [], []>} : vector<2x32xbf16>, vector<32x10xbf16>, vector<2x10xf32> -> vector<2x10xf32>
    %c0_13 = arith.constant 0 : index
    %c0_14 = arith.constant 0 : index
    %c0_15 = arith.constant 0 : index
    %16 = vector.load %arg5[%c0_13, %c0_14, %c0_15] : memref<1x1x10xf32, #tpu.memory_space<vmem>>, vector<1x1x10xf32>
    %17 = vector.shape_cast %16 : vector<1x1x10xf32> to vector<1x10xf32>
    %18 = vector.broadcast %17 : vector<1x10xf32> to vector<2x10xf32>
    %19 = arith.addf %15, %18 : vector<2x10xf32>
    %c0_16 = arith.constant 0 : index
    %c0_17 = arith.constant 0 : index
    %c0_18 = arith.constant 0 : index
    %20 = vector.load %arg6[%c0_16, %c0_17, %c0_18] : memref<1x2x10xf32, #tpu.memory_space<vmem>>, vector<1x2x10xf32>
    %21 = vector.shape_cast %20 : vector<1x2x10xf32> to vector<2x10xf32>
    %22 = vector.shape_cast %19 : vector<2x10xf32> to vector<1x2x10xf32>
    tpu.vector_store %arg6[%c0_16, %c0_17, %c0_18], %22 {strides = array<i32>} : memref<1x2x10xf32, #tpu.memory_space<vmem>>, vector<1x2x10xf32>,
    return
  }
  func.func @transform_0(%arg0: i32) -> (i32, i32, i32) {
    %c0_i32 = arith.constant 0 : i32
    %c0_i32_0 = arith.constant 0 : i32
    %c0_i32_1 = arith.constant 0 : i32
    return %arg0, %c0_i32, %c0_i32_0 : i32, i32, i32
  }
  func.func @transform_1(%arg0: i32) -> (i32, i32, i32) {
    %c0_i32 = arith.constant 0 : i32
    %c0_i32_0 = arith.constant 0 : i32
    %c0_i32_1 = arith.constant 0 : i32
    return %arg0, %c0_i32, %c0_i32_0 : i32, i32, i32
  }
  func.func @transform_2(%arg0: i32) -> (i32, i32, i32) {
    %c0_i32 = arith.constant 0 : i32
    %c0_i32_0 = arith.constant 0 : i32
    %c0_i32_1 = arith.constant 0 : i32
    return %arg0, %c0_i32, %c0_i32_0 : i32, i32, i32
  }
  func.func @transform_3(%arg0: i32) -> (i32, i32, i32) {
    %c0_i32 = arith.constant 0 : i32
    %c0_i32_0 = arith.constant 0 : i32
    %c0_i32_1 = arith.constant 0 : i32
    return %arg0, %c0_i32, %c0_i32_0 : i32, i32, i32
  }
  func.func @transform_4(%arg0: i32) -> (i32, i32, i32) {
    %c0_i32 = arith.constant 0 : i32
    %c0_i32_0 = arith.constant 0 : i32
    %c0_i32_1 = arith.constant 0 : i32
    return %arg0, %c0_i32, %c0_i32_0 : i32, i32, i32
  }
  func.func @transform_5(%arg0: i32) -> (i32, i32, i32) {
    %c0_i32 = arith.constant 0 : i32
    %c0_i32_0 = arith.constant 0 : i32
    %c0_i32_1 = arith.constant 0 : i32
    return %arg0, %c0_i32, %c0_i32_0 : i32, i32, i32
  }
}

module attributes {stable_mosaic.version = 11 : i64} {
  func.func @_proj_kernel(%arg0: i32, %arg1: memref<1x2x128xf32, #tpu.memory_space<vmem>>, %arg2: memref<1x128x32xbf16, #tpu.memory_space<vmem>>, %arg3: memref<1x1x32xf32, #tpu.memory_space<vmem>>, %arg4: memref<1x32x10xbf16, #tpu.memory_space<vmem>>, %arg5: memref<1x1x10xf32, #tpu.memory_space<vmem>>, %arg6: memref<1x2x10xf32, #tpu.memory_space<vmem>>) attributes {dimension_semantics = [#tpu.dimension_semantics<parallel>], iteration_bounds = array<i64: 1>, scalar_prefetch = 0 : i64, scratch_operands = 0 : i64, tpu.core_type = #tpu.core_type<tc>, window_params = [{transform_indices = @transform_0, window_bounds = array<i64: 1, 2, 128>}, {transform_indices = @transform_1, window_bounds = array<i64: 1, 128, 32>}, {transform_indices = @transform_2, window_bounds = array<i64: 1, 1, 32>}, {transform_indices = @transform_3, window_bounds = array<i64: 1, 32, 10>}, {transform_indices = @transform_4, window_bounds = array<i64: 1, 1, 10>}, {transform_indices = @transform_5, window_bounds = array<i64: 1, 2, 10>}]} {
    %c0 = arith.constant 0 : index
    %c0_0 = arith.constant 0 : index
    %c0_1 = arith.constant 0 : index
    %0 = vector.load %arg1[%c0, %c0_0, %c0_1] : memref<1x2x128xf32, #tpu.memory_space<vmem>>, vector<1x2x128xf32>
    %1 = vector.shape_cast %0 : vector<1x2x128xf32> to vector<2x128xf32>
    %c0_2 = arith.constant 0 : index
    %c0_3 = arith.constant 0 : index
    %c0_4 = arith.constant 0 : index
    %2 = vector.load %arg2[%c0_2, %c0_3, %c0_4] : memref<1x128x32xbf16, #tpu.memory_space<vmem>>, vector<1x128x32xbf16>
    %3 = vector.shape_cast %2 : vector<1x128x32xbf16> to vector<128x32xbf16>
    %4 = arith.truncf %1 : vector<2x128xf32> to vector<2x128xbf16>
    %cst = arith.constant dense<0.000000e+00> : vector<2x32xf32>
    %5 = tpu.matmul %4, %3, %cst {dimension_numbers = #tpu.dot_dimension_numbers<[1], [0], [0], [1], [0, 0, 1, 1], [], []>} : vector<2x128xbf16>, vector<128x32xbf16>, vector<2x32xf32> -> vector<2x32xf32>
    %c0_5 = arith.constant 0 : index
    %c0_6 = arith.constant 0 : index
    %c0_7 = arith.constant 0 : index
    %6 = vector.load %arg3[%c0_5, %c0_6, %c0_7] : memref<1x1x32xf32, #tpu.memory_space<vmem>>, vector<1x1x32xf32>
    %7 = vector.shape_cast %6 : vector<1x1x32xf32> to vector<1x32xf32>
    %8 = vector.broadcast %7 : vector<1x32xf32> to vector<2x32xf32>
    %9 = arith.addf %5, %8 : vector<2x32xf32>
    %cst_8 = arith.constant 0.000000e+00 : f32
    %10 = vector.broadcast %cst_8 : f32 to vector<2x32xf32>
    %11 = arith.maximumf %9, %10 : vector<2x32xf32>
    %c0_9 = arith.constant 0 : index
    %c0_10 = arith.constant 0 : index
    %c0_11 = arith.constant 0 : index
    %12 = vector.load %arg4[%c0_9, %c0_10, %c0_11] : memref<1x32x10xbf16, #tpu.memory_space<vmem>>, vector<1x32x10xbf16>
    %13 = vector.shape_cast %12 : vector<1x32x10xbf16> to vector<32x10xbf16>
    %14 = arith.truncf %11 : vector<2x32xf32> to vector<2x32xbf16>
    %cst_12 = arith.constant dense<0.000000e+00> : vector<2x10xf32>
    %15 = tpu.matmul %14, %13, %cst_12 {dimension_numbers = #tpu.dot_dimension_numbers<[1], [0], [0], [1], [0, 0, 1, 1], [], []>} : vector<2x32xbf16>, vector<32x10xbf16>, vector<2x10xf32> -> vector<2x10xf32>
    %c0_13 = arith.constant 0 : index
    %c0_14 = arith.constant 0 : index
    %c0_15 = arith.constant 0 : index
    %16 = vector.load %arg5[%c0_13, %c0_14, %c0_15] : memref<1x1x10xf32, #tpu.memory_space<vmem>>, vector<1x1x10xf32>
    %17 = vector.shape_cast %16 : vector<1x1x10xf32> to vector<1x10xf32>
    %18 = vector.broadcast %17 : vector<1x10xf32> to vector<2x10xf32>
    %19 = arith.addf %15, %18 : vector<2x10xf32>
    %c0_16 = arith.constant 0 : index
    %c0_17 = arith.constant 0 : index
    %c0_18 = arith.constant 0 : index
    %20 = vector.load %arg6[%c0_16, %c0_17, %c0_18] : memref<1x2x10xf32, #tpu.memory_space<vmem>>, vector<1x2x10xf32>
    %21 = vector.shape_cast %20 : vector<1x2x10xf32> to vector<2x10xf32>
    %22 = vector.shape_cast %19 : vector<2x10xf32> to vector<1x2x10xf32>
    tpu.vector_store %arg6[%c0_16, %c0_17, %c0_18], %22 {strides = array<i32>} : memref<1x2x10xf32, #tpu.memory_space<vmem>>, vector<1x2x10xf32>,
    return
  }
  func.func @transform_0(%arg0: i32) -> (i32, i32, i32) {
    %c0_i32 = arith.constant 0 : i32
    %c0_i32_0 = arith.constant 0 : i32
    %c0_i32_1 = arith.constant 0 : i32
    return %arg0, %c0_i32, %c0_i32_0 : i32, i32, i32
  }
  func.func @transform_1(%arg0: i32) -> (i32, i32, i32) {
    %c0_i32 = arith.constant 0 : i32
    %c0_i32_0 = arith.constant 0 : i32
    %c0_i32_1 = arith.constant 0 : i32
    return %arg0, %c0_i32, %c0_i32_0 : i32, i32, i32
  }
  func.func @transform_2(%arg0: i32) -> (i32, i32, i32) {
    %c0_i32 = arith.constant 0 : i32
    %c0_i32_0 = arith.constant 0 : i32
    %c0_i32_1 = arith.constant 0 : i32
    return %arg0, %c0_i32, %c0_i32_0 : i32, i32, i32
  }
  func.func @transform_3(%arg0: i32) -> (i32, i32, i32) {
    %c0_i32 = arith.constant 0 : i32
    %c0_i32_0 = arith.constant 0 : i32
    %c0_i32_1 = arith.constant 0 : i32
    return %arg0, %c0_i32, %c0_i32_0 : i32, i32, i32
  }
  func.func @transform_4(%arg0: i32) -> (i32, i32, i32) {
    %c0_i32 = arith.constant 0 : i32
    %c0_i32_0 = arith.constant 0 : i32
    %c0_i32_1 = arith.constant 0 : i32
    return %arg0, %c0_i32, %c0_i32_0 : i32, i32, i32
  }
  func.func @transform_5(%arg0: i32) -> (i32, i32, i32) {
    %c0_i32 = arith.constant 0 : i32
    %c0_i32_0 = arith.constant 0 : i32
    %c0_i32_1 = arith.constant 0 : i32
    return %arg0, %c0_i32, %c0_i32_0 : i32, i32, i32
  }
}

module attributes {stable_mosaic.version = 11 : i64} {
  func.func @_proj_kernel(%arg0: i32, %arg1: memref<1x4x32xf32, #tpu.memory_space<vmem>>, %arg2: memref<1x32x32xbf16, #tpu.memory_space<vmem>>, %arg3: memref<1x1x32xf32, #tpu.memory_space<vmem>>, %arg4: memref<1x32x10xbf16, #tpu.memory_space<vmem>>, %arg5: memref<1x1x10xf32, #tpu.memory_space<vmem>>, %arg6: memref<1x4x10xf32, #tpu.memory_space<vmem>>) attributes {dimension_semantics = [#tpu.dimension_semantics<parallel>], iteration_bounds = array<i64: 2>, scalar_prefetch = 0 : i64, scratch_operands = 0 : i64, tpu.core_type = #tpu.core_type<tc>, window_params = [{transform_indices = @transform_0, window_bounds = array<i64: 1, 4, 32>}, {transform_indices = @transform_1, window_bounds = array<i64: 1, 32, 32>}, {transform_indices = @transform_2, window_bounds = array<i64: 1, 1, 32>}, {transform_indices = @transform_3, window_bounds = array<i64: 1, 32, 10>}, {transform_indices = @transform_4, window_bounds = array<i64: 1, 1, 10>}, {transform_indices = @transform_5, window_bounds = array<i64: 1, 4, 10>}]} {
    %c0 = arith.constant 0 : index
    %c0_0 = arith.constant 0 : index
    %c0_1 = arith.constant 0 : index
    %0 = vector.load %arg1[%c0, %c0_0, %c0_1] : memref<1x4x32xf32, #tpu.memory_space<vmem>>, vector<1x4x32xf32>
    %1 = vector.shape_cast %0 : vector<1x4x32xf32> to vector<4x32xf32>
    %c0_2 = arith.constant 0 : index
    %c0_3 = arith.constant 0 : index
    %c0_4 = arith.constant 0 : index
    %2 = vector.load %arg2[%c0_2, %c0_3, %c0_4] : memref<1x32x32xbf16, #tpu.memory_space<vmem>>, vector<1x32x32xbf16>
    %3 = vector.shape_cast %2 : vector<1x32x32xbf16> to vector<32x32xbf16>
    %4 = arith.truncf %1 : vector<4x32xf32> to vector<4x32xbf16>
    %cst = arith.constant dense<0.000000e+00> : vector<4x32xf32>
    %5 = tpu.matmul %4, %3, %cst {dimension_numbers = #tpu.dot_dimension_numbers<[1], [0], [0], [1], [0, 0, 1, 1], [], []>} : vector<4x32xbf16>, vector<32x32xbf16>, vector<4x32xf32> -> vector<4x32xf32>
    %c0_5 = arith.constant 0 : index
    %c0_6 = arith.constant 0 : index
    %c0_7 = arith.constant 0 : index
    %6 = vector.load %arg3[%c0_5, %c0_6, %c0_7] : memref<1x1x32xf32, #tpu.memory_space<vmem>>, vector<1x1x32xf32>
    %7 = vector.shape_cast %6 : vector<1x1x32xf32> to vector<1x32xf32>
    %8 = vector.broadcast %7 : vector<1x32xf32> to vector<4x32xf32>
    %9 = arith.addf %5, %8 : vector<4x32xf32>
    %cst_8 = arith.constant 0.000000e+00 : f32
    %10 = vector.broadcast %cst_8 : f32 to vector<4x32xf32>
    %11 = arith.maximumf %9, %10 : vector<4x32xf32>
    %c0_9 = arith.constant 0 : index
    %c0_10 = arith.constant 0 : index
    %c0_11 = arith.constant 0 : index
    %12 = vector.load %arg4[%c0_9, %c0_10, %c0_11] : memref<1x32x10xbf16, #tpu.memory_space<vmem>>, vector<1x32x10xbf16>
    %13 = vector.shape_cast %12 : vector<1x32x10xbf16> to vector<32x10xbf16>
    %14 = arith.truncf %11 : vector<4x32xf32> to vector<4x32xbf16>
    %cst_12 = arith.constant dense<0.000000e+00> : vector<4x10xf32>
    %15 = tpu.matmul %14, %13, %cst_12 {dimension_numbers = #tpu.dot_dimension_numbers<[1], [0], [0], [1], [0, 0, 1, 1], [], []>} : vector<4x32xbf16>, vector<32x10xbf16>, vector<4x10xf32> -> vector<4x10xf32>
    %c0_13 = arith.constant 0 : index
    %c0_14 = arith.constant 0 : index
    %c0_15 = arith.constant 0 : index
    %16 = vector.load %arg5[%c0_13, %c0_14, %c0_15] : memref<1x1x10xf32, #tpu.memory_space<vmem>>, vector<1x1x10xf32>
    %17 = vector.shape_cast %16 : vector<1x1x10xf32> to vector<1x10xf32>
    %18 = vector.broadcast %17 : vector<1x10xf32> to vector<4x10xf32>
    %19 = arith.addf %15, %18 : vector<4x10xf32>
    %c0_16 = arith.constant 0 : index
    %c0_17 = arith.constant 0 : index
    %c0_18 = arith.constant 0 : index
    %20 = vector.load %arg6[%c0_16, %c0_17, %c0_18] : memref<1x4x10xf32, #tpu.memory_space<vmem>>, vector<1x4x10xf32>
    %21 = vector.shape_cast %20 : vector<1x4x10xf32> to vector<4x10xf32>
    %22 = vector.shape_cast %19 : vector<4x10xf32> to vector<1x4x10xf32>
    tpu.vector_store %arg6[%c0_16, %c0_17, %c0_18], %22 {strides = array<i32>} : memref<1x4x10xf32, #tpu.memory_space<vmem>>, vector<1x4x10xf32>,
    return
  }
  func.func @transform_0(%arg0: i32) -> (i32, i32, i32) {
    %c0_i32 = arith.constant 0 : i32
    %c0_i32_0 = arith.constant 0 : i32
    %c0_i32_1 = arith.constant 0 : i32
    return %arg0, %c0_i32, %c0_i32_0 : i32, i32, i32
  }
  func.func @transform_1(%arg0: i32) -> (i32, i32, i32) {
    %c0_i32 = arith.constant 0 : i32
    %c0_i32_0 = arith.constant 0 : i32
    %c0_i32_1 = arith.constant 0 : i32
    return %arg0, %c0_i32, %c0_i32_0 : i32, i32, i32
  }
  func.func @transform_2(%arg0: i32) -> (i32, i32, i32) {
    %c0_i32 = arith.constant 0 : i32
    %c0_i32_0 = arith.constant 0 : i32
    %c0_i32_1 = arith.constant 0 : i32
    return %arg0, %c0_i32, %c0_i32_0 : i32, i32, i32
  }
  func.func @transform_3(%arg0: i32) -> (i32, i32, i32) {
    %c0_i32 = arith.constant 0 : i32
    %c0_i32_0 = arith.constant 0 : i32
    %c0_i32_1 = arith.constant 0 : i32
    return %arg0, %c0_i32, %c0_i32_0 : i32, i32, i32
  }
  func.func @transform_4(%arg0: i32) -> (i32, i32, i32) {
    %c0_i32 = arith.constant 0 : i32
    %c0_i32_0 = arith.constant 0 : i32
    %c0_i32_1 = arith.constant 0 : i32
    return %arg0, %c0_i32, %c0_i32_0 : i32, i32, i32
  }
  func.func @transform_5(%arg0: i32) -> (i32, i32, i32) {
    %c0_i32 = arith.constant 0 : i32
    %c0_i32_0 = arith.constant 0 : i32
    %c0_i32_1 = arith.constant 0 : i32
    return %arg0, %c0_i32, %c0_i32_0 : i32, i32, i32
  }
}

</mosaic_0001>

<bundles_post_ra>
// kernel: _lambda_.7
= control target key start
LH: loop header
LB: loop body
LE: loop exit
PB: predicated region body
PF: predicated region fallthrough
CT: control target
= control target key end

     0   :  { %s850_s24 = smov 0   ;;  %s912_s0 = inlined_call_operand.vmem [shape: f32[2,32,16], index: 0, kind: input, shape index: {}]   ;;  %s913_s1 = inlined_call_operand.vmem [shape: bf16[2,16,32], index: 1, kind: input, shape index: {}]   ;;  %s914_s2 = inlined_call_operand.vmem [shape: f32[2,1,32], index: 2, kind: input, shape index: {}]   ;;  %s915_s3 = inlined_call_operand.vmem [shape: f32[2,1,32], index: 3, kind: input, shape index: {}]   ;;  %s916_s4 = inlined_call_operand.vmem [shape: f32[2,1,32], index: 4, kind: input, shape index: {}]   ;;  %s917_s5 = inlined_call_operand.vmem [shape: bf16[2,32,32], index: 5, kind: input, shape index: {}]   ;;  %s918_s6 = inlined_call_operand.vmem [shape: f32[2,1,32], index: 6, kind: input, shape index: {}]   ;;  %s919_s7 = inlined_call_operand.vmem [shape: f32[2,32,32], index: 7, kind: output, shape index: {}]  }
   0x1 LB: > { %s732_s25 = sadd.s32 4294967295, %s808_s24   ;;  %p736_p0 = scmp.ge.s32.totalorder %s808_s24, 1  ;;  %s808_s24 = sphi %s850_s24, %s17_s24  }
   0x2   : > { %p289_p1 = scmp.lt.s32.totalorder %s808_s24, 3 }
   0x4   : > { %p290_p2 = pnand %p736_p0, %p289_p1 }
   0x5   : > { %p343_p3 = scmp.lt.s32.totalorder (!%p290_p2), %s732_s25, 1  ;;  %vm397_vm0 = vcmask (!%p290_p2), 130048   ;;  %vm455_vm1 = vcmask (!%p290_p2), 261120  }
   0x6   : > { %293 = sbr.rel (%p290_p2) target bundleno = 779 (0x30b), region = 48 }
   0xd   : > { %s921_s25 = smov (!%p343_p3, %s732_s25), 1 }
   0xe   : > { %s759_s26 = sshll.u32 %s921_s25, 3  ;;  %s758_s27 = sshll.u32 %s921_s25, 5 }
   0xf   : > { %s352_s30 = scalar_lea.vmem %s913_s1, %s759_s26  ;;  %s347_s10 = scalar_lea.vmem %s912_s0, %s758_s27 }
  0x10   : > { %v791_v0 = vld [vmem:[%s352_s30] sm:$0xff]   ;;  %v377_v2 = vld [vmem:[%s347_s10 + $0x8] sm:$0xff]  ;;  %v378_v3 = vld [vmem:[%s347_s10 + $0x10] sm:$0xff]  ;;  %s355_s13 = scalar_lea.vmem %s914_s2, %s921_s25  ;;  %s760_s14 = sshll.u32 %s921_s25, 4 }
  0x11   : > { %v376_v1 = vld [vmem:[%s347_s10] sm:$0xff]  ;;  %769 = vmatprep.subr.bf16.mxu0 %v791_v0  ;;  %v379_v5 = vld [vmem:[%s347_s10 + $0x18] sm:$0xff]  ;;  %s366_s17 = scalar_lea.vmem %s917_s5, %s760_s14  ;;  %s358_s20 = scalar_lea.vmem %s915_s3, %s921_s25 }
  0x12   : > { %v382_v4 = vpack.c.bf16 %v377_v2, %v376_v1  ;;  %770 = vmatpush3.bf16.msra.mxu0 %v791_v0  ;;  %v383_v6 = vpack.c.bf16 %v379_v5, %v378_v3  ;;  %v745_v7 = vld [vmem:[%s355_s13] ss:$0 sm:$0xff]  ;;  %v793_v41 = vld [vmem:[%s366_s17 + $0x8] sm:$0xff]   ;;  %s361_s23 = scalar_lea.vmem %s916_s4, %s921_s25  ;;  %s369_s29 = scalar_lea.vmem %s918_s6, %s921_s25 }
  0x13   : > { %v792_v40 = vld [vmem:[%s366_s17] sm:$0xff]   ;;  %s374_s9 = scalar_lea.vmem %s919_s7, %s758_s27 }
  0x14   : > { %771 = vmatprep.mubr.msk.bf16.mxu0 %vm397_vm0, %v382_v4  ;;  %775 = vmatprep.subr.bf16.mxu1 %v792_v40  ;;  %v749_v55 = vld [vmem:[%s358_s20] ss:$0 sm:$0xff] }
  0x15   : > { %772 = vmatmul.mubr.msk.bf16.vlgmr.msra.gmra.mrb[0].mxu0 %vm397_vm0, %v383_v6  ;;  %776 = vmatpush3.bf16.msra.mxu1 %v792_v40  ;;  %v750_v59 = vld [vmem:[%s361_s23] ss:$0 sm:$0xff] }
  0x16   : > { %777 = vmatprep.subr.bf16.mxu1 %v793_v41 }
  0x19   : > { %778 = vmatpush3.bf16.msra.mxu1 %v793_v41 }
  0xe8   : > { %v773_v8 = vpop.f32.mrb[0].mxu0 }
  0xe9   : > { %v447_v9 = vadd.f32 %v773_v8, %v745_v7  ;;  %v438_v10 = vpop.f32.mrb[1].mxu0 }
  0xea   : > { %v439_v11 = vadd.f32 %v745_v7, %v438_v10  ;;  %v774_v12 = vpop.f32.mrb[2].mxu0 }
  0xeb   : > { %v450_v13 = vadd.f32 %v774_v12, %v745_v7  ;;  %v441_v14 = vpop.f32.mrb[3].mxu0  ;;  %v462_v15 = vsel %vm455_vm1, %v447_v9, 0.0 }
  0xec   : > { %v442_v16 = vadd.f32 %v745_v7, %v441_v14  ;;  %463 = vadd.xlane.f32.xlu1 %v462_v15  ;;  %v456_v17 = vsel %vm455_vm1, %v439_v11, 0.0  ;;  %v751_v14 = vld [vmem:[%s369_s29] ss:$0 sm:$0xff] }
  0xed   : > { %457 = vadd.xlane.f32.xlu0 %v456_v17  ;;  %v465_v18 = vsel %vm455_vm1, %v450_v13, 0.0 }
  0xee   : > { %v459_v19 = vsel %vm455_vm1, %v442_v16, 0.0 }
  0xf0   : > { %466 = vadd.xlane.f32.xlu1 %v465_v18 }
  0xf1   : > { %460 = vadd.xlane.f32.xlu0 %v459_v19 }
 0x179   : > { %v464_v20 = vpop.xlane.xlu1 %463 }
 0x17a   : > { %v471_v21 = vmul.f32 0.03125, %v464_v20  ;;  %v458_v22 = vpop.xlane.xlu0 %457 }
 0x17b   : > { %v469_v23 = vmul.f32 0.03125, %v458_v22 }
 0x17c   : > { %v475_v24 = vsub.f32 %v447_v9, %v471_v21 }
 0x17d   : > { %v473_v25 = vsub.f32 %v439_v11, %v469_v23  ;;  %v467_v26 = vpop.xlane.xlu1 %466 }
 0x17e   : > { %v472_v27 = vmul.f32 0.03125, %v467_v26  ;;  %v461_v28 = vpop.xlane.xlu0 %460  ;;  %v479_v34 = vmul.f32 %v475_v24, %v475_v24 }
 0x17f   : > { %v470_v29 = vmul.f32 0.03125, %v461_v28  ;;  %v477_v30 = vmul.f32 %v473_v25, %v473_v25 }
 0x180   : > { %v476_v31 = vsub.f32 %v450_v13, %v472_v27  ;;  %v487_v36 = vsel %vm455_vm1, %v479_v34, 0.0 }
 0x181   : > { %v474_v32 = vsub.f32 %v442_v16, %v470_v29  ;;  %v481_v33 = vsel %vm455_vm1, %v477_v30, 0.0 }
 0x182   : > { %482 = vadd.xlane.f32.xlu0 %v481_v33  ;;  %v480_v38 = vmul.f32 %v476_v31, %v476_v31 }
 0x183   : > { %v478_v35 = vmul.f32 %v474_v32, %v474_v32 }
 0x184   : > { %v490_v39 = vsel %vm455_vm1, %v480_v38, 0.0 }
 0x185   : > { %v484_v37 = vsel %vm455_vm1, %v478_v35, 0.0 }
 0x186   : > { %488 = vadd.xlane.f32.xlu0 %v487_v36  ;;  %485 = vadd.xlane.f32.xlu1 %v484_v37 }
 0x18a   : > { %491 = vadd.xlane.f32.xlu1 %v490_v39 }
 0x20f   : > { %v483_v42 = vpop.xlane.xlu0 %482 }
 0x210   : > { %v493_v43 = vmul.f32 0.03125, %v483_v42 }
 0x212   : > { %v497_v44 = vadd.f32 1e-05, %v493_v43 }
 0x213   : > { %v486_v45 = vpop.xlane.xlu1 %485  ;;  %v489_v46 = vpop.xlane.xlu0 %488 }
 0x214   : > { %794 = vrsqrt.f32 %v497_v44  ;;  %v494_v47 = vmul.f32 0.03125, %v486_v45  ;;  %v495_v48 = vmul.f32 0.03125, %v489_v46 }
 0x216   : > { %v498_v49 = vadd.f32 1e-05, %v494_v47  ;;  %v499_v50 = vadd.f32 1e-05, %v495_v48 }
 0x217   : > { %v492_v51 = vpop.xlane.xlu1 %491 }
 0x218   : > { %796 = vrsqrt.f32 %v498_v49  ;;  %v496_v52 = vmul.f32 0.03125, %v492_v51 }
 0x219   : > { %798 = vrsqrt.f32 %v499_v50 }
 0x21a   : > { %v500_v53 = vadd.f32 1e-05, %v496_v52 }
 0x21c   : > { %800 = vrsqrt.f32 %v500_v53 }
 0x21e   : > { %v795_v54 = vpop.eup %794 }
 0x21f   : > { %v505_v56 = vmul.f32 %v795_v54, %v473_v25 }
 0x221   : > { %v515_v57 = vmul.f32 %v749_v55, %v505_v56 }
 0x222   : > { %v797_v58 = vpop.eup %796 }
 0x223   : > { %v799_v60 = vpop.eup %798  ;;  %v506_v61 = vmul.f32 %v797_v58, %v474_v32  ;;  %v525_v0 = vadd.f32 %v750_v59, %v515_v57 }
 0x224   : > { %v507_v62 = vmul.f32 %v799_v60, %v475_v24 }
 0x225   : > { %v516_v63 = vmul.f32 %v749_v55, %v506_v61  ;;  %v529_v5 = vmax.f32 %v525_v0, 0.0 }
 0x226   : > { %v801_v1 = vpop.eup %800  ;;  %v517_v2 = vmul.f32 %v749_v55, %v507_v62 }
 0x227   : > { %v508_v3 = vmul.f32 %v801_v1, %v476_v31  ;;  %v526_v4 = vadd.f32 %v750_v59, %v516_v63 }
 0x228   : > { %v527_v8 = vadd.f32 %v750_v59, %v517_v2 }
 0x229   : > { %v530_v6 = vmax.f32 %v526_v4, 0.0  ;;  %v518_v7 = vmul.f32 %v749_v55, %v508_v3 }
 0x22a   : > { %v531_v11 = vmax.f32 %v527_v8, 0.0 }
 0x22b   : > { %v537_v9 = vpack.c.bf16 %v530_v6, %v529_v5  ;;  %v528_v10 = vadd.f32 %v750_v59, %v518_v7 }
 0x22d   : > { %779 = vmatprep.mubr.msk.bf16.mxu1 %vm455_vm1, %v537_v9  ;;  %v532_v12 = vmax.f32 %v528_v10, 0.0 }
 0x22f   : > { %v538_v13 = vpack.c.bf16 %v532_v12, %v531_v11 }
 0x231   : > { %780 = vmatmul.mubr.msk.bf16.vlgmr.msra.gmra.mrb[0].mxu1 %vm455_vm1, %v538_v13 }
 0x304   : > { %v781_v15 = vpop.f32.mrb[0].mxu1 }
 0x305   : > { %v607_v16 = vadd.f32 %v781_v15, %v751_v14  ;;  %v598_v17 = vpop.f32.mrb[1].mxu1 }
 0x306   : > { %v599_v18 = vadd.f32 %v751_v14, %v598_v17  ;;  %v782_v19 = vpop.f32.mrb[2].mxu1 }
 0x307   : > { %615 = vst.msk [vmem:[%s374_s9 + $0x10] sm:$0xff] %vm455_vm1, %v607_v16  ;;  %v610_v20 = vadd.f32 %v782_v19, %v751_v14  ;;  %v601_v21 = vpop.f32.mrb[3].mxu1 }
 0x308   : > { %613 = vst.msk [vmem:[%s374_s9] sm:$0xff] %vm455_vm1, %v599_v18  ;;  %v602_v22 = vadd.f32 %v751_v14, %v601_v21 }
 0x309   : > { %616 = vst.msk [vmem:[%s374_s9 + $0x18] sm:$0xff] %vm455_vm1, %v610_v20 }
 0x30a   : > { %614 = vst.msk [vmem:[%s374_s9 + $0x8] sm:$0xff] %vm455_vm1, %v602_v22 }
 0x30b PF: > { %s17_s24 = sadd.s32 1, %s808_s24  }
 0x30c   : > { %p14_p4 = scmp.ge.s32.totalorder %s17_s24, 4  }
 0x30e   :  { %16 = sbr.rel (!%p14_p4) target bundleno = 1 (0x1), region = 96 }

// kernel: _lambda_.9
= control target key start
LH: loop header
LB: loop body
LE: loop exit
PB: predicated region body
PF: predicated region fallthrough
CT: control target
= control target key end

     0   :  { %s866_s18 = smov 0   ;;  %s998_s0 = inlined_call_operand.vmem [shape: f32[2,32,32], index: 0, kind: input, shape index: {}]   ;;  %s999_s1 = inlined_call_operand.vmem [shape: f32[2,3,32], index: 1, kind: input, shape index: {}]   ;;  %s1000_s2 = inlined_call_operand.vmem [shape: f32[2,1,32], index: 2, kind: input, shape index: {}, may-alias: {2,4}]   ;;  %s1001_s3 = inlined_call_operand.vmem [shape: f32[2,1,32], index: 3, kind: input, shape index: {}]   ;;  %s1002_s4 = inlined_call_operand.vmem [shape: f32[2,1,32], index: 4, kind: input, shape index: {}, may-alias: {2,4}]   ;;  %s1003_s5 = inlined_call_operand.vmem [shape: f32[2,16,32], index: 5, kind: output, shape index: {}]  }
   0x1 LB: > { %s793_s19 = sadd.s32 4294967295, %s833_s18   ;;  %p797_p0 = scmp.ge.s32.totalorder %s833_s18, 1  ;;  %s833_s18 = sphi %s866_s18, %s15_s18  }
   0x2   : > { %p220_p1 = scmp.lt.s32.totalorder %s833_s18, 3 }
   0x4   : > { %p221_p2 = pnand %p797_p0, %p220_p1 }
   0x5   : > { %p261_p3 = scmp.lt.s32.totalorder (!%p221_p2), %s793_s19, 1  ;;  %v292_v0 = vlaneseq (!%p221_p2)  ;;  %vm379_vm4 = vcmask (!%p221_p2), 261120   ;;  %vm545_vm5 = vcmask (!%p221_p2), 254976   ;;  %vm674_vm6 = vcmask (!%p221_p2), 1041409  }
   0x6   : > { %224 = sbr.rel (%p221_p2) target bundleno = 394 (0x18a), region = 40  ;;  %vm676_vm7 = vcmask (!%p221_p2), 1042434   ;;  %vm678_vm8 = vcmask (!%p221_p2), 1043459   ;;  %vm680_vm9 = vcmask (!%p221_p2), 1044484   ;;  %vm682_vm10 = vcmask (!%p221_p2), 1045509  }
   0x7   : > { %v876_v1 = vshrl.u32 (!%p221_p2), %v292_v0, 7  ;;  %vm684_vm11 = vcmask (!%p221_p2), 1046534   ;;  %vm686_vm12 = vcmask (!%p221_p2), 1047559  }
   0x9   : > { %v316_v2 = vsub.s32 (!%p221_p2), 0, %v876_v1  ;;  %v328_v3 = vsub.s32 (!%p221_p2), 1, %v876_v1  ;;  %vm299_vm0 = vcmp.lt.s32.totalorder (!%p221_p2), %v876_v1, 1  ;;  %vm304_vm1 = vcmp.ge.s32.totalorder (!%p221_p2), %v876_v1, 1 }
   0xa   : > { %v359_v4 = vsub.s32 (!%p221_p2), 2, %v876_v1  ;;  %vm342_vm2 = vcmp.lt.s32.totalorder (!%p221_p2), %v876_v1, 7  ;;  %v294_v8 = vadd.s32 (!%p221_p2), 8, %v876_v1 }
   0xc   : > { %vm348_vm3 = vcmp.lt.s32.totalorder (!%p221_p2), %v294_v8, 15 }
   0xd   : > { %s1005_s19 = smov (!%p261_p3, %s793_s19), 1 }
   0xe   : > { %s808_s20 = sshll.u32 %s1005_s19, 5  ;;  %s800_s21 = sshll.u32 %s1005_s19, 2 }
   0xf   : > { %s265_s24 = scalar_lea.vmem %s998_s0, %s808_s20  ;;  %s269_s27 = scalar_lea.vmem %s999_s1, %s800_s21 }
  0x10   : > { %v284_v5 = vld [vmem:[%s269_s27] sm:$0x7]  ;;  %v289_v7 = vld [vmem:[%s265_s24 + $0x8] sm:$0xff]  ;;  %v291_v9 = vld [vmem:[%s265_s24 + $0x18] sm:$0xff]  ;;  %s272_s30 = scalar_lea.vmem %s1000_s2, %s1005_s19  ;;  %s275_s8 = scalar_lea.vmem %s1001_s3, %s1005_s19 }
  0x11   : > { %v288_v6 = vld [vmem:[%s265_s24] sm:$0xff]  ;;  %v317_v11 = vrot.slane %v284_v5, %v316_v2  ;;  %v329_v12 = vrot.slane %v284_v5, %v328_v3  ;;  %v290_v14 = vld [vmem:[%s265_s24 + $0x10] sm:$0xff]  ;;  %v298_v15 = vrot.slane %v291_v9, 7  ;;  %v339_v16 = vrot.slane %v289_v7, 1  ;;  %s278_s11 = scalar_lea.vmem %s1002_s4, %s1005_s19  ;;  %s809_s12 = sshll.u32 %s1005_s19, 4 }
  0x12   : > { %v295_v10 = vrot.slane %v288_v6, 7  ;;  %v338_v13 = vrot.slane %v288_v6, 1  ;;  %v360_v17 = vrot.slane %v284_v5, %v359_v4  ;;  %v296_v18 = vrot.slane %v289_v7, 7  ;;  %v803_v42 = vld [vmem:[%s272_s30] ss:$0 sm:$0xff]  ;;  %s973_s15 = scalar_lea.vmem %s1003_s5, %s809_s12 }
  0x13   : > { %v330_v19 = vmul.f32 %v329_v12, %v288_v6  ;;  %v297_v20 = vrot.slane %v290_v14, 7  ;;  %v332_v21 = vmul.f32 %v329_v12, %v290_v14  ;;  %v340_v22 = vrot.slane %v290_v14, 1 }
  0x14   : > { %v303_v23 = vsel %vm299_vm0, %v298_v15, %v295_v10  ;;  %v345_v24 = vsel %vm342_vm2, %v338_v13, %v339_v16  ;;  %v341_v25 = vrot.slane %v291_v9, 1  ;;  %v302_v26 = vsel %vm299_vm0, %v295_v10, %v296_v18 }
  0x15   : > { %v310_v27 = vsel %vm304_vm1, %v303_v23, 0.0  ;;  %v361_v28 = vmul.f32 %v360_v17, %v345_v24  ;;  %v301_v29 = vsel %vm299_vm0, %v296_v18, %v297_v20  ;;  %v319_v30 = vmul.f32 %v317_v11, %v302_v26 }
  0x16   : > { %v318_v31 = vmul.f32 %v317_v11, %v310_v27  ;;  %v312_v32 = vsel %vm304_vm1, %v301_v29, 0.0  ;;  %v343_v33 = vsel %vm342_vm2, %v340_v22, %v341_v25  ;;  %v331_v34 = vmul.f32 %v329_v12, %v289_v7 }
  0x17   : > { %v320_v35 = vmul.f32 %v317_v11, %v312_v32  ;;  %v363_v36 = vmul.f32 %v360_v17, %v343_v33  ;;  %v344_v37 = vsel %vm342_vm2, %v339_v16, %v340_v22  ;;  %v300_v41 = vsel %vm299_vm0, %v297_v20, %v298_v15 }
  0x18   : > { %v334_v38 = vadd.f32 %v330_v19, %v318_v31  ;;  %v335_v39 = vadd.f32 %v331_v34, %v319_v30  ;;  %v354_v40 = vsel %vm348_vm3, %v344_v37, 0.0  ;;  %v321_v45 = vmul.f32 %v317_v11, %v300_v41 }
  0x19   : > { %v336_v43 = vadd.f32 %v332_v21, %v320_v35  ;;  %v362_v44 = vmul.f32 %v360_v17, %v354_v40  ;;  %v333_v46 = vmul.f32 %v329_v12, %v291_v9  ;;  %v346_v48 = vsel %vm342_vm2, %v341_v25, %v338_v13  ;;  %v804_v35 = vld [vmem:[%s275_s8] ss:$0 sm:$0xff] }
  0x1a   : > { %v365_v47 = vadd.f32 %v361_v28, %v334_v38  ;;  %v356_v52 = vsel %vm348_vm3, %v346_v48, 0.0  ;;  %v835_v32 = vmov 1983009808   ;;  %v935_v38 = vld [vmem:[%s278_s11] ss:$0 sm:$0xff] }
  0x1b   : > { %v367_v49 = vadd.f32 %v363_v36, %v336_v43  ;;  %v366_v50 = vadd.f32 %v362_v44, %v335_v39  ;;  %v337_v51 = vadd.f32 %v333_v46, %v321_v45  ;;  %v364_v54 = vmul.f32 %v360_v17, %v356_v52 }
  0x1c   : > { %v375_v53 = vadd.f32 %v803_v42, %v365_v47  ;;  %v463_v33 = vunpack.c.l.s4 %v835_v32 }
  0x1d   : > { %v377_v55 = vadd.f32 %v803_v42, %v367_v49  ;;  %v376_v56 = vadd.f32 %v803_v42, %v366_v50  ;;  %v368_v58 = vadd.f32 %v364_v54, %v337_v51 }
  0x1e   : > { %v380_v57 = vsel %vm379_vm4, %v375_v53, 0.0  ;;  %v464_v36 = vunpack.c.0.s8 %v463_v33 }
  0x1f   : > { %381 = vadd.xlane.f32.xlu0 %v380_v57  ;;  %v383_v59 = vsel %vm379_vm4, %v376_v56, 0.0  ;;  %v386_v60 = vsel %vm379_vm4, %v377_v55, 0.0  ;;  %v378_v61 = vadd.f32 %v803_v42, %v368_v58 }
  0x20   : > { %384 = vadd.xlane.f32.xlu1 %v383_v59  ;;  %v938_v42 = vsub.s32 %v464_v36, %v876_v1 }
  0x21   : > { %v389_v62 = vsel %vm379_vm4, %v378_v61, 0.0 }
  0x23   : > { %387 = vadd.xlane.f32.xlu0 %v386_v60 }
  0x24   : > { %390 = vadd.xlane.f32.xlu1 %v389_v62 }
  0xac   : > { %v382_v63 = vpop.xlane.xlu0 %381 }
  0xad   : > { %v393_v0 = vmul.f32 0.03125, %v382_v63  ;;  %v385_v2 = vpop.xlane.xlu1 %384 }
  0xae   : > { %v394_v3 = vmul.f32 0.03125, %v385_v2 }
  0xaf   : > { %v397_v4 = vsub.f32 %v375_v53, %v393_v0 }
  0xb0   : > { %v388_v5 = vpop.xlane.xlu0 %387  ;;  %v398_v6 = vsub.f32 %v376_v56, %v394_v3 }
  0xb1   : > { %v395_v7 = vmul.f32 0.03125, %v388_v5  ;;  %v401_v8 = vmul.f32 %v397_v4, %v397_v4  ;;  %v391_v9 = vpop.xlane.xlu1 %390 }
  0xb2   : > { %v396_v10 = vmul.f32 0.03125, %v391_v9  ;;  %v402_v11 = vmul.f32 %v398_v6, %v398_v6 }
  0xb3   : > { %v399_v12 = vsub.f32 %v377_v55, %v395_v7  ;;  %v405_v13 = vsel %vm379_vm4, %v401_v8, 0.0 }
  0xb4   : > { %406 = vadd.xlane.f32.xlu0 %v405_v13  ;;  %v400_v14 = vsub.f32 %v378_v61, %v396_v10  ;;  %v408_v16 = vsel %vm379_vm4, %v402_v11, 0.0 }
  0xb5   : > { %v403_v15 = vmul.f32 %v399_v12, %v399_v12 }
  0xb6   : > { %v404_v17 = vmul.f32 %v400_v14, %v400_v14 }
  0xb7   : > { %v411_v18 = vsel %vm379_vm4, %v403_v15, 0.0 }
  0xb8   : > { %412 = vadd.xlane.f32.xlu1 %v411_v18  ;;  %409 = vadd.xlane.f32.xlu0 %v408_v16  ;;  %v414_v19 = vsel %vm379_vm4, %v404_v17, 0.0 }
  0xbc   : > { %415 = vadd.xlane.f32.xlu1 %v414_v19 }
 0x141   : > { %v407_v20 = vpop.xlane.xlu0 %406 }
 0x142   : > { %v417_v21 = vmul.f32 0.03125, %v407_v20 }
 0x144   : > { %v421_v22 = vadd.f32 1e-05, %v417_v21 }
 0x145   : > { %v410_v23 = vpop.xlane.xlu0 %409  ;;  %v413_v24 = vpop.xlane.xlu1 %412 }
 0x146   : > { %819 = vrsqrt.f32 %v421_v22  ;;  %v418_v25 = vmul.f32 0.03125, %v410_v23  ;;  %v419_v26 = vmul.f32 0.03125, %v413_v24 }
 0x148   : > { %v422_v27 = vadd.f32 1e-05, %v418_v25  ;;  %v423_v28 = vadd.f32 1e-05, %v419_v26 }
 0x149   : > { %v416_v29 = vpop.xlane.xlu1 %415 }
 0x14a   : > { %821 = vrsqrt.f32 %v422_v27  ;;  %v420_v30 = vmul.f32 0.03125, %v416_v29 }
 0x14b   : > { %823 = vrsqrt.f32 %v423_v28 }
 0x14c   : > { %v424_v31 = vadd.f32 1e-05, %v420_v30 }
 0x14e   : > { %825 = vrsqrt.f32 %v424_v31 }
 0x150   : > { %v820_v34 = vpop.eup %819 }
 0x151   : > { %v429_v37 = vmul.f32 %v820_v34, %v397_v4 }
 0x153   : > { %v439_v39 = vmul.f32 %v804_v35, %v429_v37 }
 0x154   : > { %v822_v40 = vpop.eup %821 }
 0x155   : > { %v824_v41 = vpop.eup %823  ;;  %v449_v43 = vadd.f32 %v935_v38, %v439_v39  ;;  %v430_v44 = vmul.f32 %v822_v40, %v398_v6 }
 0x156   : > { %v431_v45 = vmul.f32 %v824_v41, %v399_v12 }
 0x157   : > { %v453_v46 = vmax.f32 %v449_v43, 0.0  ;;  %v440_v47 = vmul.f32 %v804_v35, %v430_v44 }
 0x158   : > { %v826_v48 = vpop.eup %825  ;;  %v441_v49 = vmul.f32 %v804_v35, %v431_v45 }
 0x159   : > { %v461_v50 = vcombine.high %v453_v46, %v453_v46  ;;  %v468_v51 = vrot.slane %v453_v46, %v938_v42  ;;  %v450_v52 = vadd.f32 %v935_v38, %v440_v47  ;;  %v432_v53 = vmul.f32 %v826_v48, %v400_v14 }
 0x15a   : > { %v451_v54 = vadd.f32 %v935_v38, %v441_v49 }
 0x15b   : > { %v475_v1 = vrot.slane %v461_v50, %v938_v42  ;;  %v476_v55 = vcombine.high %v468_v51, %v468_v51  ;;  %v546_v56 = vsel %vm545_vm5, %v468_v51, -inf  ;;  %v454_v57 = vmax.f32 %v450_v52, 0.0 }
 0x15c   : > { %v547_v58 = vrot.slane %v546_v56, 4  ;;  %v455_v59 = vmax.f32 %v451_v54, 0.0  ;;  %v946_v60 = vmul.f32 %v804_v35, %v432_v53 }
 0x15d   : > { %v477_v61 = vcombine.high %v475_v1, %v475_v1  ;;  %v553_v62 = vsel %vm545_vm5, %v476_v55, -inf  ;;  %v560_v63 = vsel %vm545_vm5, %v475_v1, -inf  ;;  %v478_v0 = vcombine.high %v454_v57, %v454_v57 }
 0x15e   : > { %v548_v2 = vmax.f32 %v546_v56, %v547_v58  ;;  %v554_v3 = vrot.slane %v553_v62, 4  ;;  %v561_v4 = vrot.slane %v560_v63, 4  ;;  %v485_v5 = vrot.slane %v454_v57, %v938_v42 }
 0x15f   : > { %v567_v6 = vsel %vm545_vm5, %v477_v61, -inf  ;;  %v492_v7 = vrot.slane %v478_v0, %v938_v42  ;;  %v495_v8 = vcombine.high %v455_v59, %v455_v59  ;;  %v502_v9 = vrot.slane %v455_v59, %v938_v42 }
 0x160   : > { %v549_v10 = vrot.slane %v548_v2, 2  ;;  %v555_v11 = vmax.f32 %v553_v62, %v554_v3  ;;  %v562_v12 = vmax.f32 %v560_v63, %v561_v4  ;;  %v568_v13 = vrot.slane %v567_v6, 4 }
 0x161   : > { %v493_v14 = vcombine.high %v485_v5, %v485_v5  ;;  %v494_v15 = vcombine.high %v492_v7, %v492_v7  ;;  %v574_v16 = vsel %vm545_vm5, %v485_v5, -inf  ;;  %v588_v17 = vsel %vm545_vm5, %v492_v7, -inf }
 0x162   : > { %v550_v18 = vmax.f32 %v548_v2, %v549_v10  ;;  %v556_v19 = vrot.slane %v555_v11, 2  ;;  %v563_v20 = vrot.slane %v562_v12, 2  ;;  %v569_v21 = vmax.f32 %v567_v6, %v568_v13 }
 0x163   : > { %v575_v22 = vrot.slane %v574_v16, 4  ;;  %v581_v23 = vsel %vm545_vm5, %v493_v14, -inf  ;;  %v589_v24 = vrot.slane %v588_v17, 4  ;;  %v595_v25 = vsel %vm545_vm5, %v494_v15, -inf }
 0x164   : > { %v551_v26 = vrot.slane %v550_v18, 1  ;;  %v557_v27 = vmax.f32 %v555_v11, %v556_v19  ;;  %v564_v28 = vmax.f32 %v562_v12, %v563_v20  ;;  %v570_v29 = vrot.slane %v569_v21, 2 }
 0x165   : > { %v576_v30 = vmax.f32 %v574_v16, %v575_v22  ;;  %v582_v31 = vrot.slane %v581_v23, 4  ;;  %v590_v32 = vmax.f32 %v588_v17, %v589_v24  ;;  %v596_v33 = vrot.slane %v595_v25, 4 }
 0x166   : > { %v552_v34 = vmax.f32 %v550_v18, %v551_v26  ;;  %v558_v35 = vrot.slane %v557_v27, 1  ;;  %v565_v36 = vrot.slane %v564_v28, 1  ;;  %v571_v37 = vmax.f32 %v569_v21, %v570_v29 }
 0x167   : > { %v577_v39 = vrot.slane %v576_v30, 2  ;;  %v583_v40 = vmax.f32 %v581_v23, %v582_v31  ;;  %v591_v41 = vrot.slane %v590_v32, 2  ;;  %v597_v43 = vmax.f32 %v595_v25, %v596_v33 }
 0x168   : > { %v559_v44 = vmax.f32 %v557_v27, %v558_v35  ;;  %v566_v45 = vmax.f32 %v564_v28, %v565_v36  ;;  %v572_v46 = vrot.slane %v571_v37, 1  ;;  %v509_v47 = vrot.slane %v495_v8, %v938_v42 }
 0x169   : > { %v578_v48 = vmax.f32 %v576_v30, %v577_v39  ;;  %v584_v49 = vrot.slane %v583_v40, 2  ;;  %v592_v50 = vmax.f32 %v590_v32, %v591_v41  ;;  %v598_v51 = vrot.slane %v597_v43, 2 }
 0x16a   : > { %v573_v52 = vmax.f32 %v571_v37, %v572_v46  ;;  %v675_v53 = vsel %vm674_vm6, %v559_v44, %v552_v34  ;;  %v510_v54 = vcombine.high %v502_v9, %v502_v9  ;;  %v511_v1 = vcombine.high %v509_v47, %v509_v47 }
 0x16b   : > { %v677_v55 = vsel %vm676_vm7, %v566_v45, %v675_v53  ;;  %v579_v56 = vrot.slane %v578_v48, 1  ;;  %v585_v57 = vmax.f32 %v583_v40, %v584_v49  ;;  %v593_v58 = vrot.slane %v592_v50, 1 }
 0x16c   : > { %v679_v59 = vsel %vm678_vm8, %v573_v52, %v677_v55  ;;  %v599_v61 = vmax.f32 %v597_v43, %v598_v51  ;;  %v602_v62 = vsel %vm545_vm5, %v502_v9, -inf  ;;  %v609_v63 = vsel %vm545_vm5, %v510_v54, -inf }
 0x16d   : > { %v580_v0 = vmax.f32 %v578_v48, %v579_v56  ;;  %v586_v2 = vrot.slane %v585_v57, 1  ;;  %v594_v3 = vmax.f32 %v592_v50, %v593_v58  ;;  %v603_v4 = vrot.slane %v602_v62, 4 }
 0x16e   : > { %v600_v5 = vrot.slane %v599_v61, 1  ;;  %v610_v6 = vrot.slane %v609_v63, 4  ;;  %v616_v7 = vsel %vm545_vm5, %v509_v47, -inf  ;;  %v623_v8 = vsel %vm545_vm5, %v511_v1, -inf }
 0x16f   : > { %v587_v10 = vmax.f32 %v585_v57, %v586_v2  ;;  %v681_v11 = vsel %vm680_vm9, %v580_v0, %v679_v59  ;;  %v604_v12 = vmax.f32 %v602_v62, %v603_v4  ;;  %v617_v13 = vrot.slane %v616_v7, 4 }
 0x170   : > { %v601_v14 = vmax.f32 %v599_v61, %v600_v5  ;;  %v611_v9 = vmax.f32 %v609_v63, %v610_v6  ;;  %v624_v15 = vrot.slane %v623_v8, 4  ;;  %v452_v16 = vadd.f32 %v935_v38, %v946_v60 }
 0x171   : > { %v683_v17 = vsel %vm682_vm10, %v587_v10, %v681_v11  ;;  %v605_v18 = vrot.slane %v604_v12, 2  ;;  %v618_v19 = vmax.f32 %v616_v7, %v617_v13 }
 0x172   : > { %v685_v20 = vsel %vm684_vm11, %v594_v3, %v683_v17  ;;  %v612_v21 = vrot.slane %v611_v9, 2  ;;  %v625_v22 = vmax.f32 %v623_v8, %v624_v15  ;;  %v456_v23 = vmax.f32 %v452_v16, 0.0 }
 0x173   : > { %v687_v24 = vsel %vm686_vm12, %v601_v14, %v685_v20  ;;  %v606_v25 = vmax.f32 %v604_v12, %v605_v18  ;;  %v619_v26 = vrot.slane %v618_v19, 2 }
 0x174   : > { %697 = vst.msk [vmem:[%s973_s15] sm:$0xff] %vm379_vm4, %v687_v24  ;;  %v613_v38 = vmax.f32 %v611_v9, %v612_v21  ;;  %v626_v60 = vrot.slane %v625_v22, 2  ;;  %v512_v27 = vcombine.high %v456_v23, %v456_v23  ;;  %v519_v28 = vrot.slane %v456_v23, %v938_v42 }
 0x175   : > { %v607_v29 = vrot.slane %v606_v25, 1  ;;  %v620_v30 = vmax.f32 %v618_v19, %v619_v26 }
 0x176   : > { %v614_v31 = vrot.slane %v613_v38, 1  ;;  %v627_v32 = vmax.f32 %v625_v22, %v626_v60  ;;  %v526_v33 = vrot.slane %v512_v27, %v938_v42  ;;  %v527_v34 = vcombine.high %v519_v28, %v519_v28 }
 0x177   : > { %v621_v35 = vrot.slane %v620_v30, 1  ;;  %v630_v36 = vsel %vm545_vm5, %v519_v28, -inf  ;;  %v608_v41 = vmax.f32 %v606_v25, %v607_v29 }
 0x178   : > { %v615_v37 = vmax.f32 %v613_v38, %v614_v31  ;;  %v528_v39 = vcombine.high %v526_v33, %v526_v33  ;;  %v631_v40 = vrot.slane %v630_v36, 4  ;;  %v628_v43 = vrot.slane %v627_v32, 1 }
 0x179   : > { %v637_v44 = vsel %vm545_vm5, %v527_v34, -inf  ;;  %v644_v45 = vsel %vm545_vm5, %v526_v33, -inf  ;;  %v622_v46 = vmax.f32 %v620_v30, %v621_v35 }
 0x17a   : > { %v632_v47 = vmax.f32 %v630_v36, %v631_v40  ;;  %v638_v48 = vrot.slane %v637_v44, 4  ;;  %v688_v49 = vsel %vm674_vm6, %v615_v37, %v608_v41  ;;  %v645_v50 = vrot.slane %v644_v45, 4 }
 0x17b   : > { %v651_v42 = vsel %vm545_vm5, %v528_v39, -inf  ;;  %v629_v54 = vmax.f32 %v627_v32, %v628_v43  ;;  %v689_v55 = vsel %vm676_vm7, %v622_v46, %v688_v49 }
 0x17c   : > { %v633_v51 = vrot.slane %v632_v47, 2  ;;  %v639_v52 = vmax.f32 %v637_v44, %v638_v48  ;;  %v652_v53 = vrot.slane %v651_v42, 4  ;;  %v646_v1 = vmax.f32 %v644_v45, %v645_v50 }
 0x17d   : > { %v690_v0 = vsel %vm678_vm8, %v629_v54, %v689_v55 }
 0x17e   : > { %v634_v56 = vmax.f32 %v632_v47, %v633_v51  ;;  %v640_v57 = vrot.slane %v639_v52, 2  ;;  %v653_v58 = vmax.f32 %v651_v42, %v652_v53  ;;  %v647_v59 = vrot.slane %v646_v1, 2 }
 0x180   : > { %v635_v61 = vrot.slane %v634_v56, 1  ;;  %v641_v62 = vmax.f32 %v639_v52, %v640_v57  ;;  %v654_v63 = vrot.slane %v653_v58, 2  ;;  %v648_v2 = vmax.f32 %v646_v1, %v647_v59 }
 0x182   : > { %v636_v3 = vmax.f32 %v634_v56, %v635_v61  ;;  %v642_v4 = vrot.slane %v641_v62, 1  ;;  %v655_v5 = vmax.f32 %v653_v58, %v654_v63  ;;  %v649_v6 = vrot.slane %v648_v2, 1 }
 0x184   : > { %v643_v7 = vmax.f32 %v641_v62, %v642_v4  ;;  %v656_v8 = vrot.slane %v655_v5, 1  ;;  %v691_v10 = vsel %vm680_vm9, %v636_v3, %v690_v0  ;;  %v650_v11 = vmax.f32 %v648_v2, %v649_v6 }
 0x186   : > { %v657_v12 = vmax.f32 %v655_v5, %v656_v8  ;;  %v692_v13 = vsel %vm682_vm10, %v643_v7, %v691_v10 }
 0x187   : > { %v693_v14 = vsel %vm684_vm11, %v650_v11, %v692_v13 }
 0x188   : > { %v694_v9 = vsel %vm686_vm12, %v657_v12, %v693_v14 }
 0x189   : > { %698 = vst.msk [vmem:[%s973_s15 + $0x8] sm:$0xff] %vm379_vm4, %v694_v9 }
 0x18a PF: > { %s15_s18 = sadd.s32 1, %s833_s18  }
 0x18b   : > { %p12_p4 = scmp.ge.s32.totalorder %s15_s18, 4  }
 0x18d   :  { %14 = sbr.rel (!%p12_p4) target bundleno = 1 (0x1), region = 82 }

// kernel: squeeze.13
= control target key start
LH: loop header
LB: loop body
LE: loop exit
PB: predicated region body
PF: predicated region fallthrough
CT: control target
= control target key end

     0   :  { %s10_s10 = smov 3  ;;  %vm12_vm0 = vcmask 261120   ;;  %s29_s11 = smov 32   ;;  %vm19_vm1 = vcmask 523520   ;;  %s49_s0 = inlined_call_operand.vmem [shape: f32[1,2,2,32], index: 0, kind: input, shape index: {}]   ;;  %s50_s1 = inlined_call_operand.vmem [shape: f32[1,2,64], index: 1, kind: output, shape index: {}]  }
   0x1   :  { %v27_v0 = vld [vmem:[%s49_s0 + $0x2] sm:$0x3]  ;;  %v8_v1 = vld [vmem:[%s49_s0] sm:$0x3]  ;;  %s15_s0 = smov 3 }
   0x2   :  { %7 = vst [vmem:[#allocation1 + $0x8] sm:$0x3] %v27_v0  ;;  %9 = vst [vmem:[#allocation1] sm:$0x3] %v8_v1 }
   0x9   :  { %v16_v2 = vld [vmem:[#allocation1 + $0x1] ss:$8 sm:%s15_s0]   ;;  %v11_v3 = vld [vmem:[#allocation1] ss:$8 sm:%s10_s10]  }
   0xa   :  { %17 = vrot.lane.b32.xlu0 %v16_v2, %s29_s11  ;;  %13 = vst.msk [vmem:[#allocation0] sm:$0x3] %vm12_vm0, %v11_v3  }
  0x7c   :  { %v18_v4 = vpop.permute.xlu0 %17  }
  0x7d   :  { %20 = vst.msk [vmem:[#allocation0] sm:$0x3] %vm19_vm1, %v18_v4  }
  0x84   :  { %v24_v5 = vld [vmem:[#allocation0] sm:$0x3] }
  0x85   :  { %26 = vst [vmem:[%s50_s1] sm:$0x3] %v24_v5 }

// kernel: squeeze.10
= control target key start
LH: loop header
LB: loop body
LE: loop exit
PB: predicated region body
PF: predicated region fallthrough
CT: control target
= control target key end

     0   :  { %s10_s10 = smov 3  ;;  %vm12_vm0 = vcmask 261120   ;;  %s29_s11 = smov 32   ;;  %vm19_vm1 = vcmask 523520   ;;  %s49_s0 = inlined_call_operand.vmem [shape: f32[1,2,2,32], index: 0, kind: input, shape index: {}]   ;;  %s50_s1 = inlined_call_operand.vmem [shape: f32[2,64], index: 1, kind: output, shape index: {}]  }
   0x1   :  { %v27_v0 = vld [vmem:[%s49_s0 + $0x2] sm:$0x3]  ;;  %v8_v1 = vld [vmem:[%s49_s0] sm:$0x3]  ;;  %s15_s0 = smov 3 }
   0x2   :  { %7 = vst [vmem:[#allocation1 + $0x8] sm:$0x3] %v27_v0  ;;  %9 = vst [vmem:[#allocation1] sm:$0x3] %v8_v1 }
   0x9   :  { %v16_v2 = vld [vmem:[#allocation1 + $0x1] ss:$8 sm:%s15_s0]   ;;  %v11_v3 = vld [vmem:[#allocation1] ss:$8 sm:%s10_s10]  }
   0xa   :  { %17 = vrot.lane.b32.xlu0 %v16_v2, %s29_s11  ;;  %13 = vst.msk [vmem:[#allocation0] sm:$0x3] %vm12_vm0, %v11_v3  }
  0x7c   :  { %v18_v4 = vpop.permute.xlu0 %17  }
  0x7d   :  { %20 = vst.msk [vmem:[#allocation0] sm:$0x3] %vm19_vm1, %v18_v4  }
  0x84   :  { %v24_v5 = vld [vmem:[#allocation0] sm:$0x3] }
  0x85   :  { %26 = vst [vmem:[%s50_s1] sm:$0x3] %v24_v5 }

// kernel: _lambda_.10
= control target key start
LH: loop header
LB: loop body
LE: loop exit
PB: predicated region body
PF: predicated region fallthrough
CT: control target
= control target key end

     0   :  { %s2886_s25 = smov 0   ;;  %s2888_s26 = smov 0   ;;  %s3225_s0 = inlined_call_operand.vmem [shape: f32[2,16,32], index: 0, kind: input, shape index: {}]   ;;  %s3226_s1 = inlined_call_operand.vmem [shape: bf16[2,2,32,96], index: 1, kind: input, shape index: {}]   ;;  %s3227_s2 = inlined_call_operand.vmem [shape: f32[2,2,1,96], index: 2, kind: input, shape index: {}]   ;;  %s3228_s3 = inlined_call_operand.vmem [shape: bf16[2,2,32,32], index: 3, kind: input, shape index: {}]   ;;  %s3229_s4 = inlined_call_operand.vmem [shape: f32[2,2,1,32], index: 4, kind: input, shape index: {}]   ;;  %s3230_s5 = inlined_call_operand.vmem [shape: f32[2,2,1,32], index: 5, kind: input, shape index: {}, may-alias: {5,11}]   ;;  %s3231_s6 = inlined_call_operand.vmem [shape: f32[2,2,1,32], index: 6, kind: input, shape index: {}, may-alias: {6,12}]   ;;  %s3232_s7 = inlined_call_operand.vmem [shape: bf16[2,2,32,32], index: 7, kind: input, shape index: {}]   ;;  %s3233_s8 = inlined_call_operand.vmem [shape: f32[2,2,1,32], index: 8, kind: input, shape index: {}]   ;;  %s3234_s9 = inlined_call_operand.vmem [shape: bf16[2,2,32,32], index: 9, kind: input, shape index: {}]   ;;  %s3235_s10 = inlined_call_operand.vmem [shape: f32[2,2,1,32], index: 10, kind: input, shape index: {}]   ;;  %s3236_s11 = inlined_call_operand.vmem [shape: f32[2,2,1,32], index: 11, kind: input, shape index: {}, may-alias: {5,11}]   ;;  %s3237_s12 = inlined_call_operand.vmem [shape: f32[2,2,1,32], index: 12, kind: input, shape index: {}, may-alias: {6,12}]   ;;  %s3238_s13 = inlined_call_operand.vmem [shape: f32[2,2,32], index: 13, kind: output, shape index: {}]  }
   0x1   :  { %3243 = sst [smem:[#allocation9_spill]] %s3225_s0  ;;  %s2890_s27 = smov 0  }
   0x2   :  { %3244 = sst [smem:[#allocation10_spill]] %s3226_s1  ;;  %s2892_s28 = smov 0  }
   0x3   :  { %3245 = sst [smem:[#allocation11_spill]] %s3228_s3  ;;  %s2894_s29 = smov 0  }
   0x4   :  { %3246 = sst [smem:[#allocation12_spill]] %s3231_s6 }
   0x5   :  { %3247 = sst [smem:[#allocation13_spill]] %s3232_s7 }
   0x6   :  { %3248 = sst [smem:[#allocation14_spill]] %s3237_s12 }
   0x7   :  { %3249 = sst [smem:[#allocation15_spill]] %s3238_s13 }
   0x8 LB: > { %3250 = sst [smem:[#allocation3_spill]] %s2782_s25  ;;  %s32_s30 = sadd.s32 1, %s2790_s27  ;;  %s2798_s29 = sphi %s2894_s29, %s23_s29   ;;  %s2794_s28 = sphi %s2892_s28, %s3276_s28   ;;  %s2790_s27 = sphi %s2890_s27, %s3275_s27   ;;  %s2786_s26 = sphi %s2888_s26, %s3274_s26   ;;  %s2782_s25 = sphi %s2886_s25, %s3273_s25  }
   0x9   : > { %3251 = sst [smem:[#allocation4_spill]] %s2790_s27  ;;  %s35_s14 = sadd.s32 1, %s2794_s28 }
   0xa   : > { %3252 = sst [smem:[#allocation5_spill]] %s2794_s28  ;;  %p33_p0 = scmp.ge.s32.totalorder %s32_s30, 2 }
   0xb   : > { %3253 = sst [smem:[#allocation6_spill]] %s2798_s29  ;;  %p2404_p1 = scmp.ge.s32.totalorder %s2798_s29, 1 }
   0xc   : > { %p575_p2 = scmp.lt.s32.totalorder %s2798_s29, 5  ;;  %s3278_s30 = smov (%p33_p0, %s32_s30), 0 }
   0xd   : > { %3254 = sst [smem:[#allocation7_spill]] %s3278_s30  ;;  %s3280_s14 = smov (!%p33_p0, %s35_s14), %s2794_s28 }
   0xe   : > { %p576_p3 = pnand %p2404_p1, %p575_p2  ;;  %p37_p4 = scmp.ge.s32.totalorder %s3280_s14, 2 }
   0xf   : > { %p710_p5 = scmp.lt.s32.totalorder (!%p576_p3), %s2786_s26, 1  ;;  %p717_p6 = scmp.lt.s32.totalorder (!%p576_p3), %s2782_s25, 1 }
  0x10   : > { %s3282_s14 = smov (%p37_p4, %s3280_s14), 0  ;;  %579 = sbr.rel (%p576_p3) target bundleno = 4169 (0x1049), region = 72 }
  0x11   : > { %3255 = sst [smem:[#allocation8_spill]] %s3282_s14  ;;  %s3256_s0 = sld [smem:[#allocation9_spill]] (!%p576_p3) }
  0x12   : > { %s3257_s1 = sld [smem:[#allocation10_spill]] (!%p576_p3)  ;;  %s3258_s3 = sld [smem:[#allocation11_spill]] (!%p576_p3) }
  0x13   : > { %s3260_s7 = sld [smem:[#allocation13_spill]] (!%p576_p3)  ;;  %s3261_s14 = sld [smem:[#allocation14_spill]] (!%p576_p3) }
  0x14   : > { %s3262_s19 = sld [smem:[#allocation15_spill]] (!%p576_p3) }
  0x17   : > { %s3284_s26 = smov (!%p710_p5, %s2786_s26), 1 }
  0x18   : > { %s718_s15 = scalar_select %p717_p6, %s2782_s25, 1 }
  0x19   : > { %s2468_s16 = sshll.u32 %s3284_s26, 4  ;;  %s2408_s17 = sshll.u32 %s3284_s26, 3 }
  0x1a   : > { %s714_s20 = scalar_lea.vmem %s3256_s0, %s2468_s16  ;;  %s2407_s21 = sshll.u32 %s718_s15, 2 }
  0x1b   : > { %s721_s22 = sadd.s32 %s2408_s17, %s2407_s21  ;;  %s2410_s23 = sshll.u32 %s3284_s26, 1 }
  0x1c   : > { %s2409_s24 = sshll.u32 %s721_s22, 2  ;;  %s2923_s30 = sadd.s32 %s2410_s23, %s718_s15 }
  0x1d   : > { %s723_s27 = scalar_lea.vmem %s3257_s1, %s2409_s24  ;;  %s2935_s15 = scalar_lea.vmem %s3258_s3, %s2409_s24 }
  0x1e   : > { %s2952_s16 = scalar_lea.vmem %s3260_s7, %s2409_s24  ;;  %s2961_s28 = scalar_lea.vmem %s3234_s9, %s2409_s24 }
  0x1f   : > { %s792_s29 = scalar_lea.vmem %s3235_s10, %s2923_s30  ;;  %s799_s1 = scalar_lea.vmem %s3236_s11, %s2923_s30 }
  0x20   : > { %s806_s7 = scalar_lea.vmem %s3261_s14, %s2923_s30  ;;  %s2978_s17 = scalar_lea.vmem %s3262_s19, %s2410_s23 }
  0x21   : > { %s3263_s3 = sld [smem:[#allocation3_spill]] }
  0x27   : > { %p2428_p7 = scmp.ne.s32.totalorder %s3263_s3, 0 }
  0x28   : > { %v816_v0 = vld [vmem:[%s714_s20] sm:$0xff] (!%p2428_p7)  ;;  %vm818_vm0 = vcmask (!%p2428_p7), 261120   ;;  %v817_v1 = vld [vmem:[%s714_s20 + $0x8] sm:$0xff] (!%p2428_p7) }
  0x29   : > { %815 = sbr.rel (%p2428_p7) target bundleno = 48 (0x30), region = 76  ;;  %819 = vst.msk [vmem:[#allocation2] sm:$0xff] (!%p2428_p7), %vm818_vm0, %v816_v0  ;;  %820 = vst.msk [vmem:[#allocation2 + $0x8] sm:$0xff] (!%p2428_p7), %vm818_vm0, %v817_v1 }
  0x30 PF: > { %v2712_v2 = vld [vmem:[%s723_s27] sm:$0xff]   ;;  %v2800_v3 = vmov 0.0   ;;  %v2713_v4 = vld [vmem:[%s723_s27 + $0x8] sm:$0xff]   ;;  %vm2801_vm1 = vmmov 0   ;;  %vm847_vm2 = vcmask 261120   ;;  %s3264_s20 = scalar_lea.vmem %s3227_s2, %s2923_s30  ;;  %s2802_s23 = smov 96  }
  0x31   : > { %2513 = vmatprep.subr.bf16.mxu0 %v2800_v3  ;;  %2521 = vmatprep.subr.bf16.mxu1 %v2800_v3  ;;  %v2985_v5 = vld [vmem:[#allocation2] sm:$0xff]  ;;  %v2987_v6 = vld [vmem:[#allocation2 + $0x8] sm:$0xff]  ;;  %vm897_vm3 = vcmask 64512   ;;  %s2803_s24 = smov 64   ;;  %s2804_s14 = smov 88   ;;  %vm1022_vm4 = vcmask 1043456  }
  0x32   : > { %2514 = vmatpush3.bf16.msra.mxu0 %v2712_v2  ;;  %2517 = vmatprep.mubr.msk.bf16.mxu0 %vm2801_vm1, %v2800_v3  ;;  %v827_v7 = vpack.c.bf16 %v2987_v6, %v2985_v5  ;;  %v2429_v8 = vld [vmem:[%s3264_s20] ss:$0 sm:$0xff]  ;;  %s2805_s21 = smov 120   ;;  %s2806_s0 = smov 56   ;;  %vm1800_vm5 = vcmask 130048   ;;  %vm1803_vm6 = vcmask 195584  }
  0x33   : > { %2515 = vmatprep.subr.bf16.mxu0 %v2800_v3  ;;  %2523 = vmatprep.mubr.msk.bf16.mxu1 %vm2801_vm1, %v2800_v3  ;;  %s2807_s22 = smov 80   ;;  %s2808_s13 = smov 112  }
  0x34   : > { %s2809_s25 = smov 48   ;;  %s2810_s12 = smov 72  }
  0x35   : > { %s2811_s18 = smov 104   ;;  %s2812_s26 = smov 40  }
  0x36   : > { %2516 = vmatpush3.bf16.msra.mxu0 %v2713_v4  ;;  %s2813_s19 = smov 8   ;;  %s2814_s3 = smov 16  }
  0x37   : > { %2527 = vmatprep.subr.bf16.mxu0 %v2800_v3  ;;  %s2815_s6 = smov 24   ;;  %s3265_s20 = scalar_lea.vmem %s3229_s4, %s2923_s30 }
  0x39   : > { %2518 = vmatmul.mubr.msk.bf16.vlgmr.msra.gmra.mrb[0].mxu0 %vm847_vm2, %v827_v7 }
  0x3a   : > { %2529 = vmatprep.mubr.msk.bf16.mxu0 %vm2801_vm1, %v2800_v3 }
 0x10c   : > { %v885_v9 = vpop.f32.mrb[0].mxu0 }
 0x10d   : > { %v886_v10 = vadd.f32 %v2429_v8, %v885_v9  ;;  %v2519_v11 = vpop.f32.mrb[1].mxu0 }
 0x10e   : > { %v888_v12 = vpop.f32.mrb[2].mxu0 }
 0x10f   : > { %v3003_v13 = vpack.c.bf16 %v886_v10, %v886_v10  ;;  %v889_v14 = vadd.f32 %v2429_v8, %v888_v12  ;;  %v2520_v15 = vpop.f32.mrb[3].mxu0 }
 0x111   : > { %895 = vrot.lane.b32.xlu0 %v3003_v13, %s2802_s23  ;;  %v3006_v16 = vpack.c.bf16 %v889_v14, %v889_v14 }
 0x115   : > { %945 = vrot.lane.b32.xlu0 %v3006_v16, %s2802_s23 }
 0x183   : > { %v896_v17 = vpop.permute.xlu0 %895 }
 0x184   : > { %v902_v18 = vsel %vm897_vm3, %v896_v17, 0 }
 0x185   : > { %2522 = vmatpush3.bf16.xpose.msra.mxu1 %v902_v18 }
 0x186   : > { %2533 = vmatprep.subr.bf16.mxu1 %v2800_v3 }
 0x187   : > { %v946_v19 = vpop.permute.xlu0 %945 }
 0x188   : > { %v951_v20 = vsel %vm897_vm3, %v946_v19, 0 }
 0x189   : > { %2528 = vmatpush3.bf16.xpose.msra.mxu0 %v951_v20 }
 0x18a   : > { %2539 = vmatprep.subr.bf16.mxu0 %v2800_v3 }
 0x18c   : > { %2524 = vmatmul.mubr.msk.bf16.vlgmr.msra.gmra.mrb[0].mxu1 %vm897_vm3, %v3003_v13 }
 0x18d   : > { %2535 = vmatprep.mubr.msk.bf16.mxu1 %vm2801_vm1, %v2800_v3 }
 0x190   : > { %2530 = vmatmul.mubr.msk.bf16.vlgmr.msra.gmra.mrb[4].mxu0 %vm897_vm3, %v3006_v16 }
 0x191   : > { %2541 = vmatprep.mubr.msk.bf16.mxu0 %vm2801_vm1, %v2800_v3 }
 0x25f   : > { %v938_v21 = vpop.f32.mrb[0].mxu1 }
 0x260   : > { %v2525_v22 = vpop.f32.mrb[1].mxu1  ;;  %v993_v23 = vsel %vm897_vm3, %v938_v21, -inf }
 0x261   : > { %994 = vmax.xlane.f32.xlu1 %v993_v23  ;;  %v941_v24 = vpop.f32.mrb[2].mxu1 }
 0x262   : > { %v2526_v25 = vpop.f32.mrb[3].mxu1 }
 0x263   : > { %v987_v26 = vpop.f32.mrb[4].mxu0 }
 0x264   : > { %v2531_v27 = vpop.f32.mrb[5].mxu0  ;;  %v996_v28 = vsel %vm897_vm3, %v987_v26, -inf }
 0x265   : > { %997 = vmax.xlane.f32.xlu1 %v996_v28  ;;  %v990_v29 = vpop.f32.mrb[6].mxu0 }
 0x266   : > { %v2532_v30 = vpop.f32.mrb[7].mxu0 }
 0x276   : > { %1017 = vrot.lane.b32.xlu1 %v3003_v13, %s2803_s24 }
 0x27a   : > { %1066 = vrot.lane.b32.xlu1 %v3006_v16, %s2803_s24 }
 0x27e   : > { %1116 = vrot.lane.b32.xlu1 %v3003_v13, %s2804_s14 }
 0x2ee   : > { %v995_v31 = vpop.xlane.xlu1 %994 }
 0x2ef   : > { %v999_v32 = vsub.f32 %v938_v21, %v995_v31 }
 0x2f1   : > { %v1001_v33 = vmul.f32 1.442695, %v999_v32 }
 0x2f2   : > { %v998_v34 = vpop.xlane.xlu1 %997 }
 0x2f3   : > { %2720 = vpow2.f32 %v1001_v33  ;;  %v1000_v35 = vsub.f32 %v987_v26, %v998_v34 }
 0x2f5   : > { %v1003_v36 = vmul.f32 1.442695, %v1000_v35 }
 0x2f6   : > { %v1018_v37 = vpop.permute.xlu1 %1017 }
 0x2f7   : > { %2722 = vpow2.f32 %v1003_v36  ;;  %v1024_v38 = vsel %vm1022_vm4, %v1018_v37, 0 }
 0x2f8   : > { %2534 = vmatpush3.bf16.msra.mxu1 %v1024_v38 }
 0x2f9   : > { %2545 = vmatprep.subr.bf16.mxu1 %v2800_v3 }
 0x2fa   : > { %v1067_v39 = vpop.permute.xlu1 %1066 }
 0x2fb   : > { %v1072_v40 = vsel %vm1022_vm4, %v1067_v39, 0 }
 0x2fc   : > { %2540 = vmatpush3.bf16.msra.mxu0 %v1072_v40 }
 0x2fd   : > { %v2721_v41 = vpop.eup %2720  ;;  %2551 = vmatprep.subr.bf16.mxu0 %v2800_v3 }
 0x2fe   : > { %v1005_v42 = vsel %vm897_vm3, %v2721_v41, 0.0  ;;  %v1117_v45 = vpop.permute.xlu1 %1116 }
 0x2ff   : > { %1006 = vadd.xlane.f32.xlu0 %v1005_v42  ;;  %v1122_v52 = vsel %vm897_vm3, %v1117_v45, 0 }
 0x301   : > { %v2723_v43 = vpop.eup %2722 }
 0x302   : > { %v1008_v44 = vsel %vm897_vm3, %v2723_v43, 0.0 }
 0x303   : > { %1009 = vadd.xlane.f32.xlu1 %v1008_v44 }
 0x314   : > { %1166 = vrot.lane.b32.xlu1 %v3006_v16, %s2804_s14  ;;  %s3266_s14 = scalar_lea.vmem %s3230_s5, %s2923_s30 }
 0x315   : > { %1114 = vrot.lane.b32.xlu0 %v3003_v13, %s2805_s21 }
 0x318   : > { %1164 = vrot.lane.b32.xlu1 %v3006_v16, %s2805_s21 }
 0x38c   : > { %v1007_v46 = vpop.xlane.xlu0 %1006 }
 0x38d   : > { %2724 = vrcp.f32 %v1007_v46 }
 0x390   : > { %v1010_v47 = vpop.xlane.xlu1 %1009  ;;  %v1115_v57 = vpop.permute.xlu0 %1114 }
 0x391   : > { %2726 = vrcp.f32 %v1010_v47 }
 0x394   : > { %v1167_v54 = vpop.permute.xlu1 %1166 }
 0x395   : > { %v1172_v56 = vsel %vm897_vm3, %v1167_v54, 0 }
 0x397   : > { %v2725_v48 = vpop.eup %2724 }
 0x398   : > { %v1013_v49 = vmul.f32 %v2725_v48, %v2721_v41  ;;  %v1165_v58 = vpop.permute.xlu1 %1164 }
 0x39a   : > { %v1015_v50 = vpack.c.bf16 %v1013_v49, %v1013_v49 }
 0x39b   : > { %v2727_v51 = vpop.eup %2726 }
 0x39c   : > { %v1014_v53 = vmul.f32 %v2727_v51, %v2723_v43  ;;  %2536 = vmatmul.mubr.msk.bf16.vlgmr.msra.gmra.mrb[4].mxu1 %vm897_vm3, %v1015_v50 }
 0x39d   : > { %2546 = vmatpush3.bf16.xpose.msra.mxu1 %v1122_v52  ;;  %2547 = vmatprep.mubr.msk.bf16.mxu1 %vm2801_vm1, %v2800_v3 }
 0x39e   : > { %v1016_v55 = vpack.c.bf16 %v1014_v53, %v1014_v53  ;;  %2557 = vmatprep.subr.bf16.mxu1 %v2800_v3 }
 0x3a0   : > { %2542 = vmatmul.mubr.msk.bf16.vlgmr.msra.gmra.mrb[8].mxu0 %vm897_vm3, %v1016_v55 }
 0x3a1   : > { %2552 = vmatpush3.bf16.xpose.msra.mxu0 %v1172_v56  ;;  %2553 = vmatprep.mubr.msk.bf16.mxu0 %vm2801_vm1, %v2800_v3 }
 0x3a2   : > { %2563 = vmatprep.subr.bf16.mxu0 %v2800_v3 }
 0x3a4   : > { %2548 = vmatmul.mubr.msk.bf16.vlgmr.msra.gmra.mrb[8].mxu1 %vm897_vm3, %v1115_v57 }
 0x3a5   : > { %2559 = vmatprep.mubr.msk.bf16.mxu1 %vm2801_vm1, %v2800_v3 }
 0x3a8   : > { %2554 = vmatmul.mubr.msk.bf16.vlgmr.msra.gmra.mrb[12].mxu0 %vm897_vm3, %v1165_v58 }
 0x3a9   : > { %2565 = vmatprep.mubr.msk.bf16.mxu0 %vm2801_vm1, %v2800_v3 }
 0x46f   : > { %v3051_v59 = vpop.f32.mrb[4].mxu1 }
 0x470   : > { %v2537_v60 = vpop.f32.mrb[5].mxu1 }
 0x471   : > { %v1063_v61 = vpop.f32.mrb[6].mxu1 }
 0x472   : > { %v2538_v62 = vpop.f32.mrb[7].mxu1 }
 0x473   : > { %v3053_v63 = vpop.f32.mrb[8].mxu0 }
 0x474   : > { %v2543_v0 = vpop.f32.mrb[9].mxu0 }
 0x475   : > { %v1111_v1 = vpop.f32.mrb[10].mxu0 }
 0x476   : > { %v2544_v2 = vpop.f32.mrb[11].mxu0 }
 0x477   : > { %v1158_v4 = vpop.f32.mrb[8].mxu1 }
 0x478   : > { %v2549_v7 = vpop.f32.mrb[9].mxu1  ;;  %v1214_v8 = vsel %vm897_vm3, %v1158_v4, -inf }
 0x479   : > { %1215 = vmax.xlane.f32.xlu1 %v1214_v8  ;;  %v1161_v9 = vpop.f32.mrb[10].mxu1 }
 0x47a   : > { %v2550_v10 = vpop.f32.mrb[11].mxu1 }
 0x47b   : > { %v1208_v11 = vpop.f32.mrb[12].mxu0 }
 0x47c   : > { %v2555_v12 = vpop.f32.mrb[13].mxu0  ;;  %v1217_v14 = vsel %vm897_vm3, %v1208_v11, -inf }
 0x47d   : > { %1218 = vmax.xlane.f32.xlu0 %v1217_v14  ;;  %v1211_v15 = vpop.f32.mrb[14].mxu0 }
 0x47e   : > { %v2556_v17 = vpop.f32.mrb[15].mxu0 }
 0x48a   : > { %1238 = vrot.lane.b32.xlu1 %v3003_v13, %s2806_s0 }
 0x48e   : > { %1336 = vrot.lane.b32.xlu1 %v3003_v13, %s2807_s22 }
 0x493   : > { %1286 = vrot.lane.b32.xlu0 %v3006_v16, %s2806_s0  ;;  %s3267_s0 = sld [smem:[#allocation12_spill]] }
 0x497   : > { %1334 = vrot.lane.b32.xlu0 %v3003_v13, %s2808_s13 }
 0x506   : > { %v1216_v18 = vpop.xlane.xlu1 %1215 }
 0x507   : > { %v1220_v19 = vsub.f32 %v1158_v4, %v1216_v18 }
 0x509   : > { %v1222_v20 = vmul.f32 1.442695, %v1220_v19 }
 0x50a   : > { %v1239_v21 = vpop.permute.xlu1 %1238  ;;  %v1219_v22 = vpop.xlane.xlu0 %1218 }
 0x50b   : > { %2728 = vpow2.f32 %v1222_v20  ;;  %v1244_v23 = vsel %vm1022_vm4, %v1239_v21, 0  ;;  %v1221_v24 = vsub.f32 %v1208_v11, %v1219_v22 }
 0x50c   : > { %2558 = vmatpush3.bf16.msra.mxu1 %v1244_v23 }
 0x50d   : > { %v1224_v25 = vmul.f32 1.442695, %v1221_v24  ;;  %2569 = vmatprep.subr.bf16.mxu1 %v2800_v3 }
 0x50e   : > { %v1287_v26 = vpop.permute.xlu0 %1286  ;;  %v1337_v32 = vpop.permute.xlu1 %1336 }
 0x50f   : > { %2730 = vpow2.f32 %v1224_v25  ;;  %v1292_v27 = vsel %vm1022_vm4, %v1287_v26, 0  ;;  %v1342_v39 = vsel %vm897_vm3, %v1337_v32, 0 }
 0x510   : > { %2564 = vmatpush3.bf16.msra.mxu0 %v1292_v27 }
 0x511   : > { %2575 = vmatprep.subr.bf16.mxu0 %v2800_v3 }
 0x512   : > { %v1335_v44 = vpop.permute.xlu0 %1334 }
 0x515   : > { %v2729_v28 = vpop.eup %2728 }
 0x516   : > { %v1226_v29 = vsel %vm897_vm3, %v2729_v28, 0.0 }
 0x517   : > { %1227 = vadd.xlane.f32.xlu1 %v1226_v29 }
 0x519   : > { %v2731_v30 = vpop.eup %2730 }
 0x51a   : > { %v1229_v31 = vsel %vm897_vm3, %v2731_v30, 0.0 }
 0x51b   : > { %1230 = vadd.xlane.f32.xlu1 %v1229_v31 }
 0x52c   : > { %1386 = vrot.lane.b32.xlu1 %v3006_v16, %s2807_s22  ;;  %s3268_s22 = scalar_lea.vmem %s3267_s0, %s2923_s30 }
 0x530   : > { %1384 = vrot.lane.b32.xlu1 %v3006_v16, %s2808_s13 }
 0x5a4   : > { %v1228_v33 = vpop.xlane.xlu1 %1227 }
 0x5a5   : > { %2732 = vrcp.f32 %v1228_v33 }
 0x5a8   : > { %v1231_v34 = vpop.xlane.xlu1 %1230 }
 0x5a9   : > { %2734 = vrcp.f32 %v1231_v34 }
 0x5ac   : > { %v1387_v41 = vpop.permute.xlu1 %1386 }
 0x5ad   : > { %v1392_v43 = vsel %vm897_vm3, %v1387_v41, 0 }
 0x5af   : > { %v2733_v35 = vpop.eup %2732 }
 0x5b0   : > { %v1234_v36 = vmul.f32 %v2733_v35, %v2729_v28  ;;  %v1385_v45 = vpop.permute.xlu1 %1384 }
 0x5b2   : > { %v1236_v37 = vpack.c.bf16 %v1234_v36, %v1234_v36 }
 0x5b3   : > { %v2735_v38 = vpop.eup %2734 }
 0x5b4   : > { %v1235_v40 = vmul.f32 %v2735_v38, %v2731_v30  ;;  %2560 = vmatmul.mubr.msk.bf16.vlgmr.msra.gmra.mrb[12].mxu1 %vm897_vm3, %v1236_v37 }
 0x5b5   : > { %2570 = vmatpush3.bf16.xpose.msra.mxu1 %v1342_v39  ;;  %2571 = vmatprep.mubr.msk.bf16.mxu1 %vm2801_vm1, %v2800_v3 }
 0x5b6   : > { %v1237_v42 = vpack.c.bf16 %v1235_v40, %v1235_v40  ;;  %2581 = vmatprep.subr.bf16.mxu1 %v2800_v3 }
 0x5b8   : > { %2566 = vmatmul.mubr.msk.bf16.vlgmr.msra.gmra.mrb[16].mxu0 %vm897_vm3, %v1237_v42 }
 0x5b9   : > { %2576 = vmatpush3.bf16.xpose.msra.mxu0 %v1392_v43  ;;  %2577 = vmatprep.mubr.msk.bf16.mxu0 %vm2801_vm1, %v2800_v3 }
 0x5ba   : > { %2587 = vmatprep.subr.bf16.mxu0 %v2800_v3 }
 0x5bc   : > { %2572 = vmatmul.mubr.msk.bf16.vlgmr.msra.gmra.mrb[16].mxu1 %vm897_vm3, %v1335_v44 }
 0x5bd   : > { %2583 = vmatprep.mubr.msk.bf16.mxu1 %vm2801_vm1, %v2800_v3 }
 0x5c0   : > { %2578 = vmatmul.mubr.msk.bf16.vlgmr.msra.gmra.mrb[20].mxu0 %vm897_vm3, %v1385_v45 }
 0x5c1   : > { %2589 = vmatprep.mubr.msk.bf16.mxu0 %vm2801_vm1, %v2800_v3 }
 0x687   : > { %v3085_v46 = vpop.f32.mrb[12].mxu1 }
 0x688   : > { %v2561_v47 = vpop.f32.mrb[13].mxu1 }
 0x689   : > { %v1283_v48 = vpop.f32.mrb[14].mxu1 }
 0x68a   : > { %v2562_v49 = vpop.f32.mrb[15].mxu1 }
 0x68b   : > { %v3087_v50 = vpop.f32.mrb[16].mxu0 }
 0x68c   : > { %v2697_v51 = vpack.i.bf16 %v3087_v50, %v3085_v46  ;;  %v2567_v52 = vpop.f32.mrb[17].mxu0 }
 0x68d   : > { %v1331_v53 = vpop.f32.mrb[18].mxu0 }
 0x68e   : > { %v2568_v54 = vpop.f32.mrb[19].mxu0 }
 0x68f   : > { %v1378_v55 = vpop.f32.mrb[16].mxu1 }
 0x690   : > { %v2573_v56 = vpop.f32.mrb[17].mxu1  ;;  %v1434_v57 = vsel %vm897_vm3, %v1378_v55, -inf }
 0x691   : > { %1435 = vmax.xlane.f32.xlu0 %v1434_v57  ;;  %v1381_v58 = vpop.f32.mrb[18].mxu1 }
 0x692   : > { %v2574_v60 = vpop.f32.mrb[19].mxu1 }
 0x693   : > { %v1428_v61 = vpop.f32.mrb[20].mxu0 }
 0x694   : > { %v2579_v62 = vpop.f32.mrb[21].mxu0  ;;  %v1437_v0 = vsel %vm897_vm3, %v1428_v61, -inf }
 0x695   : > { %1438 = vmax.xlane.f32.xlu1 %v1437_v0  ;;  %v1431_v1 = vpop.f32.mrb[22].mxu0 }
 0x696   : > { %v2580_v2 = vpop.f32.mrb[23].mxu0 }
 0x6a6   : > { %1458 = vrot.lane.b32.xlu1 %v3003_v13, %s2809_s25 }
 0x6aa   : > { %1556 = vrot.lane.b32.xlu1 %v3003_v13, %s2810_s12 }
 0x6ae   : > { %1606 = vrot.lane.b32.xlu1 %v3006_v16, %s2810_s12  ;;  %s3269_s12 = scalar_lea.vmem %s3233_s8, %s2923_s30 }
 0x6b2   : > { %1604 = vrot.lane.b32.xlu1 %v3006_v16, %s2811_s18 }
 0x71e   : > { %v1436_v4 = vpop.xlane.xlu0 %1435 }
 0x71f   : > { %v1440_v7 = vsub.f32 %v1378_v55, %v1436_v4 }
 0x721   : > { %v1442_v8 = vmul.f32 1.442695, %v1440_v7 }
 0x722   : > { %v1439_v9 = vpop.xlane.xlu1 %1438 }
 0x723   : > { %2736 = vpow2.f32 %v1442_v8  ;;  %v1441_v10 = vsub.f32 %v1428_v61, %v1439_v9 }
 0x725   : > { %v1444_v11 = vmul.f32 1.442695, %v1441_v10 }
 0x726   : > { %v1459_v12 = vpop.permute.xlu1 %1458 }
 0x727   : > { %2738 = vpow2.f32 %v1444_v11  ;;  %v1464_v14 = vsel %vm1022_vm4, %v1459_v12, 0 }
 0x728   : > { %2582 = vmatpush3.bf16.msra.mxu1 %v1464_v14 }
 0x729   : > { %2593 = vmatprep.subr.bf16.mxu1 %v2800_v3 }
 0x72a   : > { %v1557_v25 = vpop.permute.xlu1 %1556 }
 0x72b   : > { %v1562_v29 = vsel %vm897_vm3, %v1557_v25, 0 }
 0x72d   : > { %v2737_v15 = vpop.eup %2736 }
 0x72e   : > { %v1446_v17 = vsel %vm897_vm3, %v2737_v15, 0.0  ;;  %v1607_v31 = vpop.permute.xlu1 %1606 }
 0x72f   : > { %1447 = vadd.xlane.f32.xlu0 %v1446_v17  ;;  %v1612_v33 = vsel %vm897_vm3, %v1607_v31, 0 }
 0x731   : > { %v2739_v18 = vpop.eup %2738 }
 0x732   : > { %v1449_v19 = vsel %vm897_vm3, %v2739_v18, 0.0  ;;  %v1605_v35 = vpop.permute.xlu1 %1604 }
 0x733   : > { %1450 = vadd.xlane.f32.xlu0 %v1449_v19  ;;  %v2715_v19 = vld [vmem:[%s2935_s15 + $0x8] sm:$0xff]  }
 0x749   : > { %1506 = vrot.lane.b32.xlu0 %v3006_v16, %s2809_s25 }
 0x74d   : > { %1554 = vrot.lane.b32.xlu0 %v3003_v13, %s2811_s18 }
 0x7bc   : > { %v1448_v20 = vpop.xlane.xlu0 %1447 }
 0x7bd   : > { %2740 = vrcp.f32 %v1448_v20 }
 0x7c0   : > { %v1451_v21 = vpop.xlane.xlu0 %1450 }
 0x7c1   : > { %2742 = vrcp.f32 %v1451_v21 }
 0x7c4   : > { %v1507_v22 = vpop.permute.xlu0 %1506 }
 0x7c5   : > { %v1512_v23 = vsel %vm1022_vm4, %v1507_v22, 0 }
 0x7c6   : > { %2588 = vmatpush3.bf16.msra.mxu0 %v1512_v23 }
 0x7c7   : > { %v2741_v24 = vpop.eup %2740  ;;  %2599 = vmatprep.subr.bf16.mxu0 %v2800_v3 }
 0x7c8   : > { %v1454_v26 = vmul.f32 %v2741_v24, %v2737_v15  ;;  %v1555_v34 = vpop.permute.xlu0 %1554 }
 0x7ca   : > { %v1456_v27 = vpack.c.bf16 %v1454_v26, %v1454_v26 }
 0x7cb   : > { %v2743_v28 = vpop.eup %2742 }
 0x7cc   : > { %v1455_v30 = vmul.f32 %v2743_v28, %v2739_v18  ;;  %2584 = vmatmul.mubr.msk.bf16.vlgmr.msra.gmra.mrb[20].mxu1 %vm897_vm3, %v1456_v27  ;;  %v2714_v18 = vld [vmem:[%s2935_s15] sm:$0xff]   ;;  %s3271_s15 = sld [smem:[#allocation3_spill]] }
 0x7cd   : > { %2594 = vmatpush3.bf16.xpose.msra.mxu1 %v1562_v29  ;;  %2595 = vmatprep.mubr.msk.bf16.mxu1 %vm2801_vm1, %v2800_v3 }
 0x7ce   : > { %v1457_v32 = vpack.c.bf16 %v1455_v30, %v1455_v30  ;;  %2605 = vmatprep.subr.bf16.mxu1 %v2800_v3 }
 0x7d0   : > { %2590 = vmatmul.mubr.msk.bf16.vlgmr.msra.gmra.mrb[24].mxu0 %vm897_vm3, %v1457_v32 }
 0x7d1   : > { %2600 = vmatpush3.bf16.xpose.msra.mxu0 %v1612_v33  ;;  %2601 = vmatprep.mubr.msk.bf16.mxu0 %vm2801_vm1, %v2800_v3 }
 0x7d2   : > { %2611 = vmatprep.subr.bf16.mxu0 %v2800_v3  ;;  %p2465_p8 = scmp.ne.s32.totalorder %s3271_s15, 1 }
 0x7d3   : > { %vm2127_vm7 = vcmask (!%p2465_p8), 1041409   ;;  %vm2130_vm8 = vcmask (!%p2465_p8), 254976  }
 0x7d4   : > { %2596 = vmatmul.mubr.msk.bf16.vlgmr.msra.gmra.mrb[24].mxu1 %vm897_vm3, %v1555_v34 }
 0x7d5   : > { %2607 = vmatprep.mubr.msk.bf16.mxu1 %vm2801_vm1, %v2800_v3 }
 0x7d8   : > { %2602 = vmatmul.mubr.msk.bf16.vlgmr.msra.gmra.mrb[28].mxu0 %vm897_vm3, %v1605_v35 }
 0x7d9   : > { %2613 = vmatprep.mubr.msk.bf16.mxu0 %vm2801_vm1, %v2800_v3 }
 0x89f   : > { %v1500_v36 = vpop.f32.mrb[20].mxu1 }
 0x8a0   : > { %v2585_v37 = vpop.f32.mrb[21].mxu1 }
 0x8a1   : > { %v1503_v38 = vpop.f32.mrb[22].mxu1 }
 0x8a2   : > { %v2586_v39 = vpop.f32.mrb[23].mxu1 }
 0x8a3   : > { %v1548_v40 = vpop.f32.mrb[24].mxu0 }
 0x8a4   : > { %v2702_v41 = vpack.i.bf16 %v1548_v40, %v1500_v36  ;;  %v2591_v42 = vpop.f32.mrb[25].mxu0 }
 0x8a5   : > { %v1551_v43 = vpop.f32.mrb[26].mxu0 }
 0x8a6   : > { %v2592_v44 = vpop.f32.mrb[27].mxu0 }
 0x8a7   : > { %v1598_v45 = vpop.f32.mrb[24].mxu1 }
 0x8a8   : > { %v2597_v47 = vpop.f32.mrb[25].mxu1  ;;  %v1654_v48 = vsel %vm897_vm3, %v1598_v45, -inf }
 0x8a9   : > { %1655 = vmax.xlane.f32.xlu0 %v1654_v48  ;;  %v1601_v49 = vpop.f32.mrb[26].mxu1 }
 0x8aa   : > { %v2598_v52 = vpop.f32.mrb[27].mxu1 }
 0x8ab   : > { %v1648_v53 = vpop.f32.mrb[28].mxu0 }
 0x8ac   : > { %v2603_v54 = vpop.f32.mrb[29].mxu0  ;;  %v1657_v55 = vsel %vm897_vm3, %v1648_v53, -inf }
 0x8ad   : > { %1658 = vmax.xlane.f32.xlu1 %v1657_v55  ;;  %v1651_v56 = vpop.f32.mrb[30].mxu0 }
 0x8ae   : > { %v2604_v57 = vpop.f32.mrb[31].mxu0 }
 0x8be   : > { %1678 = vrot.lane.b32.xlu1 %v3003_v13, %s2812_s26 }
 0x8c2   : > { %2698 = vrot.lane.b32.xlu1 %v2697_v51, %s2813_s19 }
 0x8c6   : > { %2703 = vrot.lane.b32.xlu1 %v2702_v41, %s2814_s3 }
 0x936   : > { %v1656_v58 = vpop.xlane.xlu0 %1655 }
 0x937   : > { %v1660_v60 = vsub.f32 %v1598_v45, %v1656_v58 }
 0x939   : > { %v1662_v61 = vmul.f32 1.442695, %v1660_v60 }
 0x93a   : > { %v1659_v62 = vpop.xlane.xlu1 %1658 }
 0x93b   : > { %2744 = vpow2.f32 %v1662_v61  ;;  %v1661_v0 = vsub.f32 %v1648_v53, %v1659_v62 }
 0x93d   : > { %v1664_v1 = vmul.f32 1.442695, %v1661_v0 }
 0x93e   : > { %v1679_v2 = vpop.permute.xlu1 %1678 }
 0x93f   : > { %2746 = vpow2.f32 %v1664_v1  ;;  %v1684_v4 = vsel %vm1022_vm4, %v1679_v2, 0 }
 0x940   : > { %2606 = vmatpush3.bf16.msra.mxu1 %v1684_v4 }
 0x941   : > { %2617 = vmatprep.subr.bf16.mxu1 %v2800_v3 }
 0x942   : > { %v2699_v29 = vpop.permute.xlu1 %2698 }
 0x943   : > { %v2701_v31 = vunpack.i.h.bf16 %v2699_v29  ;;  %v2700_v32 = vunpack.i.l.bf16 %v2699_v29 }
 0x945   : > { %v2745_v13 = vpop.eup %2744  ;;  %v1799_v36 = vsel %vm897_vm3, %v3053_v63, %v2701_v31  ;;  %v1798_v37 = vsel %vm897_vm3, %v3051_v59, %v2700_v32  ;;  %v2449_v63 = vld [vmem:[%s3265_s20] ss:$0 sm:$0xff] }
 0x946   : > { %v1666_v46 = vsel %vm897_vm3, %v2745_v13, 0.0  ;;  %v2704_v30 = vpop.permute.xlu1 %2703 }
 0x947   : > { %1667 = vadd.xlane.f32.xlu0 %v1666_v46  ;;  %v2706_v33 = vunpack.i.h.bf16 %v2704_v30  ;;  %v2705_v34 = vunpack.i.l.bf16 %v2704_v30 }
 0x949   : > { %v2747_v50 = vpop.eup %2746  ;;  %v1801_v40 = vsel %vm1800_vm5, %v1798_v37, %v2705_v34  ;;  %v1802_v41 = vsel %vm1800_vm5, %v1799_v36, %v2706_v33 }
 0x94a   : > { %v1669_v51 = vsel %vm897_vm3, %v2747_v50, 0.0 }
 0x94b   : > { %1670 = vadd.xlane.f32.xlu0 %v1669_v51 }
 0x961   : > { %1726 = vrot.lane.b32.xlu0 %v3006_v16, %s2812_s26 }
 0x9d4   : > { %v1668_v7 = vpop.xlane.xlu0 %1667 }
 0x9d5   : > { %2748 = vrcp.f32 %v1668_v7 }
 0x9d8   : > { %v1671_v8 = vpop.xlane.xlu0 %1670 }
 0x9d9   : > { %2750 = vrcp.f32 %v1671_v8 }
 0x9dc   : > { %v1727_v9 = vpop.permute.xlu0 %1726 }
 0x9dd   : > { %v1732_v10 = vsel %vm1022_vm4, %v1727_v9, 0 }
 0x9de   : > { %2612 = vmatpush3.bf16.msra.mxu0 %v1732_v10 }
 0x9df   : > { %v2749_v11 = vpop.eup %2748  ;;  %2625 = vmatprep.subr.bf16.mxu0 %v2800_v3 }
 0x9e0   : > { %v1674_v12 = vmul.f32 %v2749_v11, %v2745_v13  ;;  %v2717_v13 = vld [vmem:[%s2952_s16 + $0x8] sm:$0xff]   ;;  %v2453_v11 = vld [vmem:[%s3266_s14] ss:$0 sm:$0xff] }
 0x9e2   : > { %v1676_v14 = vpack.c.bf16 %v1674_v12, %v1674_v12 }
 0x9e3   : > { %v2751_v15 = vpop.eup %2750 }
 0x9e4   : > { %v1675_v17 = vmul.f32 %v2751_v15, %v2747_v50  ;;  %2608 = vmatmul.mubr.msk.bf16.vlgmr.msra.gmra.mrb[28].mxu1 %vm897_vm3, %v1676_v14 }
 0x9e5   : > { %2621 = vmatprep.mubr.msk.bf16.mxu1 %vm2801_vm1, %v2800_v3  ;;  %2618 = vmatpush3.bf16.msra.mxu1 %v2714_v18 }
 0x9e6   : > { %v1677_v16 = vpack.c.bf16 %v1675_v17, %v1675_v17  ;;  %2619 = vmatprep.subr.bf16.mxu1 %v2800_v3 }
 0x9e8   : > { %2614 = vmatmul.mubr.msk.bf16.vlgmr.msra.gmra.mrb[32].mxu0 %vm897_vm3, %v1677_v16  ;;  %v2454_v16 = vld [vmem:[%s3268_s22] ss:$0 sm:$0xff] }
 0x9e9   : > { %2629 = vmatprep.mubr.msk.bf16.mxu0 %vm2801_vm1, %v2800_v3  ;;  %2620 = vmatpush3.bf16.msra.mxu1 %v2715_v19 }
 0x9ea   : > { %2633 = vmatprep.subr.bf16.mxu1 %v2800_v3 }
 0xab7   : > { %v1720_v20 = vpop.f32.mrb[28].mxu1 }
 0xab8   : > { %v2609_v21 = vpop.f32.mrb[29].mxu1 }
 0xab9   : > { %v1723_v22 = vpop.f32.mrb[30].mxu1 }
 0xaba   : > { %v2610_v23 = vpop.f32.mrb[31].mxu1  ;;  %v2718_v22 = vld [vmem:[%s2961_s28] sm:$0xff]  }
 0xabb   : > { %v1768_v24 = vpop.f32.mrb[32].mxu0  ;;  %v2719_v23 = vld [vmem:[%s2961_s28 + $0x8] sm:$0xff]  }
 0xabc   : > { %v2707_v25 = vpack.i.bf16 %v1768_v24, %v1720_v20  ;;  %v2615_v26 = vpop.f32.mrb[33].mxu0  ;;  %v2455_v24 = vld [vmem:[%s3269_s12] ss:$0 sm:$0xff] }
 0xabd   : > { %v1771_v27 = vpop.f32.mrb[34].mxu0 }
 0xabe   : > { %2708 = vrot.lane.b32.xlu0 %v2707_v25, %s2815_s6  ;;  %v2616_v28 = vpop.f32.mrb[35].mxu0 }
 0xb30   : > { %v2709_v35 = vpop.permute.xlu0 %2708 }
 0xb31   : > { %v2711_v38 = vunpack.i.h.bf16 %v2709_v35  ;;  %v2710_v39 = vunpack.i.l.bf16 %v2709_v35 }
 0xb33   : > { %v1805_v42 = vsel %vm1803_vm6, %v1802_v41, %v2711_v38  ;;  %v1804_v43 = vsel %vm1803_vm6, %v1801_v40, %v2710_v39 }
 0xb34   : > { %v1810_v44 = vpack.c.bf16 %v1805_v42, %v1804_v43 }
 0xb36   : > { %2622 = vmatmul.mubr.msk.bf16.vlgmr.msra.gmra.mrb[32].mxu1 %vm847_vm2, %v1810_v44 }
 0xb37   : > { %2637 = vmatprep.mubr.msk.bf16.mxu1 %vm2801_vm1, %v2800_v3  ;;  %2634 = vmatpush3.bf16.msra.mxu1 %v2718_v22 }
 0xb38   : > { %2635 = vmatprep.subr.bf16.mxu1 %v2800_v3 }
 0xb3b   : > { %2636 = vmatpush3.bf16.msra.mxu1 %v2719_v23 }
 0xc09   : > { %v1867_v45 = vpop.f32.mrb[32].mxu1 }
 0xc0a   : > { %v1868_v47 = vadd.f32 %v2449_v63, %v1867_v45  ;;  %v2623_v59 = vpop.f32.mrb[33].mxu1 }
 0xc0b   : > { %v1870_v48 = vpop.f32.mrb[34].mxu1 }
 0xc0c   : > { %v1871_v49 = vadd.f32 %v2449_v63, %v1870_v48  ;;  %v2624_v52 = vpop.f32.mrb[35].mxu1  ;;  %v1874_v53 = vadd.f32 %v1868_v47, %v2985_v5 }
 0xc0e   : > { %v1878_v54 = vsel %vm847_vm2, %v1874_v53, 0.0  ;;  %v1875_v55 = vadd.f32 %v1871_v49, %v2987_v6  ;;  %v2716_v6 = vld [vmem:[%s2952_s16] sm:$0xff]  }
 0xc0f   : > { %1879 = vadd.xlane.f32.xlu1 %v1878_v54  ;;  %2626 = vmatpush3.bf16.msra.mxu0 %v2716_v6 }
 0xc10   : > { %v1881_v56 = vsel %vm847_vm2, %v1875_v55, 0.0  ;;  %2627 = vmatprep.subr.bf16.mxu0 %v2800_v3  ;;  %v2459_v3 = vld [vmem:[%s792_s29] ss:$0 sm:$0xff] }
 0xc11   : > { %1882 = vadd.xlane.f32.xlu0 %v1881_v56 }
 0xc13   : > { %2628 = vmatpush3.bf16.msra.mxu0 %v2717_v13 }
 0xc9c   : > { %v1880_v57 = vpop.xlane.xlu1 %1879 }
 0xc9d   : > { %v1885_v58 = vmul.f32 0.03125, %v1880_v57 }
 0xc9e   : > { %v1883_v60 = vpop.xlane.xlu0 %1882 }
 0xc9f   : > { %v1887_v61 = vsub.f32 %v1874_v53, %v1885_v58  ;;  %v1886_v62 = vmul.f32 0.03125, %v1883_v60 }
 0xca1   : > { %v1888_v0 = vsub.f32 %v1875_v55, %v1886_v62  ;;  %v1889_v1 = vmul.f32 %v1887_v61, %v1887_v61 }
 0xca3   : > { %v1891_v2 = vsel %vm847_vm2, %v1889_v1, 0.0  ;;  %v1890_v5 = vmul.f32 %v1888_v0, %v1888_v0 }
 0xca4   : > { %1892 = vadd.xlane.f32.xlu0 %v1891_v2 }
 0xca5   : > { %v1894_v4 = vsel %vm847_vm2, %v1890_v5, 0.0  ;;  %v2464_v5 = vld [vmem:[%s806_s7] ss:$0 sm:$0xff] }
 0xca6   : > { %1895 = vadd.xlane.f32.xlu1 %v1894_v4 }
 0xd31   : > { %v1893_v46 = vpop.xlane.xlu0 %1892 }
 0xd32   : > { %v1897_v50 = vmul.f32 0.03125, %v1893_v46 }
 0xd33   : > { %v1896_v51 = vpop.xlane.xlu1 %1895 }
 0xd34   : > { %v1899_v7 = vadd.f32 1e-05, %v1897_v50  ;;  %v1898_v8 = vmul.f32 0.03125, %v1896_v51 }
 0xd36   : > { %2752 = vrsqrt.f32 %v1899_v7  ;;  %v1900_v9 = vadd.f32 1e-05, %v1898_v8 }
 0xd38   : > { %2754 = vrsqrt.f32 %v1900_v9 }
 0xd40   : > { %v2753_v10 = vpop.eup %2752 }
 0xd41   : > { %v1903_v12 = vmul.f32 %v2753_v10, %v1887_v61 }
 0xd42   : > { %v2755_v14 = vpop.eup %2754 }
 0xd43   : > { %v1911_v15 = vmul.f32 %v2453_v11, %v1903_v12  ;;  %v1904_v17 = vmul.f32 %v2755_v14, %v1888_v0  ;;  %v2463_v0 = vld [vmem:[%s799_s1] ss:$0 sm:$0xff] }
 0xd45   : > { %v1912_v18 = vmul.f32 %v2453_v11, %v1904_v17  ;;  %v1919_v19 = vadd.f32 %v2454_v16, %v1911_v15 }
 0xd47   : > { %v1920_v20 = vadd.f32 %v2454_v16, %v1912_v18 }
 0xd49   : > { %v1925_v21 = vpack.c.bf16 %v1920_v20, %v1919_v19 }
 0xd4b   : > { %2630 = vmatmul.mubr.msk.bf16.vlgmr.msra.gmra.mrb[36].mxu0 %vm847_vm2, %v1925_v21 }
 0xe1e   : > { %v1982_v25 = vpop.f32.mrb[36].mxu0 }
 0xe1f   : > { %v1983_v26 = vadd.f32 %v2455_v24, %v1982_v25  ;;  %v2631_v27 = vpop.f32.mrb[37].mxu0 }
 0xe20   : > { %v1985_v28 = vpop.f32.mrb[38].mxu0 }
 0xe21   : > { %v1986_v29 = vadd.f32 %v2455_v24, %v1985_v28  ;;  %v2632_v30 = vpop.f32.mrb[39].mxu0  ;;  %v1989_v31 = vmax.f32 %v1983_v26, 0.0 }
 0xe23   : > { %v1990_v32 = vmax.f32 %v1986_v29, 0.0 }
 0xe25   : > { %v1995_v33 = vpack.c.bf16 %v1990_v32, %v1989_v31 }
 0xe27   : > { %2638 = vmatmul.mubr.msk.bf16.vlgmr.msra.gmra.mrb[36].mxu1 %vm847_vm2, %v1995_v33 }
 0xefa   : > { %v2052_v34 = vpop.f32.mrb[36].mxu1 }
 0xefb   : > { %v2053_v35 = vadd.f32 %v2459_v3, %v2052_v34  ;;  %v2639_v36 = vpop.f32.mrb[37].mxu1 }
 0xefc   : > { %v2055_v37 = vpop.f32.mrb[38].mxu1 }
 0xefd   : > { %v2056_v38 = vadd.f32 %v2459_v3, %v2055_v37  ;;  %v2640_v39 = vpop.f32.mrb[39].mxu1  ;;  %v2059_v40 = vadd.f32 %v2053_v35, %v1919_v19 }
 0xeff   : > { %v2063_v41 = vsel %vm847_vm2, %v2059_v40, 0.0  ;;  %v2060_v42 = vadd.f32 %v2056_v38, %v1920_v20 }
 0xf00   : > { %2064 = vadd.xlane.f32.xlu0 %v2063_v41 }
 0xf01   : > { %v2066_v43 = vsel %vm847_vm2, %v2060_v42, 0.0 }
 0xf02   : > { %2067 = vadd.xlane.f32.xlu1 %v2066_v43 }
 0xf8d   : > { %v2065_v44 = vpop.xlane.xlu0 %2064 }
 0xf8e   : > { %v2069_v63 = vmul.f32 0.03125, %v2065_v44 }
 0xf8f   : > { %v2068_v45 = vpop.xlane.xlu1 %2067 }
 0xf90   : > { %v2071_v47 = vsub.f32 %v2059_v40, %v2069_v63  ;;  %v2070_v59 = vmul.f32 0.03125, %v2068_v45 }
 0xf92   : > { %v2072_v48 = vsub.f32 %v2060_v42, %v2070_v59  ;;  %v2073_v49 = vmul.f32 %v2071_v47, %v2071_v47 }
 0xf94   : > { %v2075_v52 = vsel %vm847_vm2, %v2073_v49, 0.0  ;;  %v2074_v53 = vmul.f32 %v2072_v48, %v2072_v48 }
 0xf95   : > { %2076 = vadd.xlane.f32.xlu0 %v2075_v52 }
 0xf96   : > { %v2078_v54 = vsel %vm847_vm2, %v2074_v53, 0.0 }
 0xf97   : > { %2079 = vadd.xlane.f32.xlu1 %v2078_v54 }
0x1022   : > { %v2077_v55 = vpop.xlane.xlu0 %2076 }
0x1023   : > { %v2081_v56 = vmul.f32 0.03125, %v2077_v55 }
0x1024   : > { %v2080_v57 = vpop.xlane.xlu1 %2079 }
0x1025   : > { %v2083_v58 = vadd.f32 1e-05, %v2081_v56  ;;  %v2082_v60 = vmul.f32 0.03125, %v2080_v57 }
0x1027   : > { %2756 = vrsqrt.f32 %v2083_v58  ;;  %v2084_v61 = vadd.f32 1e-05, %v2082_v60 }
0x1029   : > { %2758 = vrsqrt.f32 %v2084_v61 }
0x1031   : > { %v2757_v62 = vpop.eup %2756 }
0x1032   : > { %v2087_v1 = vmul.f32 %v2757_v62, %v2071_v47 }
0x1033   : > { %v2759_v2 = vpop.eup %2758 }
0x1034   : > { %v2095_v4 = vmul.f32 %v2463_v0, %v2087_v1  ;;  %v2088_v6 = vmul.f32 %v2759_v2, %v2072_v48  ;;  %2110 = sbr.rel (%p2465_p8) target bundleno = 4169 (0x1049), region = 80 }
0x1036   : > { %v2103_v13 = vadd.f32 %v2464_v5, %v2095_v4  ;;  %v2096_v46 = vmul.f32 %v2463_v0, %v2088_v6 }
0x1038   : > { %2105 = vst.msk [vmem:[#allocation2] sm:$0xff] %vm847_vm2, %v2103_v13  ;;  %v2104_v50 = vadd.f32 %v2464_v5, %v2096_v46  ;;  %v2111_v51 = vsel (!%p2465_p8), %vm847_vm2, %v2103_v13, -inf }
0x1039   : > { %v2112_v8 = vrot.slane (!%p2465_p8), %v2111_v51, 4 }
0x103a   : > { %2106 = vst.msk [vmem:[#allocation2 + $0x8] sm:$0xff] %vm847_vm2, %v2104_v50  ;;  %v2118_v7 = vsel (!%p2465_p8), %vm847_vm2, %v2104_v50, -inf }
0x103b   : > { %v2119_v9 = vrot.slane %v2118_v7, 4  ;;  %v2113_v10 = vmax.f32 %v2111_v51, %v2112_v8 }
0x103d   : > { %v2120_v11 = vmax.f32 %v2118_v7, %v2119_v9  ;;  %v2114_v12 = vrot.slane %v2113_v10, 2 }
0x103f   : > { %v2121_v14 = vrot.slane %v2120_v11, 2  ;;  %v2115_v15 = vmax.f32 %v2113_v10, %v2114_v12 }
0x1041   : > { %v2122_v17 = vmax.f32 %v2120_v11, %v2121_v14  ;;  %v2116_v16 = vrot.slane %v2115_v15, 1 }
0x1043   : > { %v2123_v18 = vrot.slane %v2122_v17, 1  ;;  %v2117_v19 = vmax.f32 %v2115_v15, %v2116_v16 }
0x1045   : > { %v2124_v20 = vmax.f32 %v2122_v17, %v2123_v18 }
0x1047   : > { %v2128_v21 = vsel %vm2127_vm7, %v2124_v20, %v2117_v19 }
0x1048   : > { %2131 = vst.msk [vmem:[%s2978_s17] sm:$0x3] %vm2130_vm8, %v2128_v21 }
0x1049 PF: > { %s3272_s1 = sld [smem:[#allocation6_spill]]  ;;  %s3273_s25 = sld [smem:[#allocation4_spill]] }
0x104a   : > { %s3274_s26 = sld [smem:[#allocation5_spill]]  ;;  %s3275_s27 = sld [smem:[#allocation7_spill]] }
0x104b   : > { %s3276_s28 = sld [smem:[#allocation8_spill]] }
0x104f   : > { %s23_s29 = sadd.s32 1, %s3272_s1  }
0x1050   : > { %p20_p9 = scmp.ge.s32.totalorder %s23_s29, 6  }
0x1052   :  { %22 = sbr.rel (!%p20_p9) target bundleno = 8 (0x8), region = 146 }

// kernel: _lambda_.8
= control target key start
LH: loop header
LB: loop body
LE: loop exit
PB: predicated region body
PF: predicated region fallthrough
CT: control target
= control target key end

     0   :  { %s3194_s25 = smov 0   ;;  %s3196_s26 = smov 0   ;;  %s3570_s0 = inlined_call_operand.vmem [shape: f32[2,32,32], index: 0, kind: input, shape index: {}]   ;;  %s3571_s1 = inlined_call_operand.vmem [shape: bf16[2,2,32,96], index: 1, kind: input, shape index: {}]   ;;  %s3572_s2 = inlined_call_operand.vmem [shape: f32[2,2,1,96], index: 2, kind: input, shape index: {}]   ;;  %s3573_s3 = inlined_call_operand.vmem [shape: bf16[2,2,32,32], index: 3, kind: input, shape index: {}]   ;;  %s3574_s4 = inlined_call_operand.vmem [shape: f32[2,2,1,32], index: 4, kind: input, shape index: {}]   ;;  %s3575_s5 = inlined_call_operand.vmem [shape: f32[2,2,1,32], index: 5, kind: input, shape index: {}, may-alias: {5,11}]   ;;  %s3576_s6 = inlined_call_operand.vmem [shape: f32[2,2,1,32], index: 6, kind: input, shape index: {}, may-alias: {6,12}]   ;;  %s3577_s7 = inlined_call_operand.vmem [shape: bf16[2,2,32,32], index: 7, kind: input, shape index: {}]   ;;  %s3578_s8 = inlined_call_operand.vmem [shape: f32[2,2,1,32], index: 8, kind: input, shape index: {}]   ;;  %s3579_s9 = inlined_call_operand.vmem [shape: bf16[2,2,32,32], index: 9, kind: input, shape index: {}]   ;;  %s3580_s10 = inlined_call_operand.vmem [shape: f32[2,2,1,32], index: 10, kind: input, shape index: {}]   ;;  %s3581_s11 = inlined_call_operand.vmem [shape: f32[2,2,1,32], index: 11, kind: input, shape index: {}, may-alias: {5,11}]   ;;  %s3582_s12 = inlined_call_operand.vmem [shape: f32[2,2,1,32], index: 12, kind: input, shape index: {}, may-alias: {6,12}]   ;;  %s3583_s13 = inlined_call_operand.vmem [shape: f32[2,2,32], index: 13, kind: output, shape index: {}]  }
   0x1   :  { %3588 = sst [smem:[#allocation9_spill]] %s3570_s0  ;;  %s3198_s27 = smov 0  }
   0x2   :  { %3589 = sst [smem:[#allocation10_spill]] %s3571_s1  ;;  %s3200_s28 = smov 0  }
   0x3   :  { %3590 = sst [smem:[#allocation11_spill]] %s3573_s3  ;;  %s3202_s29 = smov 0  }
   0x4   :  { %3591 = sst [smem:[#allocation12_spill]] %s3576_s6 }
   0x5   :  { %3592 = sst [smem:[#allocation13_spill]] %s3577_s7 }
   0x6   :  { %3593 = sst [smem:[#allocation14_spill]] %s3582_s12 }
   0x7   :  { %3594 = sst [smem:[#allocation15_spill]] %s3583_s13 }
   0x8 LB: > { %3595 = sst [smem:[#allocation3_spill]] %s3090_s25  ;;  %s32_s30 = sadd.s32 1, %s3098_s27  ;;  %s3106_s29 = sphi %s3202_s29, %s23_s29   ;;  %s3102_s28 = sphi %s3200_s28, %s3621_s28   ;;  %s3098_s27 = sphi %s3198_s27, %s3620_s27   ;;  %s3094_s26 = sphi %s3196_s26, %s3619_s26   ;;  %s3090_s25 = sphi %s3194_s25, %s3618_s25  }
   0x9   : > { %3596 = sst [smem:[#allocation4_spill]] %s3098_s27  ;;  %s35_s14 = sadd.s32 1, %s3102_s28 }
   0xa   : > { %3597 = sst [smem:[#allocation5_spill]] %s3102_s28  ;;  %p33_p0 = scmp.ge.s32.totalorder %s32_s30, 2 }
   0xb   : > { %3598 = sst [smem:[#allocation6_spill]] %s3106_s29  ;;  %p2647_p1 = scmp.ge.s32.totalorder %s3106_s29, 1 }
   0xc   : > { %p575_p2 = scmp.lt.s32.totalorder %s3106_s29, 5  ;;  %s3623_s30 = smov (%p33_p0, %s32_s30), 0 }
   0xd   : > { %3599 = sst [smem:[#allocation7_spill]] %s3623_s30  ;;  %s3625_s14 = smov (!%p33_p0, %s35_s14), %s3102_s28 }
   0xe   : > { %p576_p3 = pnand %p2647_p1, %p575_p2  ;;  %p37_p4 = scmp.ge.s32.totalorder %s3625_s14, 2 }
   0xf   : > { %p710_p5 = scmp.lt.s32.totalorder (!%p576_p3), %s3094_s26, 1  ;;  %p717_p6 = scmp.lt.s32.totalorder (!%p576_p3), %s3090_s25, 1 }
  0x10   : > { %s3627_s14 = smov (%p37_p4, %s3625_s14), 0  ;;  %579 = sbr.rel (%p576_p3) target bundleno = 4239 (0x108f), region = 72 }
  0x11   : > { %3600 = sst [smem:[#allocation8_spill]] %s3627_s14  ;;  %s3601_s0 = sld [smem:[#allocation9_spill]] (!%p576_p3) }
  0x12   : > { %s3602_s1 = sld [smem:[#allocation10_spill]] (!%p576_p3)  ;;  %s3603_s3 = sld [smem:[#allocation11_spill]] (!%p576_p3) }
  0x13   : > { %s3605_s7 = sld [smem:[#allocation13_spill]] (!%p576_p3)  ;;  %s3606_s14 = sld [smem:[#allocation14_spill]] (!%p576_p3) }
  0x14   : > { %s3607_s19 = sld [smem:[#allocation15_spill]] (!%p576_p3) }
  0x17   : > { %s3629_s26 = smov (!%p710_p5, %s3094_s26), 1 }
  0x18   : > { %s718_s15 = scalar_select %p717_p6, %s3090_s25, 1 }
  0x19   : > { %s2715_s16 = sshll.u32 %s3629_s26, 5  ;;  %s2651_s17 = sshll.u32 %s3629_s26, 3 }
  0x1a   : > { %s714_s20 = scalar_lea.vmem %s3601_s0, %s2715_s16  ;;  %s2650_s21 = sshll.u32 %s718_s15, 2 }
  0x1b   : > { %s721_s22 = sadd.s32 %s2651_s17, %s2650_s21  ;;  %s2653_s23 = sshll.u32 %s3629_s26, 1 }
  0x1c   : > { %s2652_s24 = sshll.u32 %s721_s22, 2  ;;  %s3231_s30 = sadd.s32 %s2653_s23, %s718_s15 }
  0x1d   : > { %s723_s27 = scalar_lea.vmem %s3602_s1, %s2652_s24  ;;  %s3243_s15 = scalar_lea.vmem %s3603_s3, %s2652_s24 }
  0x1e   : > { %s3260_s16 = scalar_lea.vmem %s3605_s7, %s2652_s24  ;;  %s3269_s28 = scalar_lea.vmem %s3579_s9, %s2652_s24 }
  0x1f   : > { %s792_s29 = scalar_lea.vmem %s3580_s10, %s3231_s30  ;;  %s799_s1 = scalar_lea.vmem %s3581_s11, %s3231_s30 }
  0x20   : > { %s806_s7 = scalar_lea.vmem %s3606_s14, %s3231_s30  ;;  %s3286_s17 = scalar_lea.vmem %s3607_s19, %s2653_s23 }
  0x21   : > { %s3608_s3 = sld [smem:[#allocation3_spill]] }
  0x27   : > { %p2671_p7 = scmp.ne.s32.totalorder %s3608_s3, 0 }
  0x28   : > { %v816_v0 = vld [vmem:[%s714_s20] sm:$0xff] (!%p2671_p7)  ;;  %vm820_vm0 = vcmask (!%p2671_p7), 261120   ;;  %v817_v1 = vld [vmem:[%s714_s20 + $0x8] sm:$0xff] (!%p2671_p7)  ;;  %v818_v2 = vld [vmem:[%s714_s20 + $0x10] sm:$0xff] (!%p2671_p7) }
  0x29   : > { %815 = sbr.rel (%p2671_p7) target bundleno = 48 (0x30), region = 76  ;;  %821 = vst.msk [vmem:[#allocation2] sm:$0xff] (!%p2671_p7), %vm820_vm0, %v816_v0  ;;  %822 = vst.msk [vmem:[#allocation2 + $0x8] sm:$0xff] (!%p2671_p7), %vm820_vm0, %v817_v1  ;;  %v819_v3 = vld [vmem:[%s714_s20 + $0x18] sm:$0xff] (!%p2671_p7) }
  0x2a   : > { %823 = vst.msk [vmem:[#allocation2 + $0x10] sm:$0xff] (!%p2671_p7), %vm820_vm0, %v818_v2  ;;  %824 = vst.msk [vmem:[#allocation2 + $0x18] sm:$0xff] (!%p2671_p7), %vm820_vm0, %v819_v3 }
  0x30 PF: > { %v2978_v4 = vld [vmem:[%s723_s27] sm:$0xff]   ;;  %v2979_v5 = vld [vmem:[%s723_s27 + $0x8] sm:$0xff]   ;;  %vm854_vm1 = vcmask 261120   ;;  %v3108_v12 = vmov 0.0   ;;  %s3609_s20 = scalar_lea.vmem %s3572_s2, %s3231_s30  ;;  %vm3109_vm2 = vmmov 0   ;;  %s3110_s23 = smov 96  }
  0x31   : > { %2764 = vmatprep.subr.bf16.mxu0 %v2978_v4  ;;  %v3289_v6 = vld [vmem:[#allocation2] sm:$0xff]  ;;  %v826_v7 = vld [vmem:[#allocation2 + $0x8] sm:$0xff]  ;;  %v3291_v8 = vld [vmem:[#allocation2 + $0x10] sm:$0xff]  ;;  %2772 = vmatprep.subr.bf16.mxu1 %v3108_v12  ;;  %vm915_vm3 = vcmask 64512   ;;  %vm1013_vm4 = vcmask 130048   ;;  %s3111_s24 = smov 64  }
  0x32   : > { %2765 = vmatpush3.bf16.msra.mxu0 %v2978_v4  ;;  %v833_v9 = vpack.c.bf16 %v826_v7, %v3289_v6  ;;  %v828_v10 = vld [vmem:[#allocation2 + $0x18] sm:$0xff]  ;;  %v2672_v14 = vld [vmem:[%s3609_s20] ss:$0 sm:$0xff]  ;;  %2774 = vmatprep.mubr.msk.bf16.mxu1 %vm3109_vm2, %v3108_v12  ;;  %s3112_s14 = smov 88   ;;  %s3113_s21 = smov 120   ;;  %vm1936_vm5 = vcmask 195584  }
  0x33   : > { %2766 = vmatprep.subr.bf16.mxu0 %v2979_v5  ;;  %v834_v11 = vpack.c.bf16 %v828_v10, %v3291_v8  ;;  %s3114_s0 = smov 56   ;;  %s3115_s22 = smov 80  }
  0x34   : > { %2768 = vmatprep.mubr.msk.bf16.mxu0 %vm854_vm1, %v833_v9  ;;  %s3116_s13 = smov 112   ;;  %s3117_s25 = smov 48  }
  0x35   : > { %s3118_s12 = smov 72   ;;  %s3119_s18 = smov 104  }
  0x36   : > { %2767 = vmatpush3.bf16.msra.mxu0 %v2979_v5  ;;  %s3120_s26 = smov 40   ;;  %s3121_s19 = smov 8  }
  0x37   : > { %2778 = vmatprep.subr.bf16.mxu0 %v3108_v12  ;;  %s3122_s3 = smov 16   ;;  %s3123_s6 = smov 24  }
  0x38   : > { %s3610_s20 = scalar_lea.vmem %s3574_s4, %s3231_s30 }
  0x39   : > { %2769 = vmatmul.mubr.msk.bf16.vlgmr.msra.gmra.mrb[0].mxu0 %vm854_vm1, %v834_v11 }
  0x3a   : > { %2780 = vmatprep.mubr.msk.bf16.mxu0 %vm3109_vm2, %v3108_v12 }
 0x10c   : > { %v2770_v13 = vpop.f32.mrb[0].mxu0 }
 0x10d   : > { %v895_v15 = vpop.f32.mrb[1].mxu0  ;;  %v904_v17 = vadd.f32 %v2770_v13, %v2672_v14 }
 0x10e   : > { %v2771_v16 = vpop.f32.mrb[2].mxu0  ;;  %v896_v20 = vadd.f32 %v2672_v14, %v895_v15 }
 0x10f   : > { %v907_v18 = vadd.f32 %v2771_v16, %v2672_v14  ;;  %v898_v19 = vpop.f32.mrb[3].mxu0 }
 0x110   : > { %v899_v21 = vadd.f32 %v2672_v14, %v898_v19 }
 0x111   : > { %v3308_v22 = vpack.c.bf16 %v907_v18, %v904_v17 }
 0x112   : > { %v3310_v23 = vpack.c.bf16 %v899_v21, %v896_v20 }
 0x114   : > { %913 = vrot.lane.b32.xlu0 %v3310_v23, %s3110_s23 }
 0x118   : > { %964 = vrot.lane.b32.xlu0 %v3308_v22, %s3110_s23 }
 0x186   : > { %v914_v24 = vpop.permute.xlu0 %913 }
 0x187   : > { %v920_v25 = vsel %vm915_vm3, %v914_v24, 0 }
 0x188   : > { %2773 = vmatpush3.bf16.xpose.msra.mxu1 %v920_v25 }
 0x189   : > { %2784 = vmatprep.subr.bf16.mxu1 %v3108_v12 }
 0x18a   : > { %v965_v26 = vpop.permute.xlu0 %964 }
 0x18b   : > { %v970_v27 = vsel %vm915_vm3, %v965_v26, 0 }
 0x18c   : > { %2779 = vmatpush3.bf16.xpose.msra.mxu0 %v970_v27 }
 0x18d   : > { %2790 = vmatprep.subr.bf16.mxu0 %v3108_v12 }
 0x18f   : > { %2775 = vmatmul.mubr.msk.bf16.vlgmr.msra.gmra.mrb[0].mxu1 %vm915_vm3, %v3310_v23 }
 0x190   : > { %2786 = vmatprep.mubr.msk.bf16.mxu1 %vm3109_vm2, %v3108_v12 }
 0x193   : > { %2781 = vmatmul.mubr.msk.bf16.vlgmr.msra.gmra.mrb[4].mxu0 %vm915_vm3, %v3308_v22 }
 0x194   : > { %2792 = vmatprep.mubr.msk.bf16.mxu0 %vm3109_vm2, %v3108_v12 }
 0x262   : > { %v956_v28 = vpop.f32.mrb[0].mxu1 }
 0x263   : > { %v2776_v29 = vpop.f32.mrb[1].mxu1  ;;  %v1014_v30 = vsel %vm1013_vm4, %v956_v28, -inf }
 0x264   : > { %1015 = vmax.xlane.f32.xlu1 %v1014_v30  ;;  %v959_v31 = vpop.f32.mrb[2].mxu1 }
 0x265   : > { %v2777_v32 = vpop.f32.mrb[3].mxu1  ;;  %v1017_v35 = vsel %vm1013_vm4, %v959_v31, -inf }
 0x266   : > { %v1006_v33 = vpop.f32.mrb[4].mxu0 }
 0x267   : > { %v2782_v34 = vpop.f32.mrb[5].mxu0  ;;  %v1020_v36 = vsel %vm1013_vm4, %v1006_v33, -inf }
 0x268   : > { %1018 = vmax.xlane.f32.xlu1 %v1017_v35  ;;  %1021 = vmax.xlane.f32.xlu0 %v1020_v36  ;;  %v1009_v37 = vpop.f32.mrb[6].mxu0 }
 0x269   : > { %v2783_v38 = vpop.f32.mrb[7].mxu0  ;;  %v1023_v39 = vsel %vm1013_vm4, %v1009_v37, -inf }
 0x26c   : > { %1024 = vmax.xlane.f32.xlu1 %v1023_v39 }
 0x27d   : > { %1060 = vrot.lane.b32.xlu1 %v3310_v23, %s3111_s24 }
 0x27e   : > { %1107 = vrot.lane.b32.xlu0 %v3308_v22, %s3111_s24  ;;  %s3611_s24 = scalar_lea.vmem %s3575_s5, %s3231_s30 }
 0x281   : > { %1156 = vrot.lane.b32.xlu1 %v3310_v23, %s3112_s14 }
 0x285   : > { %1207 = vrot.lane.b32.xlu1 %v3308_v22, %s3112_s14 }
 0x2f1   : > { %v1016_v40 = vpop.xlane.xlu1 %1015 }
 0x2f2   : > { %v1026_v41 = vsub.f32 %v956_v28, %v1016_v40 }
 0x2f4   : > { %v1030_v46 = vmul.f32 1.442695, %v1026_v41 }
 0x2f5   : > { %v1019_v42 = vpop.xlane.xlu1 %1018  ;;  %v1022_v43 = vpop.xlane.xlu0 %1021 }
 0x2f6   : > { %v1028_v44 = vsub.f32 %v1006_v33, %v1022_v43  ;;  %v1027_v50 = vsub.f32 %v959_v31, %v1019_v42 }
 0x2f8   : > { %v1034_v45 = vmul.f32 1.442695, %v1028_v44  ;;  %v1032_v53 = vmul.f32 1.442695, %v1027_v50 }
 0x2f9   : > { %v1108_v47 = vpop.permute.xlu0 %1107  ;;  %v1025_v48 = vpop.xlane.xlu1 %1024 }
 0x2fa   : > { %v1029_v49 = vsub.f32 %v1009_v37, %v1025_v48  ;;  %2791 = vmatpush3.bf16.msra.mxu0 %v1108_v47  ;;  %2986 = vpow2.f32 %v1034_v45 }
 0x2fb   : > { %2802 = vmatprep.subr.bf16.mxu0 %v3108_v12  ;;  %2988 = vpow2.f32 %v1030_v46 }
 0x2fc   : > { %v1036_v51 = vmul.f32 1.442695, %v1029_v49 }
 0x2fd   : > { %v1061_v52 = vpop.permute.xlu1 %1060 }
 0x2fe   : > { %2785 = vmatpush3.bf16.msra.mxu1 %v1061_v52  ;;  %2990 = vpow2.f32 %v1036_v51 }
 0x2ff   : > { %2796 = vmatprep.subr.bf16.mxu1 %v3108_v12  ;;  %2992 = vpow2.f32 %v1032_v53 }
 0x301   : > { %v1157_v62 = vpop.permute.xlu1 %1156 }
 0x302   : > { %v1162_v19 = vsel %vm915_vm3, %v1157_v62, 0 }
 0x304   : > { %v2987_v54 = vpop.eup %2986 }
 0x305   : > { %v1044_v55 = vsel %vm1013_vm4, %v2987_v54, 0.0  ;;  %v2989_v56 = vpop.eup %2988  ;;  %v1208_v63 = vpop.permute.xlu1 %1207 }
 0x306   : > { %1045 = vadd.xlane.f32.xlu1 %v1044_v55  ;;  %v1038_v57 = vsel %vm1013_vm4, %v2989_v56, 0.0  ;;  %v1213_v14 = vsel %vm915_vm3, %v1208_v63, 0 }
 0x308   : > { %v2991_v58 = vpop.eup %2990 }
 0x309   : > { %v1047_v59 = vsel %vm1013_vm4, %v2991_v58, 0.0  ;;  %v2993_v60 = vpop.eup %2992 }
 0x30a   : > { %1039 = vadd.xlane.f32.xlu1 %v1038_v57  ;;  %v1041_v61 = vsel %vm1013_vm4, %v2993_v60, 0.0 }
 0x30e   : > { %1048 = vadd.xlane.f32.xlu1 %v1047_v59 }
 0x312   : > { %1042 = vadd.xlane.f32.xlu1 %v1041_v61 }
 0x323   : > { %1154 = vrot.lane.b32.xlu1 %v3310_v23, %s3113_s21 }
 0x327   : > { %1205 = vrot.lane.b32.xlu1 %v3308_v22, %s3113_s21 }
 0x393   : > { %v1046_v0 = vpop.xlane.xlu1 %1045 }
 0x394   : > { %2994 = vrcp.f32 %v1046_v0 }
 0x397   : > { %v1040_v1 = vpop.xlane.xlu1 %1039 }
 0x39b   : > { %v1049_v2 = vpop.xlane.xlu1 %1048 }
 0x39c   : > { %2996 = vrcp.f32 %v1049_v2 }
 0x39d   : > { %2998 = vrcp.f32 %v1040_v1 }
 0x39e   : > { %v2995_v4 = vpop.eup %2994 }
 0x39f   : > { %v1043_v3 = vpop.xlane.xlu1 %1042  ;;  %v1056_v7 = vmul.f32 %v2995_v4, %v2987_v54 }
 0x3a0   : > { %3000 = vrcp.f32 %v1043_v3 }
 0x3a3   : > { %v1155_v17 = vpop.permute.xlu1 %1154 }
 0x3a6   : > { %v2997_v5 = vpop.eup %2996 }
 0x3a7   : > { %v1057_v9 = vmul.f32 %v2997_v5, %v2991_v58  ;;  %v2999_v10 = vpop.eup %2998  ;;  %v1206_v20 = vpop.permute.xlu1 %1205 }
 0x3a8   : > { %v1054_v15 = vmul.f32 %v2999_v10, %v2989_v56 }
 0x3a9   : > { %v1059_v11 = vpack.c.bf16 %v1057_v9, %v1056_v7 }
 0x3aa   : > { %v3001_v13 = vpop.eup %3000 }
 0x3ab   : > { %v1055_v16 = vmul.f32 %v3001_v13, %v2993_v60  ;;  %2793 = vmatmul.mubr.msk.bf16.vlgmr.msra.gmra.mrb[8].mxu0 %vm1013_vm4, %v1059_v11 }
 0x3ac   : > { %2803 = vmatpush3.bf16.xpose.msra.mxu0 %v1213_v14  ;;  %2804 = vmatprep.mubr.msk.bf16.mxu0 %vm3109_vm2, %v3108_v12 }
 0x3ad   : > { %v1058_v18 = vpack.c.bf16 %v1055_v16, %v1054_v15  ;;  %2814 = vmatprep.subr.bf16.mxu0 %v3108_v12 }
 0x3af   : > { %2787 = vmatmul.mubr.msk.bf16.vlgmr.msra.gmra.mrb[4].mxu1 %vm1013_vm4, %v1058_v18 }
 0x3b0   : > { %2797 = vmatpush3.bf16.xpose.msra.mxu1 %v1162_v19  ;;  %2798 = vmatprep.mubr.msk.bf16.mxu1 %vm3109_vm2, %v3108_v12 }
 0x3b1   : > { %2808 = vmatprep.subr.bf16.mxu1 %v3108_v12 }
 0x3b3   : > { %2805 = vmatmul.mubr.msk.bf16.vlgmr.msra.gmra.mrb[12].mxu0 %vm915_vm3, %v1206_v20 }
 0x3b4   : > { %2816 = vmatprep.mubr.msk.bf16.mxu0 %vm3109_vm2, %v3108_v12 }
 0x3b7   : > { %2799 = vmatmul.mubr.msk.bf16.vlgmr.msra.gmra.mrb[8].mxu1 %vm915_vm3, %v1155_v17 }
 0x3b8   : > { %2810 = vmatprep.mubr.msk.bf16.mxu1 %vm3109_vm2, %v3108_v12 }
 0x47e   : > { %v3358_v21 = vpop.f32.mrb[8].mxu0 }
 0x47f   : > { %v2794_v24 = vpop.f32.mrb[9].mxu0 }
 0x480   : > { %v3360_v25 = vpop.f32.mrb[10].mxu0 }
 0x481   : > { %v2795_v26 = vpop.f32.mrb[11].mxu0 }
 0x482   : > { %v3362_v27 = vpop.f32.mrb[4].mxu1 }
 0x483   : > { %v2788_v28 = vpop.f32.mrb[5].mxu1 }
 0x484   : > { %v3364_v29 = vpop.f32.mrb[6].mxu1 }
 0x485   : > { %v2789_v30 = vpop.f32.mrb[7].mxu1 }
 0x486   : > { %v1249_v31 = vpop.f32.mrb[12].mxu0 }
 0x487   : > { %v2806_v32 = vpop.f32.mrb[13].mxu0  ;;  %v1262_v41 = vsel %vm1013_vm4, %v1249_v31, -inf }
 0x488   : > { %v1252_v33 = vpop.f32.mrb[14].mxu0 }
 0x489   : > { %v2807_v34 = vpop.f32.mrb[15].mxu0  ;;  %v1265_v42 = vsel %vm1013_vm4, %v1252_v33, -inf }
 0x48a   : > { %v1198_v35 = vpop.f32.mrb[8].mxu1 }
 0x48b   : > { %v2800_v36 = vpop.f32.mrb[9].mxu1  ;;  %v1256_v37 = vsel %vm1013_vm4, %v1198_v35, -inf }
 0x48c   : > { %1257 = vmax.xlane.f32.xlu0 %v1256_v37  ;;  %v1201_v38 = vpop.f32.mrb[10].mxu1 }
 0x48d   : > { %v2801_v39 = vpop.f32.mrb[11].mxu1  ;;  %v1259_v40 = vsel %vm1013_vm4, %v1201_v38, -inf }
 0x48e   : > { %1260 = vmax.xlane.f32.xlu1 %v1259_v40 }
 0x490   : > { %1263 = vmax.xlane.f32.xlu0 %v1262_v41 }
 0x494   : > { %1266 = vmax.xlane.f32.xlu0 %v1265_v42 }
 0x49f   : > { %1302 = vrot.lane.b32.xlu1 %v3310_v23, %s3114_s0 }
 0x519   : > { %v1258_v43 = vpop.xlane.xlu0 %1257 }
 0x51a   : > { %v1268_v45 = vsub.f32 %v1198_v35, %v1258_v43 }
 0x51b   : > { %v1261_v44 = vpop.xlane.xlu1 %1260 }
 0x51c   : > { %v1272_v49 = vmul.f32 1.442695, %v1268_v45  ;;  %v1269_v50 = vsub.f32 %v1201_v38, %v1261_v44 }
 0x51d   : > { %v1264_v46 = vpop.xlane.xlu0 %1263 }
 0x51e   : > { %v1270_v47 = vsub.f32 %v1249_v31, %v1264_v46  ;;  %v1274_v54 = vmul.f32 1.442695, %v1269_v50 }
 0x51f   : > { %v1303_v48 = vpop.permute.xlu1 %1302 }
 0x520   : > { %v1276_v51 = vmul.f32 1.442695, %v1270_v47  ;;  %2809 = vmatpush3.bf16.msra.mxu1 %v1303_v48 }
 0x521   : > { %v1267_v52 = vpop.xlane.xlu0 %1266  ;;  %2820 = vmatprep.subr.bf16.mxu1 %v3108_v12 }
 0x522   : > { %3002 = vpow2.f32 %v1276_v51  ;;  %v1271_v53 = vsub.f32 %v1252_v33, %v1267_v52 }
 0x523   : > { %3004 = vpow2.f32 %v1272_v49 }
 0x524   : > { %v1278_v55 = vmul.f32 1.442695, %v1271_v53 }
 0x526   : > { %3006 = vpow2.f32 %v1278_v55 }
 0x527   : > { %3008 = vpow2.f32 %v1274_v54 }
 0x52c   : > { %v3003_v56 = vpop.eup %3002 }
 0x52d   : > { %v1286_v57 = vsel %vm1013_vm4, %v3003_v56, 0.0  ;;  %v3005_v58 = vpop.eup %3004 }
 0x52e   : > { %1287 = vadd.xlane.f32.xlu1 %v1286_v57  ;;  %v1280_v60 = vsel %vm1013_vm4, %v3005_v58, 0.0 }
 0x530   : > { %v3007_v59 = vpop.eup %3006 }
 0x531   : > { %v1289_v61 = vsel %vm1013_vm4, %v3007_v59, 0.0  ;;  %v3009_v62 = vpop.eup %3008 }
 0x532   : > { %1281 = vadd.xlane.f32.xlu1 %v1280_v60  ;;  %1290 = vadd.xlane.f32.xlu0 %v1289_v61  ;;  %v1283_v63 = vsel %vm1013_vm4, %v3009_v62, 0.0 }
 0x536   : > { %1284 = vadd.xlane.f32.xlu0 %v1283_v63 }
 0x543   : > { %1398 = vrot.lane.b32.xlu1 %v3310_v23, %s3115_s22 }
 0x547   : > { %1449 = vrot.lane.b32.xlu1 %v3308_v22, %s3115_s22 }
 0x54b   : > { %1447 = vrot.lane.b32.xlu1 %v3308_v22, %s3116_s13 }
 0x54c   : > { %1349 = vrot.lane.b32.xlu0 %v3308_v22, %s3114_s0  ;;  %s3612_s0 = sld [smem:[#allocation12_spill]] }
 0x550   : > { %1396 = vrot.lane.b32.xlu0 %v3310_v23, %s3116_s13 }
 0x552   : > { %s3613_s22 = scalar_lea.vmem %s3612_s0, %s3231_s30 }
 0x5bb   : > { %v1288_v0 = vpop.xlane.xlu1 %1287 }
 0x5bc   : > { %3010 = vrcp.f32 %v1288_v0 }
 0x5bf   : > { %v1282_v1 = vpop.xlane.xlu1 %1281  ;;  %v1291_v2 = vpop.xlane.xlu0 %1290 }
 0x5c0   : > { %3012 = vrcp.f32 %v1291_v2 }
 0x5c1   : > { %3014 = vrcp.f32 %v1282_v1 }
 0x5c3   : > { %v1285_v3 = vpop.xlane.xlu0 %1284  ;;  %v1399_v4 = vpop.permute.xlu1 %1398 }
 0x5c4   : > { %3016 = vrcp.f32 %v1285_v3  ;;  %v1404_v24 = vsel %vm915_vm3, %v1399_v4, 0 }
 0x5c6   : > { %v3011_v7 = vpop.eup %3010 }
 0x5c7   : > { %v1350_v5 = vpop.permute.xlu0 %1349  ;;  %v1298_v11 = vmul.f32 %v3011_v7, %v3003_v56  ;;  %v1450_v14 = vpop.permute.xlu1 %1449 }
 0x5c8   : > { %2815 = vmatpush3.bf16.msra.mxu0 %v1350_v5  ;;  %v1455_v19 = vsel %vm915_vm3, %v1450_v14, 0 }
 0x5c9   : > { %2826 = vmatprep.subr.bf16.mxu0 %v3108_v12 }
 0x5ca   : > { %v3013_v9 = vpop.eup %3012 }
 0x5cb   : > { %v3015_v10 = vpop.eup %3014  ;;  %v1299_v13 = vmul.f32 %v3013_v9, %v3007_v59  ;;  %v1448_v26 = vpop.permute.xlu1 %1447 }
 0x5cc   : > { %v1296_v17 = vmul.f32 %v3015_v10, %v3005_v58  ;;  %v1397_v28 = vpop.permute.xlu0 %1396 }
 0x5cd   : > { %v1301_v16 = vpack.c.bf16 %v1299_v13, %v1298_v11 }
 0x5ce   : > { %v3017_v15 = vpop.eup %3016 }
 0x5cf   : > { %v1297_v18 = vmul.f32 %v3017_v15, %v3009_v62  ;;  %2817 = vmatmul.mubr.msk.bf16.vlgmr.msra.gmra.mrb[16].mxu0 %vm1013_vm4, %v1301_v16 }
 0x5d0   : > { %2828 = vmatprep.mubr.msk.bf16.mxu0 %vm3109_vm2, %v3108_v12 }
 0x5d1   : > { %2827 = vmatpush3.bf16.xpose.msra.mxu0 %v1455_v19  ;;  %v1300_v20 = vpack.c.bf16 %v1297_v18, %v1296_v17 }
 0x5d2   : > { %2838 = vmatprep.subr.bf16.mxu0 %v3108_v12 }
 0x5d3   : > { %2811 = vmatmul.mubr.msk.bf16.vlgmr.msra.gmra.mrb[12].mxu1 %vm1013_vm4, %v1300_v20 }
 0x5d4   : > { %2821 = vmatpush3.bf16.xpose.msra.mxu1 %v1404_v24  ;;  %2822 = vmatprep.mubr.msk.bf16.mxu1 %vm3109_vm2, %v3108_v12 }
 0x5d5   : > { %2832 = vmatprep.subr.bf16.mxu1 %v3108_v12 }
 0x5d8   : > { %2829 = vmatmul.mubr.msk.bf16.vlgmr.msra.gmra.mrb[20].mxu0 %vm915_vm3, %v1448_v26 }
 0x5d9   : > { %2840 = vmatprep.mubr.msk.bf16.mxu0 %vm3109_vm2, %v3108_v12 }
 0x5db   : > { %2823 = vmatmul.mubr.msk.bf16.vlgmr.msra.gmra.mrb[16].mxu1 %vm915_vm3, %v1397_v28 }
 0x5dc   : > { %2834 = vmatprep.mubr.msk.bf16.mxu1 %vm3109_vm2, %v3108_v12 }
 0x6a2   : > { %v3400_v30 = vpop.f32.mrb[16].mxu0 }
 0x6a3   : > { %v2818_v31 = vpop.f32.mrb[17].mxu0 }
 0x6a4   : > { %v3402_v32 = vpop.f32.mrb[18].mxu0 }
 0x6a5   : > { %v2953_v33 = vpack.i.bf16 %v3402_v32, %v3400_v30  ;;  %v2819_v34 = vpop.f32.mrb[19].mxu0 }
 0x6a6   : > { %v3406_v35 = vpop.f32.mrb[12].mxu1 }
 0x6a7   : > { %v2812_v36 = vpop.f32.mrb[13].mxu1 }
 0x6a8   : > { %v3408_v37 = vpop.f32.mrb[14].mxu1 }
 0x6a9   : > { %v2948_v38 = vpack.i.bf16 %v3408_v37, %v3406_v35  ;;  %v2813_v39 = vpop.f32.mrb[15].mxu1 }
 0x6ab   : > { %v1491_v40 = vpop.f32.mrb[20].mxu0 }
 0x6ac   : > { %v2830_v41 = vpop.f32.mrb[21].mxu0  ;;  %v1504_v50 = vsel %vm1013_vm4, %v1491_v40, -inf }
 0x6ad   : > { %v1494_v42 = vpop.f32.mrb[22].mxu0 }
 0x6ae   : > { %v1440_v43 = vpop.f32.mrb[16].mxu1  ;;  %v2831_v44 = vpop.f32.mrb[23].mxu0  ;;  %v1507_v51 = vsel %vm1013_vm4, %v1494_v42, -inf }
 0x6af   : > { %v2824_v45 = vpop.f32.mrb[17].mxu1  ;;  %v1498_v46 = vsel %vm1013_vm4, %v1440_v43, -inf }
 0x6b0   : > { %1499 = vmax.xlane.f32.xlu0 %v1498_v46  ;;  %v1443_v47 = vpop.f32.mrb[18].mxu1 }
 0x6b1   : > { %v2825_v48 = vpop.f32.mrb[19].mxu1  ;;  %v1501_v49 = vsel %vm1013_vm4, %v1443_v47, -inf }
 0x6b2   : > { %1502 = vmax.xlane.f32.xlu1 %v1501_v49 }
 0x6b4   : > { %1505 = vmax.xlane.f32.xlu0 %v1504_v50 }
 0x6b8   : > { %1508 = vmax.xlane.f32.xlu0 %v1507_v51 }
 0x6c3   : > { %1544 = vrot.lane.b32.xlu1 %v3310_v23, %s3117_s25 }
 0x73d   : > { %v1500_v52 = vpop.xlane.xlu0 %1499 }
 0x73e   : > { %v1510_v54 = vsub.f32 %v1440_v43, %v1500_v52 }
 0x73f   : > { %v1503_v53 = vpop.xlane.xlu1 %1502 }
 0x740   : > { %v1514_v58 = vmul.f32 1.442695, %v1510_v54  ;;  %v1511_v59 = vsub.f32 %v1443_v47, %v1503_v53 }
 0x741   : > { %v1506_v55 = vpop.xlane.xlu0 %1505 }
 0x742   : > { %v1512_v56 = vsub.f32 %v1491_v40, %v1506_v55  ;;  %v1516_v63 = vmul.f32 1.442695, %v1511_v59 }
 0x743   : > { %v1545_v57 = vpop.permute.xlu1 %1544 }
 0x744   : > { %v1518_v60 = vmul.f32 1.442695, %v1512_v56  ;;  %2833 = vmatpush3.bf16.msra.mxu1 %v1545_v57 }
 0x745   : > { %v1509_v61 = vpop.xlane.xlu0 %1508  ;;  %2844 = vmatprep.subr.bf16.mxu1 %v3108_v12 }
 0x746   : > { %3018 = vpow2.f32 %v1518_v60  ;;  %v1513_v62 = vsub.f32 %v1494_v42, %v1509_v61 }
 0x747   : > { %3020 = vpow2.f32 %v1514_v58 }
 0x748   : > { %v1520_v0 = vmul.f32 1.442695, %v1513_v62 }
 0x74a   : > { %3022 = vpow2.f32 %v1520_v0 }
 0x74b   : > { %3024 = vpow2.f32 %v1516_v63 }
 0x750   : > { %v3019_v1 = vpop.eup %3018 }
 0x751   : > { %v1528_v2 = vsel %vm1013_vm4, %v3019_v1, 0.0  ;;  %v3021_v3 = vpop.eup %3020 }
 0x752   : > { %1529 = vadd.xlane.f32.xlu1 %v1528_v2  ;;  %v1522_v5 = vsel %vm1013_vm4, %v3021_v3, 0.0 }
 0x754   : > { %v3023_v4 = vpop.eup %3022 }
 0x755   : > { %v1531_v7 = vsel %vm1013_vm4, %v3023_v4, 0.0  ;;  %v3025_v9 = vpop.eup %3024 }
 0x756   : > { %1523 = vadd.xlane.f32.xlu1 %v1522_v5  ;;  %1532 = vadd.xlane.f32.xlu0 %v1531_v7  ;;  %v1525_v10 = vsel %vm1013_vm4, %v3025_v9, 0.0 }
 0x75a   : > { %1526 = vadd.xlane.f32.xlu0 %v1525_v10 }
 0x767   : > { %1640 = vrot.lane.b32.xlu1 %v3310_v23, %s3118_s12 }
 0x76b   : > { %1691 = vrot.lane.b32.xlu1 %v3308_v22, %s3118_s12  ;;  %s3614_s12 = scalar_lea.vmem %s3578_s8, %s3231_s30 }
 0x76f   : > { %1689 = vrot.lane.b32.xlu1 %v3308_v22, %s3119_s18 }
 0x770   : > { %1591 = vrot.lane.b32.xlu0 %v3308_v22, %s3117_s25 }
 0x774   : > { %1638 = vrot.lane.b32.xlu0 %v3310_v23, %s3119_s18 }
 0x7df   : > { %v1530_v11 = vpop.xlane.xlu1 %1529 }
 0x7e0   : > { %3026 = vrcp.f32 %v1530_v11 }
 0x7e3   : > { %v1524_v13 = vpop.xlane.xlu1 %1523  ;;  %v1533_v14 = vpop.xlane.xlu0 %1532 }
 0x7e4   : > { %3028 = vrcp.f32 %v1533_v14 }
 0x7e5   : > { %3030 = vrcp.f32 %v1524_v13 }
 0x7e7   : > { %v1527_v15 = vpop.xlane.xlu0 %1526  ;;  %v1641_v16 = vpop.permute.xlu1 %1640 }
 0x7e8   : > { %3032 = vrcp.f32 %v1527_v15  ;;  %v1646_v42 = vsel %vm915_vm3, %v1641_v16, 0 }
 0x7ea   : > { %v3027_v18 = vpop.eup %3026 }
 0x7eb   : > { %v1592_v17 = vpop.permute.xlu0 %1591  ;;  %v1540_v24 = vmul.f32 %v3027_v18, %v3019_v1  ;;  %v1692_v28 = vpop.permute.xlu1 %1691 }
 0x7ec   : > { %2839 = vmatpush3.bf16.msra.mxu0 %v1592_v17  ;;  %v1697_v40 = vsel %vm915_vm3, %v1692_v28, 0 }
 0x7ed   : > { %2850 = vmatprep.subr.bf16.mxu0 %v3108_v12 }
 0x7ee   : > { %v3029_v19 = vpop.eup %3028 }
 0x7ef   : > { %v3031_v20 = vpop.eup %3030  ;;  %v1541_v26 = vmul.f32 %v3029_v19, %v3023_v4  ;;  %v1690_v43 = vpop.permute.xlu1 %1689 }
 0x7f0   : > { %v1538_v36 = vmul.f32 %v3031_v20, %v3021_v3  ;;  %v1639_v44 = vpop.permute.xlu0 %1638 }
 0x7f1   : > { %v1543_v34 = vpack.c.bf16 %v1541_v26, %v1540_v24 }
 0x7f2   : > { %v3033_v31 = vpop.eup %3032 }
 0x7f3   : > { %v1539_v39 = vmul.f32 %v3033_v31, %v3025_v9  ;;  %2841 = vmatmul.mubr.msk.bf16.vlgmr.msra.gmra.mrb[24].mxu0 %vm1013_vm4, %v1543_v34 }
 0x7f4   : > { %2852 = vmatprep.mubr.msk.bf16.mxu0 %vm3109_vm2, %v3108_v12 }
 0x7f5   : > { %2851 = vmatpush3.bf16.xpose.msra.mxu0 %v1697_v40  ;;  %v1542_v41 = vpack.c.bf16 %v1539_v39, %v1538_v36 }
 0x7f6   : > { %2862 = vmatprep.subr.bf16.mxu0 %v3108_v12 }
 0x7f7   : > { %2835 = vmatmul.mubr.msk.bf16.vlgmr.msra.gmra.mrb[20].mxu1 %vm1013_vm4, %v1542_v41 }
 0x7f8   : > { %2845 = vmatpush3.bf16.xpose.msra.mxu1 %v1646_v42  ;;  %2846 = vmatprep.mubr.msk.bf16.mxu1 %vm3109_vm2, %v3108_v12 }
 0x7f9   : > { %2856 = vmatprep.subr.bf16.mxu1 %v3108_v12 }
 0x7fc   : > { %2853 = vmatmul.mubr.msk.bf16.vlgmr.msra.gmra.mrb[28].mxu0 %vm915_vm3, %v1690_v43 }
 0x7fd   : > { %2864 = vmatprep.mubr.msk.bf16.mxu0 %vm3109_vm2, %v3108_v12 }
 0x7ff   : > { %2847 = vmatmul.mubr.msk.bf16.vlgmr.msra.gmra.mrb[24].mxu1 %vm915_vm3, %v1639_v44 }
 0x800   : > { %2858 = vmatprep.mubr.msk.bf16.mxu1 %vm3109_vm2, %v3108_v12 }
 0x8c6   : > { %v1631_v45 = vpop.f32.mrb[24].mxu0 }
 0x8c7   : > { %v2842_v46 = vpop.f32.mrb[25].mxu0 }
 0x8c8   : > { %v1634_v47 = vpop.f32.mrb[26].mxu0  ;;  %v2981_v46 = vld [vmem:[%s3243_s15 + $0x8] sm:$0xff]  }
 0x8c9   : > { %v2963_v48 = vpack.i.bf16 %v1634_v47, %v1631_v45  ;;  %v2843_v49 = vpop.f32.mrb[27].mxu0  ;;  %v2980_v45 = vld [vmem:[%s3243_s15] sm:$0xff]  }
 0x8ca   : > { %v1584_v50 = vpop.f32.mrb[20].mxu1 }
 0x8cb   : > { %v2836_v51 = vpop.f32.mrb[21].mxu1 }
 0x8cc   : > { %v1587_v52 = vpop.f32.mrb[22].mxu1 }
 0x8cd   : > { %v2958_v53 = vpack.i.bf16 %v1587_v52, %v1584_v50  ;;  %v2837_v54 = vpop.f32.mrb[23].mxu1 }
 0x8cf   : > { %v1733_v55 = vpop.f32.mrb[28].mxu0 }
 0x8d0   : > { %v2854_v56 = vpop.f32.mrb[29].mxu0  ;;  %v1746_v0 = vsel %vm1013_vm4, %v1733_v55, -inf }
 0x8d1   : > { %v1736_v57 = vpop.f32.mrb[30].mxu0 }
 0x8d2   : > { %v1682_v58 = vpop.f32.mrb[24].mxu1  ;;  %v2855_v59 = vpop.f32.mrb[31].mxu0  ;;  %v1749_v1 = vsel %vm1013_vm4, %v1736_v57, -inf }
 0x8d3   : > { %v2848_v60 = vpop.f32.mrb[25].mxu1  ;;  %v1740_v61 = vsel %vm1013_vm4, %v1682_v58, -inf }
 0x8d4   : > { %1741 = vmax.xlane.f32.xlu0 %v1740_v61  ;;  %v1685_v12 = vpop.f32.mrb[26].mxu1 }
 0x8d5   : > { %v2849_v62 = vpop.f32.mrb[27].mxu1  ;;  %v1743_v63 = vsel %vm1013_vm4, %v1685_v12, -inf }
 0x8d6   : > { %1744 = vmax.xlane.f32.xlu1 %v1743_v63 }
 0x8d8   : > { %1747 = vmax.xlane.f32.xlu0 %v1746_v0 }
 0x8dc   : > { %1750 = vmax.xlane.f32.xlu0 %v1749_v1 }
 0x961   : > { %v1742_v2 = vpop.xlane.xlu0 %1741 }
 0x962   : > { %v1752_v3 = vsub.f32 %v1682_v58, %v1742_v2 }
 0x963   : > { %v1745_v4 = vpop.xlane.xlu1 %1744 }
 0x964   : > { %v1756_v9 = vmul.f32 1.442695, %v1752_v3  ;;  %v1753_v10 = vsub.f32 %v1685_v12, %v1745_v4 }
 0x965   : > { %v1748_v5 = vpop.xlane.xlu0 %1747 }
 0x966   : > { %v1754_v7 = vsub.f32 %v1733_v55, %v1748_v5  ;;  %v1758_v15 = vmul.f32 1.442695, %v1753_v10 }
 0x968   : > { %v1760_v11 = vmul.f32 1.442695, %v1754_v7 }
 0x969   : > { %v1751_v13 = vpop.xlane.xlu0 %1750 }
 0x96a   : > { %3034 = vpow2.f32 %v1760_v11  ;;  %v1755_v14 = vsub.f32 %v1736_v57, %v1751_v13 }
 0x96b   : > { %3036 = vpow2.f32 %v1756_v9 }
 0x96c   : > { %v1762_v16 = vmul.f32 1.442695, %v1755_v14 }
 0x96e   : > { %3038 = vpow2.f32 %v1762_v16 }
 0x96f   : > { %3040 = vpow2.f32 %v1758_v15 }
 0x974   : > { %v3035_v17 = vpop.eup %3034 }
 0x975   : > { %v1770_v18 = vsel %vm1013_vm4, %v3035_v17, 0.0  ;;  %v3037_v19 = vpop.eup %3036 }
 0x976   : > { %1771 = vadd.xlane.f32.xlu1 %v1770_v18  ;;  %v1764_v24 = vsel %vm1013_vm4, %v3037_v19, 0.0 }
 0x978   : > { %v3039_v20 = vpop.eup %3038 }
 0x979   : > { %v1773_v26 = vsel %vm1013_vm4, %v3039_v20, 0.0  ;;  %v3041_v28 = vpop.eup %3040 }
 0x97a   : > { %1765 = vadd.xlane.f32.xlu1 %v1764_v24  ;;  %1774 = vadd.xlane.f32.xlu0 %v1773_v26  ;;  %v1767_v31 = vsel %vm1013_vm4, %v3041_v28, 0.0 }
 0x97e   : > { %1768 = vadd.xlane.f32.xlu0 %v1767_v31 }
 0x98b   : > { %1786 = vrot.lane.b32.xlu1 %v3310_v23, %s3120_s26 }
 0x98f   : > { %2949 = vrot.lane.b32.xlu1 %v2948_v38, %s3121_s19 }
 0x993   : > { %2954 = vrot.lane.b32.xlu1 %v2953_v33, %s3121_s19 }
 0x994   : > { %1833 = vrot.lane.b32.xlu0 %v3308_v22, %s3120_s26 }
 0x997   : > { %2964 = vrot.lane.b32.xlu1 %v2963_v48, %s3122_s3 }
 0x998   : > { %2959 = vrot.lane.b32.xlu0 %v2958_v53, %s3122_s3 }
 0xa03   : > { %v1772_v34 = vpop.xlane.xlu1 %1771 }
 0xa04   : > { %3042 = vrcp.f32 %v1772_v34 }
 0xa07   : > { %v1766_v36 = vpop.xlane.xlu1 %1765  ;;  %v1775_v39 = vpop.xlane.xlu0 %1774 }
 0xa08   : > { %3044 = vrcp.f32 %v1775_v39 }
 0xa09   : > { %3046 = vrcp.f32 %v1766_v36 }
 0xa0b   : > { %v1787_v23 = vpop.permute.xlu1 %1786  ;;  %v1769_v40 = vpop.xlane.xlu0 %1768 }
 0xa0c   : > { %3048 = vrcp.f32 %v1769_v40  ;;  %2857 = vmatpush3.bf16.msra.mxu1 %v1787_v23 }
 0xa0d   : > { %2868 = vmatprep.subr.bf16.mxu1 %v2980_v45 }
 0xa0e   : > { %v3043_v30 = vpop.eup %3042 }
 0xa0f   : > { %v1834_v35 = vpop.permute.xlu0 %1833  ;;  %v1782_v33 = vmul.f32 %v3043_v30, %v3035_v17  ;;  %v2950_v57 = vpop.permute.xlu1 %2949 }
 0xa10   : > { %2863 = vmatpush3.bf16.msra.mxu0 %v1834_v35  ;;  %v2952_v0 = vunpack.i.h.bf16 %v2950_v57  ;;  %v2951_v1 = vunpack.i.l.bf16 %v2950_v57 }
 0xa12   : > { %v3045_v32 = vpop.eup %3044  ;;  %v1929_v14 = vsel %vm915_vm3, %v3364_v29, %v2952_v0  ;;  %v2983_v0 = vld [vmem:[%s3260_s16 + $0x8] sm:$0xff]  }
 0xa13   : > { %v3047_v22 = vpop.eup %3046  ;;  %v1783_v37 = vmul.f32 %v3045_v32, %v3039_v20  ;;  %v2955_v58 = vpop.permute.xlu1 %2954 }
 0xa14   : > { %v1780_v42 = vmul.f32 %v3047_v22, %v3037_v19  ;;  %v2957_v60 = vunpack.i.h.bf16 %v2955_v58  ;;  %v2956_v61 = vunpack.i.l.bf16 %v2955_v58  ;;  %v2960_v12 = vpop.permute.xlu0 %2959 }
 0xa15   : > { %v1785_v41 = vpack.c.bf16 %v1783_v37, %v1782_v33  ;;  %v2962_v2 = vunpack.i.h.bf16 %v2960_v12  ;;  %v2961_v3 = vunpack.i.l.bf16 %v2960_v12  ;;  %v3066_v33 = vld [vmem:[#allocation2 + $0x8] sm:$0xff] }
 0xa16   : > { %v3049_v38 = vpop.eup %3048  ;;  %v1931_v5 = vsel %vm915_vm3, %v3360_v25, %v2957_v60  ;;  %v1930_v7 = vsel %vm915_vm3, %v3358_v21, %v2956_v61  ;;  %v1928_v25 = vsel %vm915_vm3, %v3362_v27, %v2951_v1  ;;  %v2693_v27 = vld [vmem:[%s3610_s20] ss:$0 sm:$0xff] }
 0xa17   : > { %v1781_v43 = vmul.f32 %v3049_v38, %v3041_v28  ;;  %2865 = vmatmul.mubr.msk.bf16.vlgmr.msra.gmra.mrb[32].mxu0 %vm1013_vm4, %v1785_v41  ;;  %v2965_v59 = vpop.permute.xlu1 %2964  ;;  %v1933_v20 = vsel %vm1013_vm4, %v1929_v14, %v2962_v2  ;;  %v1932_v24 = vsel %vm1013_vm4, %v1928_v25, %v2961_v3 }
 0xa18   : > { %v2967_v62 = vunpack.i.h.bf16 %v2965_v59  ;;  %v2966_v63 = vunpack.i.l.bf16 %v2965_v59 }
 0xa19   : > { %v1784_v44 = vpack.c.bf16 %v1781_v43, %v1780_v42  ;;  %v3067_v43 = vld [vmem:[#allocation2 + $0x18] sm:$0xff] }
 0xa1a   : > { %v1934_v11 = vsel %vm1013_vm4, %v1930_v7, %v2966_v63  ;;  %v1935_v13 = vsel %vm1013_vm4, %v1931_v5, %v2967_v62  ;;  %v2982_v63 = vld [vmem:[%s3260_s16] sm:$0xff]  }
 0xa1b   : > { %2859 = vmatmul.mubr.msk.bf16.vlgmr.msra.gmra.mrb[28].mxu1 %vm1013_vm4, %v1784_v44  ;;  %2876 = vmatprep.subr.bf16.mxu0 %v2982_v63 }
 0xa1c   : > { %2869 = vmatpush3.bf16.msra.mxu1 %v2980_v45  ;;  %2877 = vmatpush3.bf16.msra.mxu0 %v2982_v63 }
 0xa1d   : > { %2870 = vmatprep.subr.bf16.mxu1 %v2981_v46  ;;  %2878 = vmatprep.subr.bf16.mxu0 %v2983_v0 }
 0xa20   : > { %2871 = vmatpush3.bf16.msra.mxu1 %v2981_v46  ;;  %2879 = vmatpush3.bf16.msra.mxu0 %v2983_v0 }
 0xaea   : > { %v1873_v47 = vpop.f32.mrb[32].mxu0 }
 0xaeb   : > { %v2866_v48 = vpop.f32.mrb[33].mxu0 }
 0xaec   : > { %v1876_v49 = vpop.f32.mrb[34].mxu0 }
 0xaed   : > { %v2973_v50 = vpack.i.bf16 %v1876_v49, %v1873_v47  ;;  %v2867_v51 = vpop.f32.mrb[35].mxu0 }
 0xaee   : > { %v1826_v52 = vpop.f32.mrb[28].mxu1 }
 0xaef   : > { %v2860_v53 = vpop.f32.mrb[29].mxu1  ;;  %2974 = vrot.lane.b32.xlu1 %v2973_v50, %s3123_s6 }
 0xaf0   : > { %v1829_v54 = vpop.f32.mrb[30].mxu1 }
 0xaf1   : > { %v2968_v55 = vpack.i.bf16 %v1829_v54, %v1826_v52  ;;  %v2861_v56 = vpop.f32.mrb[31].mxu1 }
 0xaf3   : > { %2969 = vrot.lane.b32.xlu0 %v2968_v55, %s3123_s6 }
 0xb61   : > { %v2975_v4 = vpop.permute.xlu1 %2974 }
 0xb62   : > { %v2977_v9 = vunpack.i.h.bf16 %v2975_v4  ;;  %v2976_v10 = vunpack.i.l.bf16 %v2975_v4 }
 0xb64   : > { %v1940_v15 = vsel %vm1936_vm5, %v1935_v13, %v2977_v9  ;;  %v1939_v16 = vsel %vm1936_vm5, %v1934_v11, %v2976_v10 }
 0xb65   : > { %v2970_v17 = vpop.permute.xlu0 %2969  ;;  %v1946_v18 = vpack.c.bf16 %v1940_v15, %v1939_v16 }
 0xb66   : > { %v2972_v21 = vunpack.i.h.bf16 %v2970_v17  ;;  %v2971_v19 = vunpack.i.l.bf16 %v2970_v17  ;;  %v2698_v17 = vld [vmem:[%s3611_s24] ss:$0 sm:$0xff] }
 0xb68   : > { %v1937_v26 = vsel %vm1936_vm5, %v1932_v24, %v2971_v19  ;;  %v1938_v28 = vsel %vm1936_vm5, %v1933_v20, %v2972_v21  ;;  %v2699_v24 = vld [vmem:[%s3613_s22] ss:$0 sm:$0xff] }
 0xb69   : > { %v1945_v29 = vpack.c.bf16 %v1938_v28, %v1937_v26 }
 0xb6b   : > { %2872 = vmatprep.mubr.msk.bf16.mxu1 %vm854_vm1, %v1945_v29 }
 0xb6c   : > { %2873 = vmatmul.mubr.msk.bf16.vlgmr.msra.gmra.mrb[32].mxu1 %vm854_vm1, %v1946_v18 }
 0xc3f   : > { %v2874_v31 = vpop.f32.mrb[32].mxu1 }
 0xc40   : > { %v2006_v34 = vpop.f32.mrb[33].mxu1  ;;  %v2015_v36 = vadd.f32 %v2874_v31, %v2693_v27 }
 0xc41   : > { %v2007_v39 = vadd.f32 %v2693_v27, %v2006_v34  ;;  %v2875_v23 = vpop.f32.mrb[34].mxu1 }
 0xc42   : > { %v2009_v40 = vpop.f32.mrb[35].mxu1  ;;  %v2018_v32 = vadd.f32 %v2875_v23, %v2693_v27  ;;  %v2023_v38 = vadd.f32 %v2015_v36, %v3291_v8 }
 0xc43   : > { %v2010_v35 = vadd.f32 %v2693_v27, %v2009_v40  ;;  %v2021_v30 = vadd.f32 %v2007_v39, %v3289_v6 }
 0xc44   : > { %v2033_v42 = vsel %vm854_vm1, %v2023_v38, 0.0  ;;  %v2024_v44 = vadd.f32 %v3067_v43, %v2018_v32  ;;  %v2984_v32 = vld [vmem:[%s3269_s28] sm:$0xff]  }
 0xc45   : > { %v2027_v22 = vsel %vm854_vm1, %v2021_v30, 0.0  ;;  %v2022_v37 = vadd.f32 %v3066_v33, %v2010_v35  ;;  %2884 = vmatprep.subr.bf16.mxu1 %v2984_v32  ;;  %v2700_v33 = vld [vmem:[%s3614_s12] ss:$0 sm:$0xff] }
 0xc46   : > { %2028 = vadd.xlane.f32.xlu0 %v2027_v22  ;;  %v2036_v45 = vsel %vm854_vm1, %v2024_v44, 0.0  ;;  %2885 = vmatpush3.bf16.msra.mxu1 %v2984_v32  ;;  %v2985_v22 = vld [vmem:[%s3269_s28 + $0x8] sm:$0xff]  }
 0xc47   : > { %v2030_v41 = vsel %vm854_vm1, %v2022_v37, 0.0  ;;  %2886 = vmatprep.subr.bf16.mxu1 %v2985_v22 }
 0xc48   : > { %2031 = vadd.xlane.f32.xlu1 %v2030_v41 }
 0xc4a   : > { %2034 = vadd.xlane.f32.xlu0 %v2033_v42  ;;  %2887 = vmatpush3.bf16.msra.mxu1 %v2985_v22 }
 0xc4e   : > { %2037 = vadd.xlane.f32.xlu0 %v2036_v45 }
 0xcd3   : > { %v2029_v6 = vpop.xlane.xlu0 %2028 }
 0xcd4   : > { %v2040_v46 = vmul.f32 0.03125, %v2029_v6 }
 0xcd5   : > { %v2032_v47 = vpop.xlane.xlu1 %2031 }
 0xcd6   : > { %v2044_v48 = vsub.f32 %v2021_v30, %v2040_v46  ;;  %v2041_v49 = vmul.f32 0.03125, %v2032_v47 }
 0xcd7   : > { %v2035_v50 = vpop.xlane.xlu0 %2034 }
 0xcd8   : > { %v2045_v51 = vsub.f32 %v2022_v37, %v2041_v49  ;;  %v2042_v8 = vmul.f32 0.03125, %v2035_v50  ;;  %v2048_v52 = vmul.f32 %v2044_v48, %v2044_v48 }
 0xcda   : > { %v2046_v53 = vsub.f32 %v2023_v38, %v2042_v8  ;;  %v2052_v54 = vsel %vm854_vm1, %v2048_v52, 0.0  ;;  %v2049_v55 = vmul.f32 %v2045_v51, %v2045_v51  ;;  %v2705_v8 = vld [vmem:[%s792_s29] ss:$0 sm:$0xff] }
 0xcdb   : > { %2053 = vadd.xlane.f32.xlu1 %v2052_v54  ;;  %v2038_v56 = vpop.xlane.xlu0 %2037 }
 0xcdc   : > { %v2043_v57 = vmul.f32 0.03125, %v2038_v56  ;;  %v2055_v58 = vsel %vm854_vm1, %v2049_v55, 0.0  ;;  %v2050_v59 = vmul.f32 %v2046_v53, %v2046_v53 }
 0xcdd   : > { %2056 = vadd.xlane.f32.xlu0 %v2055_v58 }
 0xcde   : > { %v2047_v60 = vsub.f32 %v2024_v44, %v2043_v57  ;;  %v2058_v61 = vsel %vm854_vm1, %v2050_v59, 0.0 }
 0xcdf   : > { %2059 = vadd.xlane.f32.xlu1 %v2058_v61 }
 0xce0   : > { %v2051_v12 = vmul.f32 %v2047_v60, %v2047_v60 }
 0xce2   : > { %v2061_v62 = vsel %vm854_vm1, %v2051_v12, 0.0 }
 0xce3   : > { %2062 = vadd.xlane.f32.xlu0 %v2061_v62 }
 0xd68   : > { %v2054_v1 = vpop.xlane.xlu1 %2053 }
 0xd69   : > { %v2064_v2 = vmul.f32 0.03125, %v2054_v1 }
 0xd6a   : > { %v2057_v3 = vpop.xlane.xlu0 %2056 }
 0xd6b   : > { %v2068_v4 = vadd.f32 1e-05, %v2064_v2  ;;  %v2065_v5 = vmul.f32 0.03125, %v2057_v3 }
 0xd6c   : > { %v2060_v7 = vpop.xlane.xlu1 %2059 }
 0xd6d   : > { %3050 = vrsqrt.f32 %v2068_v4  ;;  %v2069_v9 = vadd.f32 1e-05, %v2065_v5  ;;  %v2066_v10 = vmul.f32 0.03125, %v2060_v7 }
 0xd6f   : > { %3052 = vrsqrt.f32 %v2069_v9  ;;  %v2070_v11 = vadd.f32 1e-05, %v2066_v10 }
 0xd70   : > { %v2063_v13 = vpop.xlane.xlu0 %2062 }
 0xd71   : > { %3054 = vrsqrt.f32 %v2070_v11  ;;  %v2067_v14 = vmul.f32 0.03125, %v2063_v13 }
 0xd73   : > { %v2071_v15 = vadd.f32 1e-05, %v2067_v14 }
 0xd75   : > { %3056 = vrsqrt.f32 %v2071_v15 }
 0xd77   : > { %v3051_v16 = vpop.eup %3050 }
 0xd78   : > { %v2076_v25 = vmul.f32 %v3051_v16, %v2044_v48 }
 0xd79   : > { %v3053_v18 = vpop.eup %3052 }
 0xd7a   : > { %v2077_v21 = vmul.f32 %v3053_v18, %v2045_v51  ;;  %v2086_v19 = vmul.f32 %v2698_v17, %v2076_v25 }
 0xd7b   : > { %v3055_v20 = vpop.eup %3054 }
 0xd7c   : > { %v2078_v26 = vmul.f32 %v3055_v20, %v2046_v53  ;;  %v2087_v28 = vmul.f32 %v2698_v17, %v2077_v21  ;;  %v2096_v29 = vadd.f32 %v2699_v24, %v2086_v19 }
 0xd7e   : > { %v2097_v27 = vadd.f32 %v2699_v24, %v2087_v28  ;;  %v2088_v34 = vmul.f32 %v2698_v17, %v2078_v26 }
 0xd7f   : > { %v3057_v31 = vpop.eup %3056 }
 0xd80   : > { %v2079_v36 = vmul.f32 %v3057_v31, %v2047_v60  ;;  %v2104_v39 = vpack.c.bf16 %v2097_v27, %v2096_v29  ;;  %v2098_v40 = vadd.f32 %v2699_v24, %v2088_v34 }
 0xd82   : > { %v2089_v23 = vmul.f32 %v2698_v17, %v2079_v36  ;;  %2880 = vmatprep.mubr.msk.bf16.mxu0 %vm854_vm1, %v2104_v39 }
 0xd84   : > { %v2099_v35 = vadd.f32 %v2699_v24, %v2089_v23 }
 0xd86   : > { %v2105_v30 = vpack.c.bf16 %v2099_v35, %v2098_v40 }
 0xd88   : > { %2881 = vmatmul.mubr.msk.bf16.vlgmr.msra.gmra.mrb[36].mxu0 %vm854_vm1, %v2105_v30 }
 0xe5b   : > { %v2882_v37 = vpop.f32.mrb[36].mxu0 }
 0xe5c   : > { %v2174_v38 = vadd.f32 %v2882_v37, %v2700_v33  ;;  %v2165_v41 = vpop.f32.mrb[37].mxu0  ;;  %v2710_v37 = vld [vmem:[%s799_s1] ss:$0 sm:$0xff]  ;;  %s3616_s1 = sld [smem:[#allocation3_spill]] }
 0xe5d   : > { %v2166_v42 = vadd.f32 %v2700_v33, %v2165_v41  ;;  %v2883_v43 = vpop.f32.mrb[38].mxu0 }
 0xe5e   : > { %v2177_v44 = vadd.f32 %v2883_v43, %v2700_v33  ;;  %v2168_v45 = vpop.f32.mrb[39].mxu0  ;;  %v2182_v46 = vmax.f32 %v2174_v38, 0.0 }
 0xe5f   : > { %v2169_v6 = vadd.f32 %v2700_v33, %v2168_v45  ;;  %v2180_v48 = vmax.f32 %v2166_v42, 0.0  ;;  %v2711_v42 = vld [vmem:[%s806_s7] ss:$0 sm:$0xff] }
 0xe60   : > { %v2183_v47 = vmax.f32 %v2177_v44, 0.0 }
 0xe61   : > { %v2181_v49 = vmax.f32 %v2169_v6, 0.0 }
 0xe62   : > { %v2189_v50 = vpack.c.bf16 %v2183_v47, %v2182_v46  ;;  %p2712_p8 = scmp.ne.s32.totalorder %s3616_s1, 1 }
 0xe63   : > { %v2188_v51 = vpack.c.bf16 %v2181_v49, %v2180_v48  ;;  %vm2370_vm6 = vcmask (!%p2712_p8), 1041409   ;;  %vm2373_vm7 = vcmask (!%p2712_p8), 254976  }
 0xe65   : > { %2888 = vmatprep.mubr.msk.bf16.mxu1 %vm854_vm1, %v2188_v51 }
 0xe66   : > { %2889 = vmatmul.mubr.msk.bf16.vlgmr.msra.gmra.mrb[36].mxu1 %vm854_vm1, %v2189_v50 }
 0xf39   : > { %v2890_v52 = vpop.f32.mrb[36].mxu1 }
 0xf3a   : > { %v2249_v53 = vpop.f32.mrb[37].mxu1  ;;  %v2258_v54 = vadd.f32 %v2890_v52, %v2705_v8 }
 0xf3b   : > { %v2250_v55 = vadd.f32 %v2705_v8, %v2249_v53  ;;  %v2891_v56 = vpop.f32.mrb[38].mxu1 }
 0xf3c   : > { %v2252_v57 = vpop.f32.mrb[39].mxu1  ;;  %v2261_v58 = vadd.f32 %v2891_v56, %v2705_v8  ;;  %v2266_v62 = vadd.f32 %v2258_v54, %v2098_v40 }
 0xf3d   : > { %v2253_v59 = vadd.f32 %v2705_v8, %v2252_v57  ;;  %v2264_v60 = vadd.f32 %v2250_v55, %v2096_v29 }
 0xf3e   : > { %v2267_v0 = vadd.f32 %v2261_v58, %v2099_v35  ;;  %v2276_v1 = vsel %vm854_vm1, %v2266_v62, 0.0 }
 0xf3f   : > { %v2270_v61 = vsel %vm854_vm1, %v2264_v60, 0.0  ;;  %v2265_v12 = vadd.f32 %v2253_v59, %v2097_v27 }
 0xf40   : > { %2271 = vadd.xlane.f32.xlu1 %v2270_v61  ;;  %v2279_v2 = vsel %vm854_vm1, %v2267_v0, 0.0 }
 0xf41   : > { %v2273_v63 = vsel %vm854_vm1, %v2265_v12, 0.0 }
 0xf42   : > { %2274 = vadd.xlane.f32.xlu0 %v2273_v63 }
 0xf44   : > { %2277 = vadd.xlane.f32.xlu1 %v2276_v1 }
 0xf46   : > { %2280 = vadd.xlane.f32.xlu0 %v2279_v2 }
 0xfcd   : > { %v2272_v3 = vpop.xlane.xlu1 %2271 }
 0xfce   : > { %v2282_v4 = vmul.f32 0.03125, %v2272_v3 }
 0xfcf   : > { %v2275_v5 = vpop.xlane.xlu0 %2274 }
 0xfd0   : > { %v2286_v7 = vsub.f32 %v2264_v60, %v2282_v4  ;;  %v2283_v9 = vmul.f32 0.03125, %v2275_v5 }
 0xfd1   : > { %v2278_v10 = vpop.xlane.xlu1 %2277 }
 0xfd2   : > { %v2287_v11 = vsub.f32 %v2265_v12, %v2283_v9  ;;  %v2284_v13 = vmul.f32 0.03125, %v2278_v10  ;;  %v2290_v14 = vmul.f32 %v2286_v7, %v2286_v7 }
 0xfd3   : > { %v2281_v15 = vpop.xlane.xlu0 %2280 }
 0xfd4   : > { %v2288_v16 = vsub.f32 %v2266_v62, %v2284_v13  ;;  %v2285_v17 = vmul.f32 0.03125, %v2281_v15  ;;  %v2294_v25 = vsel %vm854_vm1, %v2290_v14, 0.0  ;;  %v2291_v18 = vmul.f32 %v2287_v11, %v2287_v11 }
 0xfd5   : > { %2295 = vadd.xlane.f32.xlu1 %v2294_v25 }
 0xfd6   : > { %v2289_v21 = vsub.f32 %v2267_v0, %v2285_v17  ;;  %v2297_v19 = vsel %vm854_vm1, %v2291_v18, 0.0  ;;  %v2292_v20 = vmul.f32 %v2288_v16, %v2288_v16 }
 0xfd7   : > { %2298 = vadd.xlane.f32.xlu0 %v2297_v19 }
 0xfd8   : > { %v2300_v24 = vsel %vm854_vm1, %v2292_v20, 0.0  ;;  %v2293_v26 = vmul.f32 %v2289_v21, %v2289_v21 }
 0xfd9   : > { %2301 = vadd.xlane.f32.xlu1 %v2300_v24 }
 0xfda   : > { %v2303_v28 = vsel %vm854_vm1, %v2293_v26, 0.0 }
 0xfdb   : > { %2304 = vadd.xlane.f32.xlu0 %v2303_v28 }
0x1062   : > { %v2296_v29 = vpop.xlane.xlu1 %2295 }
0x1063   : > { %v2306_v27 = vmul.f32 0.03125, %v2296_v29 }
0x1064   : > { %v2299_v31 = vpop.xlane.xlu0 %2298 }
0x1065   : > { %v2310_v34 = vadd.f32 1e-05, %v2306_v27  ;;  %v2307_v36 = vmul.f32 0.03125, %v2299_v31 }
0x1066   : > { %v2302_v39 = vpop.xlane.xlu1 %2301 }
0x1067   : > { %3058 = vrsqrt.f32 %v2310_v34  ;;  %v2311_v23 = vadd.f32 1e-05, %v2307_v36  ;;  %v2308_v40 = vmul.f32 0.03125, %v2302_v39 }
0x1068   : > { %v2305_v35 = vpop.xlane.xlu0 %2304 }
0x1069   : > { %3060 = vrsqrt.f32 %v2311_v23  ;;  %v2312_v30 = vadd.f32 1e-05, %v2308_v40  ;;  %v2309_v32 = vmul.f32 0.03125, %v2305_v35 }
0x106b   : > { %3062 = vrsqrt.f32 %v2312_v30  ;;  %v2313_v22 = vadd.f32 1e-05, %v2309_v32 }
0x106d   : > { %3064 = vrsqrt.f32 %v2313_v22 }
0x1071   : > { %v3059_v33 = vpop.eup %3058 }
0x1072   : > { %v2318_v38 = vmul.f32 %v3059_v33, %v2286_v7 }
0x1073   : > { %v3061_v41 = vpop.eup %3060 }
0x1074   : > { %v2328_v43 = vmul.f32 %v2710_v37, %v2318_v38  ;;  %v2319_v44 = vmul.f32 %v3061_v41, %v2287_v11 }
0x1075   : > { %v3063_v45 = vpop.eup %3062 }
0x1076   : > { %v2338_v6 = vadd.f32 %v2711_v42, %v2328_v43  ;;  %v2329_v46 = vmul.f32 %v2710_v37, %v2319_v44  ;;  %v2320_v47 = vmul.f32 %v3063_v45, %v2288_v16 }
0x1077   : > { %v3065_v48 = vpop.eup %3064 }
0x1078   : > { %2342 = vst.msk [vmem:[#allocation2] sm:$0xff] %vm854_vm1, %v2338_v6  ;;  %v2339_v49 = vadd.f32 %v2711_v42, %v2329_v46  ;;  %v2330_v50 = vmul.f32 %v2710_v37, %v2320_v47  ;;  %v2321_v51 = vmul.f32 %v3065_v48, %v2289_v21  ;;  %2349 = sbr.rel (%p2712_p8) target bundleno = 4239 (0x108f), region = 80  ;;  %v2350_v54 = vsel (!%p2712_p8), %vm854_vm1, %v2338_v6, -inf }
0x107a   : > { %2343 = vst.msk [vmem:[#allocation2 + $0x8] sm:$0xff] %vm854_vm1, %v2339_v49  ;;  %v2340_v8 = vadd.f32 %v2711_v42, %v2330_v50  ;;  %v2331_v52 = vmul.f32 %v2710_v37, %v2321_v51  ;;  %v2351_v55 = vsel (!%p2712_p8), %vm854_vm1, %v2339_v49, -inf }
0x107b   : > { %v2352_v58 = vmax.f32 (!%p2712_p8), %v2350_v54, %v2351_v55 }
0x107c   : > { %2344 = vst.msk [vmem:[#allocation2 + $0x10] sm:$0xff] %vm854_vm1, %v2340_v8  ;;  %v2341_v53 = vadd.f32 %v2711_v42, %v2331_v52  ;;  %v2359_v56 = vsel (!%p2712_p8), %vm854_vm1, %v2340_v8, -inf }
0x107d   : > { %v2353_v60 = vrot.slane (!%p2712_p8), %v2352_v58, 4 }
0x107e   : > { %2345 = vst.msk [vmem:[#allocation2 + $0x18] sm:$0xff] %vm854_vm1, %v2341_v53  ;;  %v2360_v57 = vsel (!%p2712_p8), %vm854_vm1, %v2341_v53, -inf }
0x107f   : > { %v2361_v59 = vmax.f32 %v2359_v56, %v2360_v57  ;;  %v2354_v12 = vmax.f32 %v2352_v58, %v2353_v60 }
0x1081   : > { %v2362_v61 = vrot.slane %v2361_v59, 4  ;;  %v2355_v63 = vrot.slane %v2354_v12, 2 }
0x1083   : > { %v2363_v62 = vmax.f32 %v2361_v59, %v2362_v61  ;;  %v2356_v1 = vmax.f32 %v2354_v12, %v2355_v63 }
0x1085   : > { %v2364_v0 = vrot.slane %v2363_v62, 2  ;;  %v2357_v3 = vrot.slane %v2356_v1, 1 }
0x1087   : > { %v2365_v2 = vmax.f32 %v2363_v62, %v2364_v0  ;;  %v2358_v5 = vmax.f32 %v2356_v1, %v2357_v3 }
0x1089   : > { %v2366_v4 = vrot.slane %v2365_v2, 1 }
0x108b   : > { %v2367_v7 = vmax.f32 %v2365_v2, %v2366_v4 }
0x108d   : > { %v2371_v9 = vsel %vm2370_vm6, %v2367_v7, %v2358_v5 }
0x108e   : > { %2374 = vst.msk [vmem:[%s3286_s17] sm:$0x3] %vm2373_vm7, %v2371_v9 }
0x108f PF: > { %s3617_s7 = sld [smem:[#allocation6_spill]]  ;;  %s3618_s25 = sld [smem:[#allocation4_spill]] }
0x1090   : > { %s3619_s26 = sld [smem:[#allocation5_spill]]  ;;  %s3620_s27 = sld [smem:[#allocation7_spill]] }
0x1091   : > { %s3621_s28 = sld [smem:[#allocation8_spill]] }
0x1095   : > { %s23_s29 = sadd.s32 1, %s3617_s7  }
0x1096   : > { %p20_p9 = scmp.ge.s32.totalorder %s23_s29, 6  }
0x1098   :  { %22 = sbr.rel (!%p20_p9) target bundleno = 8 (0x8), region = 146 }

// kernel: _lambda_.12
= control target key start
LH: loop header
LB: loop body
LE: loop exit
PB: predicated region body
PF: predicated region fallthrough
CT: control target
= control target key end

     0   :  { %s649_s18 = smov 0   ;;  %s689_s0 = inlined_call_operand.vmem [shape: f32[2,2,64], index: 0, kind: input, shape index: {}]   ;;  %s690_s1 = inlined_call_operand.vmem [shape: bf16[2,64,32], index: 1, kind: input, shape index: {}]   ;;  %s691_s2 = inlined_call_operand.vmem [shape: f32[2,1,32], index: 2, kind: input, shape index: {}]   ;;  %s692_s3 = inlined_call_operand.vmem [shape: bf16[2,32,10], index: 3, kind: input, shape index: {}]   ;;  %s693_s4 = inlined_call_operand.vmem [shape: f32[2,1,10], index: 4, kind: input, shape index: {}]   ;;  %s694_s5 = inlined_call_operand.vmem [shape: f32[2,2,10], index: 5, kind: output, shape index: {}]  }
   0x1 LB: > { %s540_s19 = sadd.s32 4294967295, %s615_s18   ;;  %p544_p0 = scmp.ge.s32.totalorder %s615_s18, 1  ;;  %s615_s18 = sphi %s649_s18, %s15_s18  }
   0x2   : > { %p222_p1 = scmp.lt.s32.totalorder %s615_s18, 3 }
   0x4   : > { %p223_p2 = pnand %p544_p0, %p222_p1 }
   0x5   : > { %p264_p3 = scmp.lt.s32.totalorder (!%p223_p2), %s540_s19, 1  ;;  %v617_v0 = vmov (!%p223_p2), 0.0   ;;  %vm618_vm0 = vmmov (!%p223_p2), 0   ;;  %vm330_vm1 = vcmask (!%p223_p2), 523264   ;;  %vm399_vm2 = vcmask (!%p223_p2), 261120  }
   0x6   : > { %226 = sbr.rel (%p223_p2) target bundleno = 465 (0x1d1), region = 40  ;;  %573 = vmatprep.subr.bf16.mxu0 (!%p223_p2), %v617_v0  ;;  %581 = vmatprep.mubr.msk.bf16.mxu0 (!%p223_p2), %vm618_vm0, %v617_v0  ;;  %vm443_vm3 = vcmask (!%p223_p2), 74752  }
   0x7   : > { %585 = vmatprep.subr.bf16.mxu1 (!%p223_p2), %v617_v0  ;;  %589 = vmatprep.mubr.msk.bf16.mxu1 (!%p223_p2), %vm618_vm0, %v617_v0 }
   0xd   : > { %s696_s19 = smov (!%p264_p3, %s540_s19), 1 }
   0xe   : > { %s563_s20 = sshll.u32 %s696_s19, 5  ;;  %s545_s24 = sshll.u32 %s696_s19, 1 }
   0xf   : > { %s272_s23 = scalar_lea.vmem %s690_s1, %s563_s20  ;;  %s267_s27 = scalar_lea.vmem %s689_s0, %s545_s24 }
  0x10   : > { %v603_v1 = vld [vmem:[%s272_s23] sm:$0xff]   ;;  %v604_v2 = vld [vmem:[%s272_s23 + $0x8] sm:$0xff]   ;;  %v605_v3 = vld [vmem:[%s272_s23 + $0x10] sm:$0xff]   ;;  %s564_s28 = sshll.u32 %s696_s19, 4  ;;  %s275_s9 = scalar_lea.vmem %s691_s2, %s696_s19 }
  0x11   : > { %574 = vmatpush3.bf16.msra.mxu0 %v603_v1  ;;  %v606_v4 = vld [vmem:[%s272_s23 + $0x18] sm:$0xff]   ;;  %v289_v5 = vld [vmem:[%s267_s27] sm:$0x3]  ;;  %s280_s6 = scalar_lea.vmem %s692_s3, %s564_s28  ;;  %s283_s12 = scalar_lea.vmem %s693_s4, %s696_s19 }
  0x12   : > { %575 = vmatprep.subr.bf16.mxu0 %v617_v0  ;;  %v298_v6 = vpack.c.bf16 %v289_v5, %v289_v5  ;;  %v607_v7 = vld [vmem:[%s280_s6] sm:$0xff]   ;;  %v608_v8 = vld [vmem:[%s280_s6 + $0x8] sm:$0xff]   ;;  %s287_s15 = scalar_lea.vmem %s694_s5, %s545_s24 }
  0x13   : > { %586 = vmatpush3.bf16.msra.mxu1 %v607_v7  ;;  %v551_v9 = vld [vmem:[%s275_s9] ss:$0 sm:$0xff] }
  0x14   : > { %587 = vmatprep.subr.bf16.mxu1 %v617_v0  ;;  %v557_v17 = vld [vmem:[%s283_s12] ss:$0 sm:$0xff] }
  0x15   : > { %576 = vmatpush3.bf16.msra.mxu0 %v604_v2 }
  0x16   : > { %577 = vmatprep.subr.bf16.mxu0 %v617_v0 }
  0x17   : > { %588 = vmatpush3.bf16.msra.mxu1 %v608_v8 }
  0x19   : > { %578 = vmatpush3.bf16.msra.mxu0 %v605_v3 }
  0x1a   : > { %579 = vmatprep.subr.bf16.mxu0 %v617_v0 }
  0x1d   : > { %580 = vmatpush3.bf16.msra.mxu0 %v606_v4 }
  0x20   : > { %582 = vmatmul.mubr.msk.bf16.vlgmr.msra.gmra.mrb[0].mxu0 %vm330_vm1, %v298_v6 }
  0xf3   : > { %v368_v10 = vpop.f32.mrb[0].mxu0 }
  0xf4   : > { %v369_v11 = vadd.f32 %v551_v9, %v368_v10  ;;  %v583_v12 = vpop.f32.mrb[1].mxu0 }
  0xf5   : > { %v371_v13 = vpop.f32.mrb[2].mxu0 }
  0xf6   : > { %v374_v14 = vmax.f32 %v369_v11, 0.0  ;;  %v584_v15 = vpop.f32.mrb[3].mxu0 }
  0xf8   : > { %v379_v16 = vpack.c.bf16 %v374_v14, %v374_v14 }
  0xfa   : > { %590 = vmatmul.mubr.msk.bf16.vlgmr.msra.gmra.mrb[0].mxu1 %vm399_vm2, %v379_v16 }
 0x1cd   : > { %v437_v18 = vpop.f32.mrb[0].mxu1 }
 0x1ce   : > { %v438_v19 = vadd.f32 %v557_v17, %v437_v18  ;;  %v591_v20 = vpop.f32.mrb[1].mxu1 }
 0x1cf   : > { %v440_v21 = vpop.f32.mrb[2].mxu1 }
 0x1d0   : > { %444 = vst.msk [vmem:[%s287_s15] sm:$0x3] %vm443_vm3, %v438_v19  ;;  %v592_v22 = vpop.f32.mrb[3].mxu1 }
 0x1d1 PF: > { %s15_s18 = sadd.s32 1, %s615_s18  }
 0x1d2   : > { %p12_p4 = scmp.ge.s32.totalorder %s15_s18, 4  }
 0x1d4   :  { %14 = sbr.rel (!%p12_p4) target bundleno = 1 (0x1), region = 82 }

// kernel: _lambda_.13
= control target key start
LH: loop header
LB: loop body
LE: loop exit
PB: predicated region body
PF: predicated region fallthrough
CT: control target
= control target key end

     0   :  { %v310_v1 = vmov 0.0   ;;  %vm311_vm0 = vmmov 0   ;;  %s394_s0 = inlined_call_operand.vmem [shape: f32[1,2,128], index: 0, kind: input, shape index: {}]   ;;  %s395_s1 = inlined_call_operand.vmem [shape: bf16[1,128,32], index: 1, kind: input, shape index: {}]   ;;  %s396_s2 = inlined_call_operand.vmem [shape: f32[1,1,32], index: 2, kind: input, shape index: {}]   ;;  %s397_s3 = inlined_call_operand.vmem [shape: bf16[1,32,10], index: 3, kind: input, shape index: {}]   ;;  %s398_s4 = inlined_call_operand.vmem [shape: f32[1,1,10], index: 4, kind: input, shape index: {}]   ;;  %s399_s5 = inlined_call_operand.hbm [shape: f32[1,2,10], index: 5, kind: output, shape index: {}]  }
   0x1   :  { %v276_v0 = vld [vmem:[%s395_s1] sm:$0xff]   ;;  %245 = vmatprep.subr.bf16.mxu0 %v310_v1  ;;  %265 = vmatprep.subr.bf16.mxu1 %v310_v1  ;;  %v277_v2 = vld [vmem:[%s395_s1 + $0x8] sm:$0xff]   ;;  %v278_v3 = vld [vmem:[%s395_s1 + $0x10] sm:$0xff]  }
   0x2   :  { %246 = vmatpush3.bf16.msra.mxu0 %v276_v0  ;;  %261 = vmatprep.mubr.msk.bf16.mxu0 %vm311_vm0, %v310_v1  ;;  %v279_v4 = vld [vmem:[%s395_s1 + $0x18] sm:$0xff]  }
   0x3   :  { %247 = vmatprep.subr.bf16.mxu0 %v310_v1  ;;  %269 = vmatprep.mubr.msk.bf16.mxu1 %vm311_vm0, %v310_v1 }
   0x6   :  { %248 = vmatpush3.bf16.msra.mxu0 %v277_v2 }
   0x7   :  { %249 = vmatprep.subr.bf16.mxu0 %v310_v1 }
   0xa   :  { %250 = vmatpush3.bf16.msra.mxu0 %v278_v3 }
   0xb   :  { %10 = vsyncpa [#allocation3], 0  ;;  %251 = vmatprep.subr.bf16.mxu0 %v310_v1  ;;  %v280_v5 = vld [vmem:[%s395_s1 + $0x20] sm:$0xff]   ;;  %v281_v6 = vld [vmem:[%s395_s1 + $0x28] sm:$0xff]   ;;  %vm160_vm1 = vcmask 261120   ;;  %s312_s17 = smov [#allocation2]  }
   0xc   :  { %v282_v7 = vld [vmem:[%s395_s1 + $0x30] sm:$0xff]   ;;  %v283_v8 = vld [vmem:[%s395_s1 + $0x38] sm:$0xff]   ;;  %v22_v9 = vld [vmem:[%s394_s0] sm:$0x3]  ;;  %vm204_vm2 = vcmask 74752  }
   0xd   :  { %v39_v10 = vpack.c.bf16 %v22_v9, %v22_v9  ;;  %v284_v11 = vld [vmem:[%s397_s3] sm:$0xff]   ;;  %v285_v12 = vld [vmem:[%s397_s3 + $0x8] sm:$0xff]   ;;  %s212_s3 = sshll.u32 %s312_s17, 4  ;;  %s213_s3 = int_to_ptr.vmem [resolvable:$true] %s212_s3 }
   0xe   :  { %252 = vmatpush3.bf16.msra.mxu0 %v279_v4  ;;  %266 = vmatpush3.bf16.msra.mxu1 %v284_v11  ;;  %v220_v13 = vld [vmem:[%s396_s2] ss:$0 sm:$0xff]  ;;  %s286_s2 = scalar_lea.vmem %s213_s3, 32  ;;  %p291_p1 = scmp.lt.s32.totalorder %s213_s3, %s213_s3 }
   0xf   :  { %253 = vmatprep.subr.bf16.mxu0 %v310_v1  ;;  %267 = vmatprep.subr.bf16.mxu1 %v310_v1  ;;  %v229_v21 = vld [vmem:[%s398_s4] ss:$0 sm:$0xff]  ;;  %p287_p0 = scmp.ne.s32.totalorder %s213_s3, %s286_s2  ;;  %p292_p2 = scmp.lt.s32.totalorder %s286_s2, %s286_s2 }
  0x11   :  { %p293_p3 = por %p292_p2, %p291_p1 }
  0x12   :  { %254 = vmatpush3.bf16.msra.mxu0 %v280_v5  ;;  %268 = vmatpush3.bf16.msra.mxu1 %v285_v12 }
  0x13   :  { %255 = vmatprep.subr.bf16.mxu0 %v310_v1  ;;  %p294_p4 = pnand %p293_p3, %p287_p0 }
  0x16   :  { %256 = vmatpush3.bf16.msra.mxu0 %v281_v6 }
  0x17   :  { %257 = vmatprep.subr.bf16.mxu0 %v310_v1 }
  0x1a   :  { %258 = vmatpush3.bf16.msra.mxu0 %v282_v7 }
  0x1b   :  { %259 = vmatprep.subr.bf16.mxu0 %v310_v1 }
  0x1e   :  { %260 = vmatpush3.bf16.msra.mxu0 %v283_v8 }
  0x21   :  { %262 = vmatmul.mubr.bf16.vlgmr.msra.gmra.mrb[0].mxu0 %v39_v10 }
  0xf4   :  { %v129_v14 = vpop.f32.mrb[0].mxu0 }
  0xf5   :  { %v130_v15 = vadd.f32 %v220_v13, %v129_v14  ;;  %v263_v16 = vpop.f32.mrb[1].mxu0 }
  0xf6   :  { %v132_v17 = vpop.f32.mrb[2].mxu0 }
  0xf7   :  { %v135_v18 = vmax.f32 %v130_v15, 0.0  ;;  %v264_v19 = vpop.f32.mrb[3].mxu0 }
  0xf9   :  { %v140_v20 = vpack.c.bf16 %v135_v18, %v135_v18 }
  0xfb   :  { %270 = vmatmul.mubr.msk.bf16.vlgmr.msra.gmra.mrb[0].mxu1 %vm160_vm1, %v140_v20 }
 0x1ce   :  { %v198_v22 = vpop.f32.mrb[0].mxu1 }
 0x1cf   :  { %v199_v23 = vadd.f32 %v229_v21, %v198_v22  ;;  %v271_v24 = vpop.f32.mrb[1].mxu1 }
 0x1d0   :  { %v201_v25 = vpop.f32.mrb[2].mxu1 }
 0x1d1   :  { %v272_v26 = vpop.f32.mrb[3].mxu1  ;;  %205 = vst.msk [vmem:[#allocation2] sm:$0x3] %vm204_vm2, %v199_v23 }
 0x1d2   :  { %297 = shalt.err (!%p294_p4)
}
 0x1d3   :  { %s298_s4 = scalar_lea.hbm %s399_s5, 32 }
 0x1d4   :  { %p299_p5 = scmp.ne.s32.totalorder %s399_s5, %s298_s4  ;;  %p302_p6 = scmp.lt.u32.totalorder %s298_s4, %s399_s5 }
 0x1d6   :  { %p304_p7 = pnand %p302_p6, %p299_p5 }
 0x1d8   :  { %307 = shalt.err (!%p304_p7)
}
 0x1d9   :  { %215 = dma.vmem_to_hbm [thread:$0]  %s213_s3, 32, %s399_s5, [#allocation3]  }
 0x1da   :  { %308 = dma.done.wait [#allocation3], 32  }
 0x1db   :  { %309 = vsyncadd [#allocation3], 4294967264 }
 0x1dc   :  { %219 = vsyncpa [#allocation3], 1 }

// kernel: _lambda_.11
= control target key start
LH: loop header
LB: loop body
LE: loop exit
PB: predicated region body
PF: predicated region fallthrough
CT: control target
= control target key end

     0   :  { %s622_s18 = smov 0   ;;  %s663_s0 = inlined_call_operand.vmem [shape: f32[2,4,32], index: 0, kind: input, shape index: {}]   ;;  %s664_s1 = inlined_call_operand.vmem [shape: bf16[2,32,32], index: 1, kind: input, shape index: {}]   ;;  %s665_s2 = inlined_call_operand.vmem [shape: f32[2,1,32], index: 2, kind: input, shape index: {}]   ;;  %s666_s3 = inlined_call_operand.vmem [shape: bf16[2,32,10], index: 3, kind: input, shape index: {}]   ;;  %s667_s4 = inlined_call_operand.vmem [shape: f32[2,1,10], index: 4, kind: input, shape index: {}]   ;;  %s668_s5 = inlined_call_operand.vmem [shape: f32[2,4,10], index: 5, kind: output, shape index: {}]  }
   0x1 LB: > { %s523_s19 = sadd.s32 4294967295, %s588_s18   ;;  %p527_p0 = scmp.ge.s32.totalorder %s588_s18, 1  ;;  %s588_s18 = sphi %s622_s18, %s15_s18  }
   0x2   : > { %p222_p1 = scmp.lt.s32.totalorder %s588_s18, 3 }
   0x4   : > { %p223_p2 = pnand %p527_p0, %p222_p1 }
   0x5   : > { %p264_p3 = scmp.lt.s32.totalorder (!%p223_p2), %s523_s19, 1  ;;  %v590_v0 = vmov (!%p223_p2), 0.0   ;;  %vm591_vm0 = vmmov (!%p223_p2), 0   ;;  %vm314_vm1 = vcmask (!%p223_p2), 261120   ;;  %vm426_vm2 = vcmask (!%p223_p2), 76800  }
   0x6   : > { %226 = sbr.rel (%p223_p2) target bundleno = 457 (0x1c9), region = 40  ;;  %552 = vmatprep.subr.bf16.mxu0 (!%p223_p2), %v590_v0  ;;  %556 = vmatprep.mubr.msk.bf16.mxu0 (!%p223_p2), %vm591_vm0, %v590_v0 }
   0x7   : > { %560 = vmatprep.subr.bf16.mxu1 (!%p223_p2), %v590_v0  ;;  %564 = vmatprep.mubr.msk.bf16.mxu1 (!%p223_p2), %vm591_vm0, %v590_v0 }
   0xd   : > { %s670_s19 = smov (!%p264_p3, %s523_s19), 1 }
   0xe   : > { %s544_s20 = sshll.u32 %s670_s19, 4  ;;  %s528_s21 = sshll.u32 %s670_s19, 2 }
   0xf   : > { %s272_s24 = scalar_lea.vmem %s664_s1, %s544_s20  ;;  %s267_s27 = scalar_lea.vmem %s663_s0, %s528_s21 }
  0x10   : > { %v578_v1 = vld [vmem:[%s272_s24] sm:$0xff]   ;;  %v579_v2 = vld [vmem:[%s272_s24 + $0x8] sm:$0xff]   ;;  %s280_s30 = scalar_lea.vmem %s666_s3, %s544_s20  ;;  %s275_s8 = scalar_lea.vmem %s665_s2, %s670_s19 }
  0x11   : > { %553 = vmatpush3.bf16.msra.mxu0 %v578_v1  ;;  %v289_v3 = vld [vmem:[%s267_s27] sm:$0xf]  ;;  %v581_v6 = vld [vmem:[%s280_s30 + $0x8] sm:$0xff]   ;;  %s283_s11 = scalar_lea.vmem %s667_s4, %s670_s19  ;;  %s287_s14 = scalar_lea.vmem %s668_s5, %s528_s21 }
  0x12   : > { %554 = vmatprep.subr.bf16.mxu0 %v590_v0  ;;  %v294_v4 = vpack.c.bf16 %v289_v3, %v289_v3  ;;  %v580_v5 = vld [vmem:[%s280_s30] sm:$0xff]  }
  0x13   : > { %561 = vmatpush3.bf16.msra.mxu1 %v580_v5  ;;  %v534_v7 = vld [vmem:[%s275_s8] ss:$0 sm:$0xff] }
  0x14   : > { %562 = vmatprep.subr.bf16.mxu1 %v590_v0  ;;  %v538_v15 = vld [vmem:[%s283_s11] ss:$0 sm:$0xff] }
  0x15   : > { %555 = vmatpush3.bf16.msra.mxu0 %v579_v2 }
  0x17   : > { %563 = vmatpush3.bf16.msra.mxu1 %v581_v6 }
  0x18   : > { %557 = vmatmul.mubr.msk.bf16.vlgmr.msra.gmra.mrb[0].mxu0 %vm314_vm1, %v294_v4 }
  0xeb   : > { %v352_v8 = vpop.f32.mrb[0].mxu0 }
  0xec   : > { %v353_v9 = vadd.f32 %v534_v7, %v352_v8  ;;  %v558_v10 = vpop.f32.mrb[1].mxu0 }
  0xed   : > { %v355_v11 = vpop.f32.mrb[2].mxu0 }
  0xee   : > { %v358_v12 = vmax.f32 %v353_v9, 0.0  ;;  %v559_v13 = vpop.f32.mrb[3].mxu0 }
  0xf0   : > { %v363_v14 = vpack.c.bf16 %v358_v12, %v358_v12 }
  0xf2   : > { %565 = vmatmul.mubr.msk.bf16.vlgmr.msra.gmra.mrb[0].mxu1 %vm314_vm1, %v363_v14 }
 0x1c5   : > { %v420_v16 = vpop.f32.mrb[0].mxu1 }
 0x1c6   : > { %v421_v17 = vadd.f32 %v538_v15, %v420_v16  ;;  %v566_v18 = vpop.f32.mrb[1].mxu1 }
 0x1c7   : > { %v423_v19 = vpop.f32.mrb[2].mxu1 }
 0x1c8   : > { %427 = vst.msk [vmem:[%s287_s14] sm:$0xf] %vm426_vm2, %v421_v17  ;;  %v567_v20 = vpop.f32.mrb[3].mxu1 }
 0x1c9 PF: > { %s15_s18 = sadd.s32 1, %s588_s18  }
 0x1ca   : > { %p12_p4 = scmp.ge.s32.totalorder %s15_s18, 4  }
 0x1cc   :  { %14 = sbr.rel (!%p12_p4) target bundleno = 1 (0x1), region = 82 }

</bundles_post_ra>
